<compile_context>
chip_gen: v5e
topology: v5e:2x2
jax: 0.10.0
libtpu: 0.0.40
codegen_flags: <defaults>
</compile_context>

<pallas_src>
import functools
import math

import jax
import jax.numpy as jnp
from jax import lax
from jax.experimental import pallas as pl
from jax.experimental.pallas import tpu as pltpu


# ------------------------- VMEM limits (per generation) ---------------------

_DEFAULT_VMEM_CAP = 64 * 1024 * 1024      # v7x per-TensorCore VMEM (smallest)


@functools.lru_cache(maxsize=None)
def _vmem_limits():
    """(vmem_limit_bytes for CompilerParams, per-kernel tile budget)."""
    cap = _DEFAULT_VMEM_CAP
    try:
        info = pltpu.get_tpu_info()
        cap_q = getattr(info, "vmem_capacity_bytes", None)
        if cap_q:
            cap = int(cap_q)
    except Exception:
        pass
    # ~25% headroom for Mosaic internal scratch:
    #   v7x (64 MiB) -> 48 MiB, v5e/v6e (128 MiB) -> 96 MiB.
    limit = min(cap * 3 // 4, 96 * 1024 * 1024)
    budget = max(limit - 12 * 1024 * 1024, limit * 2 // 3)
    return limit, budget


# ----------------------------- Pallas kernels ------------------------------

def _conv_bias_kernel(a_ref, w_ref, b_ref, o_ref):
    # a: (tm, K) bf16 patches, w: (K, N) bf16, b: (1, N) f32
    acc = jnp.dot(a_ref[...], w_ref[...], preferred_element_type=jnp.float32)
    o_ref[...] = (acc + b_ref[...]).astype(o_ref.dtype)


def _conv_gdn_kernel(a_ref, w_ref, b_ref, gamma_ref, beta_ref, o_ref, *, inverse):
    # Fused conv (+bias) followed by GDN / IGDN on the in-VMEM f32 accumulator.
    #   GDN:  y = x * rsqrt(beta + (x*x) @ gamma)
    #   IGDN: y = x *  sqrt(beta + (x*x) @ gamma)
    acc = jnp.dot(a_ref[...], w_ref[...], preferred_element_type=jnp.float32)
    x = acc + b_ref[...]
    z = jnp.dot(x * x, gamma_ref[...],
                preferred_element_type=jnp.float32) + beta_ref[...]
    # Guard: non-PSD gamma or garbage rows of a masked partial tile must not
    # produce NaN (never binds for valid GDN params: gamma >= 0, beta > 0).
    z = jnp.maximum(z, 1e-12)
    if inverse:
        y = x * jnp.sqrt(z)
    else:
        y = x * lax.rsqrt(z)
    o_ref[...] = y.astype(o_ref.dtype)


# --------------------------- tile-size selection ----------------------------

def _choose_tm(M, K, N, out_itemsize, with_gdn):
    """Largest M-tile that fits the double-buffered VMEM budget.

    Prefers a tile that divides M (no partial block); otherwise returns a
    fixed multiple-of-8 tile and the caller uses a cdiv grid (Pallas masks
    the out-of-bounds writes of the last block).  Capped at M//2 so the grid
    has >= 2 steps (v7x has 2 TensorCores) whenever M >= 16.
    """
    _, budget = _vmem_limits()

    def fits(tm):
        a_bytes = 2 * tm * K * 2                    # double-buffered bf16 A tiles
        o_bytes = 2 * tm * N * out_itemsize         # double-buffered output tiles
        w_bytes = 2 * K * N * 2                     # weights (also double-buffered)
        misc = 2 * N * 4                            # bias
        if with_gdn:
            misc += 2 * (N * N * 4 + N * 4)         # gamma + beta
        return a_bytes + o_bytes + w_bytes + misc <= budget

    cap = max(8, M // 2)
    fitting = [tm for tm in (8, 16, 32, 64, 128, 256, 512, 1024, 2048)
               if tm <= cap and tm <= M and fits(tm)]
    if fitting:
        best_any = max(fitting)
        divs = [tm for tm in fitting if M % tm == 0 and tm * 4 >= best_any]
        if divs:
            return max(divs)                        # exact tiling, >=2 steps
    if M <= 1024 and fits(M):
        return M                                    # small M: one full-extent block
    if fitting:
        return max(fitting)                         # cdiv grid; partial last block
    return M if M < 8 else 8                        # weights dominate VMEM


# --------------------------- fused matmul wrapper ----------------------------

def conv_matmul(patches, w_mat, bias, *, gamma=None, beta=None, inverse=False,
                out_dtype=jnp.float32):
    """(M, K) @ (K, N) + bias [optionally fused GDN/IGDN], tiled over M."""
    M, K = patches.shape
    K2, N = w_mat.shape
    assert K == K2
    out_itemsize = jnp.dtype(out_dtype).itemsize
    tm = _choose_tm(M, K, N, out_itemsize, gamma is not None)
    grid = (pl.cdiv(M, tm),)
    vmem_limit, _ = _vmem_limits()

    a = patches.astype(jnp.bfloat16)
    w = w_mat.astype(jnp.bfloat16)
    b = bias.reshape(1, N).astype(jnp.float32)

    cp = pltpu.CompilerParams(
        dimension_semantics=("parallel",),
        vmem_limit_bytes=vmem_limit,
    )

    if gamma is None:
        kernel = _conv_bias_kernel
        in_specs = [
            pl.BlockSpec((tm, K), lambda i: (i, 0)),
            pl.BlockSpec((K, N), lambda i: (0, 0)),
            pl.BlockSpec((1, N), lambda i: (0, 0)),
        ]
        args = (a, w, b)
    else:
        kernel = functools.partial(_conv_gdn_kernel, inverse=inverse)
        g = gamma.astype(jnp.float32)
        bt = beta.reshape(1, N).astype(jnp.float32)
        in_specs = [
            pl.BlockSpec((tm, K), lambda i: (i, 0)),
            pl.BlockSpec((K, N), lambda i: (0, 0)),
            pl.BlockSpec((1, N), lambda i: (0, 0)),
            pl.BlockSpec((N, N), lambda i: (0, 0)),
            pl.BlockSpec((1, N), lambda i: (0, 0)),
        ]
        args = (a, w, b, g, bt)

    out = pl.pallas_call(
        kernel,
        out_shape=jax.ShapeDtypeStruct((M, N), out_dtype),
        grid=grid,
        in_specs=in_specs,
        out_specs=pl.BlockSpec((tm, N), lambda i: (i, 0)),
        compiler_params=cp,
    )(*args)
    return out


# ------------------------------- JAX glue ----------------------------------

def _extract_patches(x_nhwc, ksize_hw, stride, padding):
    """Single fused patch extraction (NHWC) -> (N*Ho*Wo, Cin*KH*KW).

    Feature order is (cin, ky, kx) -- channel-major -- matching
    lax.conv_general_dilated_patches' grouped-conv ordering, and matching the
    (Cin, KH, KW, Cout) weight layout used throughout this file."""
    n, h, w, c = x_nhwc.shape
    patches = lax.conv_general_dilated_patches(
        x_nhwc,
        filter_shape=tuple(ksize_hw),
        window_strides=(stride, stride),
        padding=tuple(padding),
        dimension_numbers=("NHWC", "HWIO", "NHWC"),
    )
    ho, wo = patches.shape[1], patches.shape[2]
    k = c * ksize_hw[0] * ksize_hw[1]
    return patches.reshape(n * ho * wo, k), (n, ho, wo)


def conv2d(x, w4, bias, stride, padding, *, gamma=None, beta=None,
           inverse=False, out_dtype=jnp.float32):
    """Stride-s 5x5 conv (+bias, + optional fused GDN/IGDN).  x: NHWC,
    w4: (Cin, KH, KW, Cout) forward-conv weight."""
    cin, kh, kw, cout = w4.shape
    x16 = x.astype(jnp.bfloat16)                     # bf16 BEFORE patch inflation
    pad = ((padding, padding), (padding, padding))
    patches, (n, ho, wo) = _extract_patches(x16, (kh, kw), stride, pad)
    w_mat = w4.reshape(cin * kh * kw, cout)
    out = conv_matmul(patches, w_mat, bias, gamma=gamma, beta=beta,
                      inverse=inverse, out_dtype=out_dtype)
    return out.reshape(n, ho, wo, cout)


def _subpixel_weight(w4):
    """Fold the forward-equivalent 5x5 weight of a stride-2 ConvTranspose
    (padding=2, output_padding=1) into a single (Cin*9, 4*Cout) GEMM weight
    over 3x3 stride-1 patches.  Column order: (phase_a, phase_b, cout), with
    output pixel (2i+a, 2j+b) produced by phase (a, b)."""
    cin, kh, kw, cout = w4.shape
    assert kh == 5 and kw == 5
    wf = jnp.zeros((cin, 3, 3, 2, 2, cout), w4.dtype)
    for a in range(2):
        for dyp in range(3):
            ky = 2 * dyp if a == 0 else 2 * dyp - 1
            if not 0 <= ky < 5:
                continue
            for b in range(2):
                for dxp in range(3):
                    kx = 2 * dxp if b == 0 else 2 * dxp - 1
                    if not 0 <= kx < 5:
                        continue
                    wf = wf.at[:, dyp, dxp, a, b, :].set(w4[:, ky, kx, :])
    return wf.reshape(cin * 9, 4 * cout)


def conv_transpose2d_s2(x, w4, bias, *, gamma=None, beta=None,
                        out_dtype=jnp.float32):
    """ConvTranspose2d(k=5, stride=2, padding=2, output_padding=1) via the
    4-phase sub-pixel decomposition fused into ONE GEMM (no zero-insertion).
    IGDN (if given) is fused per phase via a block-diagonal gamma."""
    cin, kh, kw, cout = w4.shape
    x16 = x.astype(jnp.bfloat16)
    patches, (n, ho, wo) = _extract_patches(x16, (3, 3), 1, ((1, 1), (1, 1)))
    w_fused = _subpixel_weight(w4)                       # (9*Cin, 4*Cout)
    b_fused = jnp.tile(bias.reshape(-1), 4)
    if gamma is not None:
        gamma_f = jnp.kron(jnp.eye(4, dtype=jnp.float32), gamma.astype(jnp.float32))
        beta_f = jnp.tile(beta.reshape(-1), 4)
    else:
        gamma_f = None
        beta_f = None
    out = conv_matmul(patches, w_fused, b_fused, gamma=gamma_f, beta=beta_f,
                      inverse=True, out_dtype=out_dtype)
    # pixel shuffle: (N*Hi*Wi, 2*2*Cout) -> (N, 2*Hi, 2*Wi, Cout)
    out = out.reshape(n, ho, wo, 2, 2, cout)
    out = out.transpose(0, 1, 3, 2, 4, 5).reshape(n, 2 * ho, 2 * wo, cout)
    return out


# ------------------------- deterministic parameters -------------------------

def _conv_params(key, cin, cout, ksize):
    fan_in = cin * ksize * ksize
    bound = 1.0 / math.sqrt(fan_in)
    k_w, k_b = jax.random.split(key)
    w = jax.random.uniform(k_w, (cin, ksize, ksize, cout), jnp.float32,
                           -bound, bound)
    b = jax.random.uniform(k_b, (cout,), jnp.float32, -bound, bound)
    return w, b


def _gdn_params(c):
    # standard GDN init: gamma = 0.1 * I, beta = 1  (beta + sum gamma*x^2 > 0)
    return 0.1 * jnp.eye(c, dtype=jnp.float32), jnp.ones((c,), jnp.float32)


def init_params(key, input_channels, nf):
    ks = jax.random.split(key, 8)
    p = {}
    p['w1'], p['b1'] = _conv_params(ks[0], input_channels, nf, 5)
    p['w2'], p['b2'] = _conv_params(ks[1], nf, 2 * nf, 5)
    p['w3'], p['b3'] = _conv_params(ks[2], 2 * nf, 2 * nf, 5)
    p['w4'], p['b4'] = _conv_params(ks[3], 2 * nf, 4 * nf, 5)
    p['dw1'], p['db1'] = _conv_params(ks[4], 4 * nf, 2 * nf, 5)
    p['dw2'], p['db2'] = _conv_params(ks[5], 2 * nf, 2 * nf, 5)
    p['dw3'], p['db3'] = _conv_params(ks[6], 2 * nf, nf, 5)
    p['dw4'], p['db4'] = _conv_params(ks[7], nf, input_channels, 5)
    p['g1_gamma'], p['g1_beta'] = _gdn_params(nf)
    p['g2_gamma'], p['g2_beta'] = _gdn_params(2 * nf)
    p['g3_gamma'], p['g3_beta'] = _gdn_params(2 * nf)
    p['ig1_gamma'], p['ig1_beta'] = _gdn_params(2 * nf)
    p['ig2_gamma'], p['ig2_beta'] = _gdn_params(2 * nf)
    p['ig3_gamma'], p['ig3_beta'] = _gdn_params(nf)
    return p


# ------------------------------ forward pass --------------------------------

def forward(params, x_nchw):
    p = params
    act = jnp.bfloat16                               # inter-layer storage dtype
    x = jnp.transpose(x_nchw, (0, 2, 3, 1))          # NCHW -> NHWC
    # encode (conv + fused GDN)
    x = conv2d(x, p['w1'], p['b1'], 1, 2,
               gamma=p['g1_gamma'], beta=p['g1_beta'], out_dtype=act)
    x = conv2d(x, p['w2'], p['b2'], 1, 2,
               gamma=p['g2_gamma'], beta=p['g2_beta'], out_dtype=act)
    x = conv2d(x, p['w3'], p['b3'], 2, 2,
               gamma=p['g3_gamma'], beta=p['g3_beta'], out_dtype=act)
    z = conv2d(x, p['w4'], p['b4'], 2, 2, out_dtype=jnp.float32)
    # decode: stride-1 deconvs == stride-1 convs with pad (k-1-p)=2; stride-2
    # deconvs use the fused 4-phase sub-pixel GEMM.  IGDN fused in all cases.
    x = conv2d(z, p['dw1'], p['db1'], 1, 2,
               gamma=p['ig1_gamma'], beta=p['ig1_beta'],
               inverse=True, out_dtype=act)
    x = conv2d(x, p['dw2'], p['db2'], 1, 2,
               gamma=p['ig2_gamma'], beta=p['ig2_beta'],
               inverse=True, out_dtype=act)
    x = conv_transpose2d_s2(x, p['dw3'], p['db3'],
                            gamma=p['ig3_gamma'], beta=p['ig3_beta'],
                            out_dtype=act)
    xhat = conv_transpose2d_s2(x, p['dw4'], p['db4'], out_dtype=jnp.float32)
    # back to NCHW to match PyTorch return convention
    z_nchw = jnp.transpose(z, (0, 3, 1, 2))
    xhat_nchw = jnp.transpose(xhat, (0, 3, 1, 2))
    return z_nchw, xhat_nchw


if __name__ == "__main__":
    # small test config: input_channels=8, num_filters=16, batch=2, 8x8 spatial
    input_channels, num_filters = 8, 16
    key = jax.random.PRNGKey(0)
    k_param, k_x = jax.random.split(key)
    params = init_params(k_param, input_channels, num_filters)
    x = jax.random.normal(k_x, (2, input_channels, 8, 8), jnp.float32)  # NCHW

    fwd = jax.jit(forward)
    z, xhat = fwd(params, x)
    jax.block_until_ready((z, xhat))

    assert z.shape == (2, 4 * num_filters, 2, 2), z.shape
    assert xhat.shape == (2, input_channels, 8, 8), xhat.shape
    assert z.dtype == jnp.float32 and xhat.dtype == jnp.float32
    assert bool(jnp.all(jnp.isfinite(z))) and bool(jnp.all(jnp.isfinite(xhat)))
    print("KERNEL_OK")
</pallas_src>

<mosaic_0001>
module attributes {stable_mosaic.version = 11 : i64} {
  func.func @_conv_gdn_kernel(%arg0: i32, %arg1: memref<64x200xbf16, #tpu.memory_space<vmem>>, %arg2: memref<200x16xbf16, #tpu.memory_space<vmem>>, %arg3: memref<1x16xf32, #tpu.memory_space<vmem>>, %arg4: memref<16x16xf32, #tpu.memory_space<vmem>>, %arg5: memref<1x16xf32, #tpu.memory_space<vmem>>, %arg6: memref<64x16xbf16, #tpu.memory_space<vmem>>) attributes {dimension_semantics = [#tpu.dimension_semantics<parallel>], iteration_bounds = array<i64: 2>, scalar_prefetch = 0 : i64, scratch_operands = 0 : i64, tpu.core_type = #tpu.core_type<tc>, window_params = [{transform_indices = @transform_0, window_bounds = array<i64: 64, 200>}, {pipeline_mode = #tpu.pipeline_mode<synchronous>, transform_indices = @transform_1, window_bounds = array<i64: 200, 16>}, {pipeline_mode = #tpu.pipeline_mode<synchronous>, transform_indices = @transform_2, window_bounds = array<i64: 1, 16>}, {pipeline_mode = #tpu.pipeline_mode<synchronous>, transform_indices = @transform_3, window_bounds = array<i64: 16, 16>}, {pipeline_mode = #tpu.pipeline_mode<synchronous>, transform_indices = @transform_4, window_bounds = array<i64: 1, 16>}, {transform_indices = @transform_5, window_bounds = array<i64: 64, 16>}]} {
    %c0 = arith.constant 0 : index
    %c0_0 = arith.constant 0 : index
    %0 = vector.load %arg1[%c0, %c0_0] : memref<64x200xbf16, #tpu.memory_space<vmem>>, vector<64x200xbf16>
    %c0_1 = arith.constant 0 : index
    %c0_2 = arith.constant 0 : index
    %1 = vector.load %arg2[%c0_1, %c0_2] : memref<200x16xbf16, #tpu.memory_space<vmem>>, vector<200x16xbf16>
    %cst = arith.constant dense<0.000000e+00> : vector<64x16xf32>
    %2 = tpu.matmul %0, %1, %cst {dimension_numbers = #tpu.dot_dimension_numbers<[1], [0], [0], [1], [0, 0, 1, 1], [], []>} : vector<64x200xbf16>, vector<200x16xbf16>, vector<64x16xf32> -> vector<64x16xf32>
    %c0_3 = arith.constant 0 : index
    %c0_4 = arith.constant 0 : index
    %3 = vector.load %arg3[%c0_3, %c0_4] : memref<1x16xf32, #tpu.memory_space<vmem>>, vector<1x16xf32>
    %4 = vector.broadcast %3 : vector<1x16xf32> to vector<64x16xf32>
    %5 = arith.addf %2, %4 : vector<64x16xf32>
    %6 = arith.mulf %5, %5 : vector<64x16xf32>
    %c0_5 = arith.constant 0 : index
    %c0_6 = arith.constant 0 : index
    %7 = vector.load %arg4[%c0_5, %c0_6] : memref<16x16xf32, #tpu.memory_space<vmem>>, vector<16x16xf32>
    %cst_7 = arith.constant dense<0.000000e+00> : vector<64x16xf32>
    %8 = tpu.matmul %6, %7, %cst_7 {dimension_numbers = #tpu.dot_dimension_numbers<[1], [0], [0], [1], [0, 0, 1, 1], [], []>} : vector<64x16xf32>, vector<16x16xf32>, vector<64x16xf32> -> vector<64x16xf32>
    %c0_8 = arith.constant 0 : index
    %c0_9 = arith.constant 0 : index
    %9 = vector.load %arg5[%c0_8, %c0_9] : memref<1x16xf32, #tpu.memory_space<vmem>>, vector<1x16xf32>
    %10 = vector.broadcast %9 : vector<1x16xf32> to vector<64x16xf32>
    %11 = arith.addf %8, %10 : vector<64x16xf32>
    %cst_10 = arith.constant 9.99999996E-13 : f32
    %12 = vector.broadcast %cst_10 : f32 to vector<64x16xf32>
    %13 = arith.maximumf %11, %12 : vector<64x16xf32>
    %14 = math.rsqrt %13 : vector<64x16xf32>
    %15 = arith.mulf %5, %14 : vector<64x16xf32>
    %16 = arith.truncf %15 : vector<64x16xf32> to vector<64x16xbf16>
    %c0_11 = arith.constant 0 : index
    %c0_12 = arith.constant 0 : index
    %17 = vector.load %arg6[%c0_11, %c0_12] : memref<64x16xbf16, #tpu.memory_space<vmem>>, vector<64x16xbf16>
    tpu.vector_store %arg6[%c0_11, %c0_12], %16 {strides = array<i32>} : memref<64x16xbf16, #tpu.memory_space<vmem>>, vector<64x16xbf16>,
    return
  }
  func.func @transform_0(%arg0: i32) -> (i32, i32) {
    %c0_i32 = arith.constant 0 : i32
    %c0_i32_0 = arith.constant 0 : i32
    return %arg0, %c0_i32 : i32, i32
  }
  func.func @transform_1(%arg0: i32) -> (i32, i32) {
    %c0_i32 = arith.constant 0 : i32
    %c0_i32_0 = arith.constant 0 : i32
    %c0_i32_1 = arith.constant 0 : i32
    return %c0_i32, %c0_i32_0 : i32, i32
  }
  func.func @transform_2(%arg0: i32) -> (i32, i32) {
    %c0_i32 = arith.constant 0 : i32
    %c0_i32_0 = arith.constant 0 : i32
    %c0_i32_1 = arith.constant 0 : i32
    return %c0_i32, %c0_i32_0 : i32, i32
  }
  func.func @transform_3(%arg0: i32) -> (i32, i32) {
    %c0_i32 = arith.constant 0 : i32
    %c0_i32_0 = arith.constant 0 : i32
    %c0_i32_1 = arith.constant 0 : i32
    return %c0_i32, %c0_i32_0 : i32, i32
  }
  func.func @transform_4(%arg0: i32) -> (i32, i32) {
    %c0_i32 = arith.constant 0 : i32
    %c0_i32_0 = arith.constant 0 : i32
    %c0_i32_1 = arith.constant 0 : i32
    return %c0_i32, %c0_i32_0 : i32, i32
  }
  func.func @transform_5(%arg0: i32) -> (i32, i32) {
    %c0_i32 = arith.constant 0 : i32
    %c0_i32_0 = arith.constant 0 : i32
    return %arg0, %c0_i32 : i32, i32
  }
}

module attributes {stable_mosaic.version = 11 : i64} {
  func.func @_conv_gdn_kernel(%arg0: i32, %arg1: memref<64x400xbf16, #tpu.memory_space<vmem>>, %arg2: memref<400x32xbf16, #tpu.memory_space<vmem>>, %arg3: memref<1x32xf32, #tpu.memory_space<vmem>>, %arg4: memref<32x32xf32, #tpu.memory_space<vmem>>, %arg5: memref<1x32xf32, #tpu.memory_space<vmem>>, %arg6: memref<64x32xbf16, #tpu.memory_space<vmem>>) attributes {dimension_semantics = [#tpu.dimension_semantics<parallel>], iteration_bounds = array<i64: 2>, scalar_prefetch = 0 : i64, scratch_operands = 0 : i64, tpu.core_type = #tpu.core_type<tc>, window_params = [{transform_indices = @transform_0, window_bounds = array<i64: 64, 400>}, {pipeline_mode = #tpu.pipeline_mode<synchronous>, transform_indices = @transform_1, window_bounds = array<i64: 400, 32>}, {pipeline_mode = #tpu.pipeline_mode<synchronous>, transform_indices = @transform_2, window_bounds = array<i64: 1, 32>}, {pipeline_mode = #tpu.pipeline_mode<synchronous>, transform_indices = @transform_3, window_bounds = array<i64: 32, 32>}, {pipeline_mode = #tpu.pipeline_mode<synchronous>, transform_indices = @transform_4, window_bounds = array<i64: 1, 32>}, {transform_indices = @transform_5, window_bounds = array<i64: 64, 32>}]} {
    %c0 = arith.constant 0 : index
    %c0_0 = arith.constant 0 : index
    %0 = vector.load %arg1[%c0, %c0_0] : memref<64x400xbf16, #tpu.memory_space<vmem>>, vector<64x400xbf16>
    %c0_1 = arith.constant 0 : index
    %c0_2 = arith.constant 0 : index
    %1 = vector.load %arg2[%c0_1, %c0_2] : memref<400x32xbf16, #tpu.memory_space<vmem>>, vector<400x32xbf16>
    %cst = arith.constant dense<0.000000e+00> : vector<64x32xf32>
    %2 = tpu.matmul %0, %1, %cst {dimension_numbers = #tpu.dot_dimension_numbers<[1], [0], [0], [1], [0, 0, 1, 1], [], []>} : vector<64x400xbf16>, vector<400x32xbf16>, vector<64x32xf32> -> vector<64x32xf32>
    %c0_3 = arith.constant 0 : index
    %c0_4 = arith.constant 0 : index
    %3 = vector.load %arg3[%c0_3, %c0_4] : memref<1x32xf32, #tpu.memory_space<vmem>>, vector<1x32xf32>
    %4 = vector.broadcast %3 : vector<1x32xf32> to vector<64x32xf32>
    %5 = arith.addf %2, %4 : vector<64x32xf32>
    %6 = arith.mulf %5, %5 : vector<64x32xf32>
    %c0_5 = arith.constant 0 : index
    %c0_6 = arith.constant 0 : index
    %7 = vector.load %arg4[%c0_5, %c0_6] : memref<32x32xf32, #tpu.memory_space<vmem>>, vector<32x32xf32>
    %cst_7 = arith.constant dense<0.000000e+00> : vector<64x32xf32>
    %8 = tpu.matmul %6, %7, %cst_7 {dimension_numbers = #tpu.dot_dimension_numbers<[1], [0], [0], [1], [0, 0, 1, 1], [], []>} : vector<64x32xf32>, vector<32x32xf32>, vector<64x32xf32> -> vector<64x32xf32>
    %c0_8 = arith.constant 0 : index
    %c0_9 = arith.constant 0 : index
    %9 = vector.load %arg5[%c0_8, %c0_9] : memref<1x32xf32, #tpu.memory_space<vmem>>, vector<1x32xf32>
    %10 = vector.broadcast %9 : vector<1x32xf32> to vector<64x32xf32>
    %11 = arith.addf %8, %10 : vector<64x32xf32>
    %cst_10 = arith.constant 9.99999996E-13 : f32
    %12 = vector.broadcast %cst_10 : f32 to vector<64x32xf32>
    %13 = arith.maximumf %11, %12 : vector<64x32xf32>
    %14 = math.rsqrt %13 : vector<64x32xf32>
    %15 = arith.mulf %5, %14 : vector<64x32xf32>
    %16 = arith.truncf %15 : vector<64x32xf32> to vector<64x32xbf16>
    %c0_11 = arith.constant 0 : index
    %c0_12 = arith.constant 0 : index
    %17 = vector.load %arg6[%c0_11, %c0_12] : memref<64x32xbf16, #tpu.memory_space<vmem>>, vector<64x32xbf16>
    tpu.vector_store %arg6[%c0_11, %c0_12], %16 {strides = array<i32>} : memref<64x32xbf16, #tpu.memory_space<vmem>>, vector<64x32xbf16>,
    return
  }
  func.func @transform_0(%arg0: i32) -> (i32, i32) {
    %c0_i32 = arith.constant 0 : i32
    %c0_i32_0 = arith.constant 0 : i32
    return %arg0, %c0_i32 : i32, i32
  }
  func.func @transform_1(%arg0: i32) -> (i32, i32) {
    %c0_i32 = arith.constant 0 : i32
    %c0_i32_0 = arith.constant 0 : i32
    %c0_i32_1 = arith.constant 0 : i32
    return %c0_i32, %c0_i32_0 : i32, i32
  }
  func.func @transform_2(%arg0: i32) -> (i32, i32) {
    %c0_i32 = arith.constant 0 : i32
    %c0_i32_0 = arith.constant 0 : i32
    %c0_i32_1 = arith.constant 0 : i32
    return %c0_i32, %c0_i32_0 : i32, i32
  }
  func.func @transform_3(%arg0: i32) -> (i32, i32) {
    %c0_i32 = arith.constant 0 : i32
    %c0_i32_0 = arith.constant 0 : i32
    %c0_i32_1 = arith.constant 0 : i32
    return %c0_i32, %c0_i32_0 : i32, i32
  }
  func.func @transform_4(%arg0: i32) -> (i32, i32) {
    %c0_i32 = arith.constant 0 : i32
    %c0_i32_0 = arith.constant 0 : i32
    %c0_i32_1 = arith.constant 0 : i32
    return %c0_i32, %c0_i32_0 : i32, i32
  }
  func.func @transform_5(%arg0: i32) -> (i32, i32) {
    %c0_i32 = arith.constant 0 : i32
    %c0_i32_0 = arith.constant 0 : i32
    return %arg0, %c0_i32 : i32, i32
  }
}

module attributes {stable_mosaic.version = 11 : i64} {
  func.func @_conv_gdn_kernel(%arg0: i32, %arg1: memref<16x800xbf16, #tpu.memory_space<vmem>>, %arg2: memref<800x32xbf16, #tpu.memory_space<vmem>>, %arg3: memref<1x32xf32, #tpu.memory_space<vmem>>, %arg4: memref<32x32xf32, #tpu.memory_space<vmem>>, %arg5: memref<1x32xf32, #tpu.memory_space<vmem>>, %arg6: memref<16x32xbf16, #tpu.memory_space<vmem>>) attributes {dimension_semantics = [#tpu.dimension_semantics<parallel>], iteration_bounds = array<i64: 2>, scalar_prefetch = 0 : i64, scratch_operands = 0 : i64, tpu.core_type = #tpu.core_type<tc>, window_params = [{transform_indices = @transform_0, window_bounds = array<i64: 16, 800>}, {pipeline_mode = #tpu.pipeline_mode<synchronous>, transform_indices = @transform_1, window_bounds = array<i64: 800, 32>}, {pipeline_mode = #tpu.pipeline_mode<synchronous>, transform_indices = @transform_2, window_bounds = array<i64: 1, 32>}, {pipeline_mode = #tpu.pipeline_mode<synchronous>, transform_indices = @transform_3, window_bounds = array<i64: 32, 32>}, {pipeline_mode = #tpu.pipeline_mode<synchronous>, transform_indices = @transform_4, window_bounds = array<i64: 1, 32>}, {transform_indices = @transform_5, window_bounds = array<i64: 16, 32>}]} {
    %c0 = arith.constant 0 : index
    %c0_0 = arith.constant 0 : index
    %0 = vector.load %arg1[%c0, %c0_0] : memref<16x800xbf16, #tpu.memory_space<vmem>>, vector<16x800xbf16>
    %c0_1 = arith.constant 0 : index
    %c0_2 = arith.constant 0 : index
    %1 = vector.load %arg2[%c0_1, %c0_2] : memref<800x32xbf16, #tpu.memory_space<vmem>>, vector<800x32xbf16>
    %cst = arith.constant dense<0.000000e+00> : vector<16x32xf32>
    %2 = tpu.matmul %0, %1, %cst {dimension_numbers = #tpu.dot_dimension_numbers<[1], [0], [0], [1], [0, 0, 1, 1], [], []>} : vector<16x800xbf16>, vector<800x32xbf16>, vector<16x32xf32> -> vector<16x32xf32>
    %c0_3 = arith.constant 0 : index
    %c0_4 = arith.constant 0 : index
    %3 = vector.load %arg3[%c0_3, %c0_4] : memref<1x32xf32, #tpu.memory_space<vmem>>, vector<1x32xf32>
    %4 = vector.broadcast %3 : vector<1x32xf32> to vector<16x32xf32>
    %5 = arith.addf %2, %4 : vector<16x32xf32>
    %6 = arith.mulf %5, %5 : vector<16x32xf32>
    %c0_5 = arith.constant 0 : index
    %c0_6 = arith.constant 0 : index
    %7 = vector.load %arg4[%c0_5, %c0_6] : memref<32x32xf32, #tpu.memory_space<vmem>>, vector<32x32xf32>
    %cst_7 = arith.constant dense<0.000000e+00> : vector<16x32xf32>
    %8 = tpu.matmul %6, %7, %cst_7 {dimension_numbers = #tpu.dot_dimension_numbers<[1], [0], [0], [1], [0, 0, 1, 1], [], []>} : vector<16x32xf32>, vector<32x32xf32>, vector<16x32xf32> -> vector<16x32xf32>
    %c0_8 = arith.constant 0 : index
    %c0_9 = arith.constant 0 : index
    %9 = vector.load %arg5[%c0_8, %c0_9] : memref<1x32xf32, #tpu.memory_space<vmem>>, vector<1x32xf32>
    %10 = vector.broadcast %9 : vector<1x32xf32> to vector<16x32xf32>
    %11 = arith.addf %8, %10 : vector<16x32xf32>
    %cst_10 = arith.constant 9.99999996E-13 : f32
    %12 = vector.broadcast %cst_10 : f32 to vector<16x32xf32>
    %13 = arith.maximumf %11, %12 : vector<16x32xf32>
    %14 = math.rsqrt %13 : vector<16x32xf32>
    %15 = arith.mulf %5, %14 : vector<16x32xf32>
    %16 = arith.truncf %15 : vector<16x32xf32> to vector<16x32xbf16>
    %c0_11 = arith.constant 0 : index
    %c0_12 = arith.constant 0 : index
    %17 = vector.load %arg6[%c0_11, %c0_12] : memref<16x32xbf16, #tpu.memory_space<vmem>>, vector<16x32xbf16>
    tpu.vector_store %arg6[%c0_11, %c0_12], %16 {strides = array<i32>} : memref<16x32xbf16, #tpu.memory_space<vmem>>, vector<16x32xbf16>,
    return
  }
  func.func @transform_0(%arg0: i32) -> (i32, i32) {
    %c0_i32 = arith.constant 0 : i32
    %c0_i32_0 = arith.constant 0 : i32
    return %arg0, %c0_i32 : i32, i32
  }
  func.func @transform_1(%arg0: i32) -> (i32, i32) {
    %c0_i32 = arith.constant 0 : i32
    %c0_i32_0 = arith.constant 0 : i32
    %c0_i32_1 = arith.constant 0 : i32
    return %c0_i32, %c0_i32_0 : i32, i32
  }
  func.func @transform_2(%arg0: i32) -> (i32, i32) {
    %c0_i32 = arith.constant 0 : i32
    %c0_i32_0 = arith.constant 0 : i32
    %c0_i32_1 = arith.constant 0 : i32
    return %c0_i32, %c0_i32_0 : i32, i32
  }
  func.func @transform_3(%arg0: i32) -> (i32, i32) {
    %c0_i32 = arith.constant 0 : i32
    %c0_i32_0 = arith.constant 0 : i32
    %c0_i32_1 = arith.constant 0 : i32
    return %c0_i32, %c0_i32_0 : i32, i32
  }
  func.func @transform_4(%arg0: i32) -> (i32, i32) {
    %c0_i32 = arith.constant 0 : i32
    %c0_i32_0 = arith.constant 0 : i32
    %c0_i32_1 = arith.constant 0 : i32
    return %c0_i32, %c0_i32_0 : i32, i32
  }
  func.func @transform_5(%arg0: i32) -> (i32, i32) {
    %c0_i32 = arith.constant 0 : i32
    %c0_i32_0 = arith.constant 0 : i32
    return %arg0, %c0_i32 : i32, i32
  }
}

module attributes {stable_mosaic.version = 11 : i64} {
  func.func @_conv_bias_kernel(%arg0: i32, %arg1: memref<8x800xbf16, #tpu.memory_space<vmem>>, %arg2: memref<800x64xbf16, #tpu.memory_space<vmem>>, %arg3: memref<1x64xf32, #tpu.memory_space<vmem>>, %arg4: memref<8x64xf32, #tpu.memory_space<vmem>>) attributes {dimension_semantics = [#tpu.dimension_semantics<parallel>], iteration_bounds = array<i64: 1>, scalar_prefetch = 0 : i64, scratch_operands = 0 : i64, tpu.core_type = #tpu.core_type<tc>, window_params = [{transform_indices = @transform_0, window_bounds = array<i64: 8, 800>}, {pipeline_mode = #tpu.pipeline_mode<synchronous>, transform_indices = @transform_1, window_bounds = array<i64: 800, 64>}, {pipeline_mode = #tpu.pipeline_mode<synchronous>, transform_indices = @transform_2, window_bounds = array<i64: 1, 64>}, {transform_indices = @transform_3, window_bounds = array<i64: 8, 64>}]} {
    %c0 = arith.constant 0 : index
    %c0_0 = arith.constant 0 : index
    %0 = vector.load %arg1[%c0, %c0_0] : memref<8x800xbf16, #tpu.memory_space<vmem>>, vector<8x800xbf16>
    %c0_1 = arith.constant 0 : index
    %c0_2 = arith.constant 0 : index
    %1 = vector.load %arg2[%c0_1, %c0_2] : memref<800x64xbf16, #tpu.memory_space<vmem>>, vector<800x64xbf16>
    %cst = arith.constant dense<0.000000e+00> : vector<8x64xf32>
    %2 = tpu.matmul %0, %1, %cst {dimension_numbers = #tpu.dot_dimension_numbers<[1], [0], [0], [1], [0, 0, 1, 1], [], []>} : vector<8x800xbf16>, vector<800x64xbf16>, vector<8x64xf32> -> vector<8x64xf32>
    %c0_3 = arith.constant 0 : index
    %c0_4 = arith.constant 0 : index
    %3 = vector.load %arg3[%c0_3, %c0_4] : memref<1x64xf32, #tpu.memory_space<vmem>>, vector<1x64xf32>
    %4 = vector.broadcast %3 : vector<1x64xf32> to vector<8x64xf32>
    %5 = arith.addf %2, %4 : vector<8x64xf32>
    %c0_5 = arith.constant 0 : index
    %c0_6 = arith.constant 0 : index
    %6 = vector.load %arg4[%c0_5, %c0_6] : memref<8x64xf32, #tpu.memory_space<vmem>>, vector<8x64xf32>
    tpu.vector_store %arg4[%c0_5, %c0_6], %5 {strides = array<i32>} : memref<8x64xf32, #tpu.memory_space<vmem>>, vector<8x64xf32>,
    return
  }
  func.func @transform_0(%arg0: i32) -> (i32, i32) {
    %c0_i32 = arith.constant 0 : i32
    %c0_i32_0 = arith.constant 0 : i32
    return %arg0, %c0_i32 : i32, i32
  }
  func.func @transform_1(%arg0: i32) -> (i32, i32) {
    %c0_i32 = arith.constant 0 : i32
    %c0_i32_0 = arith.constant 0 : i32
    %c0_i32_1 = arith.constant 0 : i32
    return %c0_i32, %c0_i32_0 : i32, i32
  }
  func.func @transform_2(%arg0: i32) -> (i32, i32) {
    %c0_i32 = arith.constant 0 : i32
    %c0_i32_0 = arith.constant 0 : i32
    %c0_i32_1 = arith.constant 0 : i32
    return %c0_i32, %c0_i32_0 : i32, i32
  }
  func.func @transform_3(%arg0: i32) -> (i32, i32) {
    %c0_i32 = arith.constant 0 : i32
    %c0_i32_0 = arith.constant 0 : i32
    return %arg0, %c0_i32 : i32, i32
  }
}

module attributes {stable_mosaic.version = 11 : i64} {
  func.func @_conv_gdn_kernel(%arg0: i32, %arg1: memref<8x1600xbf16, #tpu.memory_space<vmem>>, %arg2: memref<1600x32xbf16, #tpu.memory_space<vmem>>, %arg3: memref<1x32xf32, #tpu.memory_space<vmem>>, %arg4: memref<32x32xf32, #tpu.memory_space<vmem>>, %arg5: memref<1x32xf32, #tpu.memory_space<vmem>>, %arg6: memref<8x32xbf16, #tpu.memory_space<vmem>>) attributes {dimension_semantics = [#tpu.dimension_semantics<parallel>], iteration_bounds = array<i64: 1>, scalar_prefetch = 0 : i64, scratch_operands = 0 : i64, tpu.core_type = #tpu.core_type<tc>, window_params = [{transform_indices = @transform_0, window_bounds = array<i64: 8, 1600>}, {pipeline_mode = #tpu.pipeline_mode<synchronous>, transform_indices = @transform_1, window_bounds = array<i64: 1600, 32>}, {pipeline_mode = #tpu.pipeline_mode<synchronous>, transform_indices = @transform_2, window_bounds = array<i64: 1, 32>}, {pipeline_mode = #tpu.pipeline_mode<synchronous>, transform_indices = @transform_3, window_bounds = array<i64: 32, 32>}, {pipeline_mode = #tpu.pipeline_mode<synchronous>, transform_indices = @transform_4, window_bounds = array<i64: 1, 32>}, {transform_indices = @transform_5, window_bounds = array<i64: 8, 32>}]} {
    %c0 = arith.constant 0 : index
    %c0_0 = arith.constant 0 : index
    %0 = vector.load %arg1[%c0, %c0_0] : memref<8x1600xbf16, #tpu.memory_space<vmem>>, vector<8x1600xbf16>
    %c0_1 = arith.constant 0 : index
    %c0_2 = arith.constant 0 : index
    %1 = vector.load %arg2[%c0_1, %c0_2] : memref<1600x32xbf16, #tpu.memory_space<vmem>>, vector<1600x32xbf16>
    %cst = arith.constant dense<0.000000e+00> : vector<8x32xf32>
    %2 = tpu.matmul %0, %1, %cst {dimension_numbers = #tpu.dot_dimension_numbers<[1], [0], [0], [1], [0, 0, 1, 1], [], []>} : vector<8x1600xbf16>, vector<1600x32xbf16>, vector<8x32xf32> -> vector<8x32xf32>
    %c0_3 = arith.constant 0 : index
    %c0_4 = arith.constant 0 : index
    %3 = vector.load %arg3[%c0_3, %c0_4] : memref<1x32xf32, #tpu.memory_space<vmem>>, vector<1x32xf32>
    %4 = vector.broadcast %3 : vector<1x32xf32> to vector<8x32xf32>
    %5 = arith.addf %2, %4 : vector<8x32xf32>
    %6 = arith.mulf %5, %5 : vector<8x32xf32>
    %c0_5 = arith.constant 0 : index
    %c0_6 = arith.constant 0 : index
    %7 = vector.load %arg4[%c0_5, %c0_6] : memref<32x32xf32, #tpu.memory_space<vmem>>, vector<32x32xf32>
    %cst_7 = arith.constant dense<0.000000e+00> : vector<8x32xf32>
    %8 = tpu.matmul %6, %7, %cst_7 {dimension_numbers = #tpu.dot_dimension_numbers<[1], [0], [0], [1], [0, 0, 1, 1], [], []>} : vector<8x32xf32>, vector<32x32xf32>, vector<8x32xf32> -> vector<8x32xf32>
    %c0_8 = arith.constant 0 : index
    %c0_9 = arith.constant 0 : index
    %9 = vector.load %arg5[%c0_8, %c0_9] : memref<1x32xf32, #tpu.memory_space<vmem>>, vector<1x32xf32>
    %10 = vector.broadcast %9 : vector<1x32xf32> to vector<8x32xf32>
    %11 = arith.addf %8, %10 : vector<8x32xf32>
    %cst_10 = arith.constant 9.99999996E-13 : f32
    %12 = vector.broadcast %cst_10 : f32 to vector<8x32xf32>
    %13 = arith.maximumf %11, %12 : vector<8x32xf32>
    %14 = math.sqrt %13 : vector<8x32xf32>
    %15 = arith.mulf %5, %14 : vector<8x32xf32>
    %16 = arith.truncf %15 : vector<8x32xf32> to vector<8x32xbf16>
    %c0_11 = arith.constant 0 : index
    %c0_12 = arith.constant 0 : index
    %17 = vector.load %arg6[%c0_11, %c0_12] : memref<8x32xbf16, #tpu.memory_space<vmem>>, vector<8x32xbf16>
    tpu.vector_store %arg6[%c0_11, %c0_12], %16 {strides = array<i32>} : memref<8x32xbf16, #tpu.memory_space<vmem>>, vector<8x32xbf16>,
    return
  }
  func.func @transform_0(%arg0: i32) -> (i32, i32) {
    %c0_i32 = arith.constant 0 : i32
    %c0_i32_0 = arith.constant 0 : i32
    return %arg0, %c0_i32 : i32, i32
  }
  func.func @transform_1(%arg0: i32) -> (i32, i32) {
    %c0_i32 = arith.constant 0 : i32
    %c0_i32_0 = arith.constant 0 : i32
    %c0_i32_1 = arith.constant 0 : i32
    return %c0_i32, %c0_i32_0 : i32, i32
  }
  func.func @transform_2(%arg0: i32) -> (i32, i32) {
    %c0_i32 = arith.constant 0 : i32
    %c0_i32_0 = arith.constant 0 : i32
    %c0_i32_1 = arith.constant 0 : i32
    return %c0_i32, %c0_i32_0 : i32, i32
  }
  func.func @transform_3(%arg0: i32) -> (i32, i32) {
    %c0_i32 = arith.constant 0 : i32
    %c0_i32_0 = arith.constant 0 : i32
    %c0_i32_1 = arith.constant 0 : i32
    return %c0_i32, %c0_i32_0 : i32, i32
  }
  func.func @transform_4(%arg0: i32) -> (i32, i32) {
    %c0_i32 = arith.constant 0 : i32
    %c0_i32_0 = arith.constant 0 : i32
    %c0_i32_1 = arith.constant 0 : i32
    return %c0_i32, %c0_i32_0 : i32, i32
  }
  func.func @transform_5(%arg0: i32) -> (i32, i32) {
    %c0_i32 = arith.constant 0 : i32
    %c0_i32_0 = arith.constant 0 : i32
    return %arg0, %c0_i32 : i32, i32
  }
}

module attributes {stable_mosaic.version = 11 : i64} {
  func.func @_conv_gdn_kernel(%arg0: i32, %arg1: memref<8x800xbf16, #tpu.memory_space<vmem>>, %arg2: memref<800x32xbf16, #tpu.memory_space<vmem>>, %arg3: memref<1x32xf32, #tpu.memory_space<vmem>>, %arg4: memref<32x32xf32, #tpu.memory_space<vmem>>, %arg5: memref<1x32xf32, #tpu.memory_space<vmem>>, %arg6: memref<8x32xbf16, #tpu.memory_space<vmem>>) attributes {dimension_semantics = [#tpu.dimension_semantics<parallel>], iteration_bounds = array<i64: 1>, scalar_prefetch = 0 : i64, scratch_operands = 0 : i64, tpu.core_type = #tpu.core_type<tc>, window_params = [{transform_indices = @transform_0, window_bounds = array<i64: 8, 800>}, {pipeline_mode = #tpu.pipeline_mode<synchronous>, transform_indices = @transform_1, window_bounds = array<i64: 800, 32>}, {pipeline_mode = #tpu.pipeline_mode<synchronous>, transform_indices = @transform_2, window_bounds = array<i64: 1, 32>}, {pipeline_mode = #tpu.pipeline_mode<synchronous>, transform_indices = @transform_3, window_bounds = array<i64: 32, 32>}, {pipeline_mode = #tpu.pipeline_mode<synchronous>, transform_indices = @transform_4, window_bounds = array<i64: 1, 32>}, {transform_indices = @transform_5, window_bounds = array<i64: 8, 32>}]} {
    %c0 = arith.constant 0 : index
    %c0_0 = arith.constant 0 : index
    %0 = vector.load %arg1[%c0, %c0_0] : memref<8x800xbf16, #tpu.memory_space<vmem>>, vector<8x800xbf16>
    %c0_1 = arith.constant 0 : index
    %c0_2 = arith.constant 0 : index
    %1 = vector.load %arg2[%c0_1, %c0_2] : memref<800x32xbf16, #tpu.memory_space<vmem>>, vector<800x32xbf16>
    %cst = arith.constant dense<0.000000e+00> : vector<8x32xf32>
    %2 = tpu.matmul %0, %1, %cst {dimension_numbers = #tpu.dot_dimension_numbers<[1], [0], [0], [1], [0, 0, 1, 1], [], []>} : vector<8x800xbf16>, vector<800x32xbf16>, vector<8x32xf32> -> vector<8x32xf32>
    %c0_3 = arith.constant 0 : index
    %c0_4 = arith.constant 0 : index
    %3 = vector.load %arg3[%c0_3, %c0_4] : memref<1x32xf32, #tpu.memory_space<vmem>>, vector<1x32xf32>
    %4 = vector.broadcast %3 : vector<1x32xf32> to vector<8x32xf32>
    %5 = arith.addf %2, %4 : vector<8x32xf32>
    %6 = arith.mulf %5, %5 : vector<8x32xf32>
    %c0_5 = arith.constant 0 : index
    %c0_6 = arith.constant 0 : index
    %7 = vector.load %arg4[%c0_5, %c0_6] : memref<32x32xf32, #tpu.memory_space<vmem>>, vector<32x32xf32>
    %cst_7 = arith.constant dense<0.000000e+00> : vector<8x32xf32>
    %8 = tpu.matmul %6, %7, %cst_7 {dimension_numbers = #tpu.dot_dimension_numbers<[1], [0], [0], [1], [0, 0, 1, 1], [], []>} : vector<8x32xf32>, vector<32x32xf32>, vector<8x32xf32> -> vector<8x32xf32>
    %c0_8 = arith.constant 0 : index
    %c0_9 = arith.constant 0 : index
    %9 = vector.load %arg5[%c0_8, %c0_9] : memref<1x32xf32, #tpu.memory_space<vmem>>, vector<1x32xf32>
    %10 = vector.broadcast %9 : vector<1x32xf32> to vector<8x32xf32>
    %11 = arith.addf %8, %10 : vector<8x32xf32>
    %cst_10 = arith.constant 9.99999996E-13 : f32
    %12 = vector.broadcast %cst_10 : f32 to vector<8x32xf32>
    %13 = arith.maximumf %11, %12 : vector<8x32xf32>
    %14 = math.sqrt %13 : vector<8x32xf32>
    %15 = arith.mulf %5, %14 : vector<8x32xf32>
    %16 = arith.truncf %15 : vector<8x32xf32> to vector<8x32xbf16>
    %c0_11 = arith.constant 0 : index
    %c0_12 = arith.constant 0 : index
    %17 = vector.load %arg6[%c0_11, %c0_12] : memref<8x32xbf16, #tpu.memory_space<vmem>>, vector<8x32xbf16>
    tpu.vector_store %arg6[%c0_11, %c0_12], %16 {strides = array<i32>} : memref<8x32xbf16, #tpu.memory_space<vmem>>, vector<8x32xbf16>,
    return
  }
  func.func @transform_0(%arg0: i32) -> (i32, i32) {
    %c0_i32 = arith.constant 0 : i32
    %c0_i32_0 = arith.constant 0 : i32
    return %arg0, %c0_i32 : i32, i32
  }
  func.func @transform_1(%arg0: i32) -> (i32, i32) {
    %c0_i32 = arith.constant 0 : i32
    %c0_i32_0 = arith.constant 0 : i32
    %c0_i32_1 = arith.constant 0 : i32
    return %c0_i32, %c0_i32_0 : i32, i32
  }
  func.func @transform_2(%arg0: i32) -> (i32, i32) {
    %c0_i32 = arith.constant 0 : i32
    %c0_i32_0 = arith.constant 0 : i32
    %c0_i32_1 = arith.constant 0 : i32
    return %c0_i32, %c0_i32_0 : i32, i32
  }
  func.func @transform_3(%arg0: i32) -> (i32, i32) {
    %c0_i32 = arith.constant 0 : i32
    %c0_i32_0 = arith.constant 0 : i32
    %c0_i32_1 = arith.constant 0 : i32
    return %c0_i32, %c0_i32_0 : i32, i32
  }
  func.func @transform_4(%arg0: i32) -> (i32, i32) {
    %c0_i32 = arith.constant 0 : i32
    %c0_i32_0 = arith.constant 0 : i32
    %c0_i32_1 = arith.constant 0 : i32
    return %c0_i32, %c0_i32_0 : i32, i32
  }
  func.func @transform_5(%arg0: i32) -> (i32, i32) {
    %c0_i32 = arith.constant 0 : i32
    %c0_i32_0 = arith.constant 0 : i32
    return %arg0, %c0_i32 : i32, i32
  }
}

module attributes {stable_mosaic.version = 11 : i64} {
  func.func @_conv_gdn_kernel(%arg0: i32, %arg1: memref<8x288xbf16, #tpu.memory_space<vmem>>, %arg2: memref<288x64xbf16, #tpu.memory_space<vmem>>, %arg3: memref<1x64xf32, #tpu.memory_space<vmem>>, %arg4: memref<64x64xf32, #tpu.memory_space<vmem>>, %arg5: memref<1x64xf32, #tpu.memory_space<vmem>>, %arg6: memref<8x64xbf16, #tpu.memory_space<vmem>>) attributes {dimension_semantics = [#tpu.dimension_semantics<parallel>], iteration_bounds = array<i64: 1>, scalar_prefetch = 0 : i64, scratch_operands = 0 : i64, tpu.core_type = #tpu.core_type<tc>, window_params = [{transform_indices = @transform_0, window_bounds = array<i64: 8, 288>}, {pipeline_mode = #tpu.pipeline_mode<synchronous>, transform_indices = @transform_1, window_bounds = array<i64: 288, 64>}, {pipeline_mode = #tpu.pipeline_mode<synchronous>, transform_indices = @transform_2, window_bounds = array<i64: 1, 64>}, {pipeline_mode = #tpu.pipeline_mode<synchronous>, transform_indices = @transform_3, window_bounds = array<i64: 64, 64>}, {pipeline_mode = #tpu.pipeline_mode<synchronous>, transform_indices = @transform_4, window_bounds = array<i64: 1, 64>}, {transform_indices = @transform_5, window_bounds = array<i64: 8, 64>}]} {
    %c0 = arith.constant 0 : index
    %c0_0 = arith.constant 0 : index
    %0 = vector.load %arg1[%c0, %c0_0] : memref<8x288xbf16, #tpu.memory_space<vmem>>, vector<8x288xbf16>
    %c0_1 = arith.constant 0 : index
    %c0_2 = arith.constant 0 : index
    %1 = vector.load %arg2[%c0_1, %c0_2] : memref<288x64xbf16, #tpu.memory_space<vmem>>, vector<288x64xbf16>
    %cst = arith.constant dense<0.000000e+00> : vector<8x64xf32>
    %2 = tpu.matmul %0, %1, %cst {dimension_numbers = #tpu.dot_dimension_numbers<[1], [0], [0], [1], [0, 0, 1, 1], [], []>} : vector<8x288xbf16>, vector<288x64xbf16>, vector<8x64xf32> -> vector<8x64xf32>
    %c0_3 = arith.constant 0 : index
    %c0_4 = arith.constant 0 : index
    %3 = vector.load %arg3[%c0_3, %c0_4] : memref<1x64xf32, #tpu.memory_space<vmem>>, vector<1x64xf32>
    %4 = vector.broadcast %3 : vector<1x64xf32> to vector<8x64xf32>
    %5 = arith.addf %2, %4 : vector<8x64xf32>
    %6 = arith.mulf %5, %5 : vector<8x64xf32>
    %c0_5 = arith.constant 0 : index
    %c0_6 = arith.constant 0 : index
    %7 = vector.load %arg4[%c0_5, %c0_6] : memref<64x64xf32, #tpu.memory_space<vmem>>, vector<64x64xf32>
    %cst_7 = arith.constant dense<0.000000e+00> : vector<8x64xf32>
    %8 = tpu.matmul %6, %7, %cst_7 {dimension_numbers = #tpu.dot_dimension_numbers<[1], [0], [0], [1], [0, 0, 1, 1], [], []>} : vector<8x64xf32>, vector<64x64xf32>, vector<8x64xf32> -> vector<8x64xf32>
    %c0_8 = arith.constant 0 : index
    %c0_9 = arith.constant 0 : index
    %9 = vector.load %arg5[%c0_8, %c0_9] : memref<1x64xf32, #tpu.memory_space<vmem>>, vector<1x64xf32>
    %10 = vector.broadcast %9 : vector<1x64xf32> to vector<8x64xf32>
    %11 = arith.addf %8, %10 : vector<8x64xf32>
    %cst_10 = arith.constant 9.99999996E-13 : f32
    %12 = vector.broadcast %cst_10 : f32 to vector<8x64xf32>
    %13 = arith.maximumf %11, %12 : vector<8x64xf32>
    %14 = math.sqrt %13 : vector<8x64xf32>
    %15 = arith.mulf %5, %14 : vector<8x64xf32>
    %16 = arith.truncf %15 : vector<8x64xf32> to vector<8x64xbf16>
    %c0_11 = arith.constant 0 : index
    %c0_12 = arith.constant 0 : index
    %17 = vector.load %arg6[%c0_11, %c0_12] : memref<8x64xbf16, #tpu.memory_space<vmem>>, vector<8x64xbf16>
    tpu.vector_store %arg6[%c0_11, %c0_12], %16 {strides = array<i32>} : memref<8x64xbf16, #tpu.memory_space<vmem>>, vector<8x64xbf16>,
    return
  }
  func.func @transform_0(%arg0: i32) -> (i32, i32) {
    %c0_i32 = arith.constant 0 : i32
    %c0_i32_0 = arith.constant 0 : i32
    return %arg0, %c0_i32 : i32, i32
  }
  func.func @transform_1(%arg0: i32) -> (i32, i32) {
    %c0_i32 = arith.constant 0 : i32
    %c0_i32_0 = arith.constant 0 : i32
    %c0_i32_1 = arith.constant 0 : i32
    return %c0_i32, %c0_i32_0 : i32, i32
  }
  func.func @transform_2(%arg0: i32) -> (i32, i32) {
    %c0_i32 = arith.constant 0 : i32
    %c0_i32_0 = arith.constant 0 : i32
    %c0_i32_1 = arith.constant 0 : i32
    return %c0_i32, %c0_i32_0 : i32, i32
  }
  func.func @transform_3(%arg0: i32) -> (i32, i32) {
    %c0_i32 = arith.constant 0 : i32
    %c0_i32_0 = arith.constant 0 : i32
    %c0_i32_1 = arith.constant 0 : i32
    return %c0_i32, %c0_i32_0 : i32, i32
  }
  func.func @transform_4(%arg0: i32) -> (i32, i32) {
    %c0_i32 = arith.constant 0 : i32
    %c0_i32_0 = arith.constant 0 : i32
    %c0_i32_1 = arith.constant 0 : i32
    return %c0_i32, %c0_i32_0 : i32, i32
  }
  func.func @transform_5(%arg0: i32) -> (i32, i32) {
    %c0_i32 = arith.constant 0 : i32
    %c0_i32_0 = arith.constant 0 : i32
    return %arg0, %c0_i32 : i32, i32
  }
}

module attributes {stable_mosaic.version = 11 : i64} {
  func.func @_conv_bias_kernel(%arg0: i32, %arg1: memref<16x144xbf16, #tpu.memory_space<vmem>>, %arg2: memref<144x32xbf16, #tpu.memory_space<vmem>>, %arg3: memref<1x32xf32, #tpu.memory_space<vmem>>, %arg4: memref<16x32xf32, #tpu.memory_space<vmem>>) attributes {dimension_semantics = [#tpu.dimension_semantics<parallel>], iteration_bounds = array<i64: 2>, scalar_prefetch = 0 : i64, scratch_operands = 0 : i64, tpu.core_type = #tpu.core_type<tc>, window_params = [{transform_indices = @transform_0, window_bounds = array<i64: 16, 144>}, {pipeline_mode = #tpu.pipeline_mode<synchronous>, transform_indices = @transform_1, window_bounds = array<i64: 144, 32>}, {pipeline_mode = #tpu.pipeline_mode<synchronous>, transform_indices = @transform_2, window_bounds = array<i64: 1, 32>}, {transform_indices = @transform_3, window_bounds = array<i64: 16, 32>}]} {
    %c0 = arith.constant 0 : index
    %c0_0 = arith.constant 0 : index
    %0 = vector.load %arg1[%c0, %c0_0] : memref<16x144xbf16, #tpu.memory_space<vmem>>, vector<16x144xbf16>
    %c0_1 = arith.constant 0 : index
    %c0_2 = arith.constant 0 : index
    %1 = vector.load %arg2[%c0_1, %c0_2] : memref<144x32xbf16, #tpu.memory_space<vmem>>, vector<144x32xbf16>
    %cst = arith.constant dense<0.000000e+00> : vector<16x32xf32>
    %2 = tpu.matmul %0, %1, %cst {dimension_numbers = #tpu.dot_dimension_numbers<[1], [0], [0], [1], [0, 0, 1, 1], [], []>} : vector<16x144xbf16>, vector<144x32xbf16>, vector<16x32xf32> -> vector<16x32xf32>
    %c0_3 = arith.constant 0 : index
    %c0_4 = arith.constant 0 : index
    %3 = vector.load %arg3[%c0_3, %c0_4] : memref<1x32xf32, #tpu.memory_space<vmem>>, vector<1x32xf32>
    %4 = vector.broadcast %3 : vector<1x32xf32> to vector<16x32xf32>
    %5 = arith.addf %2, %4 : vector<16x32xf32>
    %c0_5 = arith.constant 0 : index
    %c0_6 = arith.constant 0 : index
    %6 = vector.load %arg4[%c0_5, %c0_6] : memref<16x32xf32, #tpu.memory_space<vmem>>, vector<16x32xf32>
    tpu.vector_store %arg4[%c0_5, %c0_6], %5 {strides = array<i32>} : memref<16x32xf32, #tpu.memory_space<vmem>>, vector<16x32xf32>,
    return
  }
  func.func @transform_0(%arg0: i32) -> (i32, i32) {
    %c0_i32 = arith.constant 0 : i32
    %c0_i32_0 = arith.constant 0 : i32
    return %arg0, %c0_i32 : i32, i32
  }
  func.func @transform_1(%arg0: i32) -> (i32, i32) {
    %c0_i32 = arith.constant 0 : i32
    %c0_i32_0 = arith.constant 0 : i32
    %c0_i32_1 = arith.constant 0 : i32
    return %c0_i32, %c0_i32_0 : i32, i32
  }
  func.func @transform_2(%arg0: i32) -> (i32, i32) {
    %c0_i32 = arith.constant 0 : i32
    %c0_i32_0 = arith.constant 0 : i32
    %c0_i32_1 = arith.constant 0 : i32
    return %c0_i32, %c0_i32_0 : i32, i32
  }
  func.func @transform_3(%arg0: i32) -> (i32, i32) {
    %c0_i32 = arith.constant 0 : i32
    %c0_i32_0 = arith.constant 0 : i32
    return %arg0, %c0_i32 : i32, i32
  }
}

</mosaic_0001>

<bundles_post_ra>
// kernel: forward.8
= control target key start
LH: loop header
LB: loop body
LE: loop exit
PB: predicated region body
PF: predicated region fallthrough
CT: control target
= control target key end

     0   :  { %10 = vsyncpa [#allocation3], 0  ;;  %s1323_s0 = inlined_call_operand.vmem [shape: bf16[128,200], index: 0, kind: input, shape index: {}]   ;;  %s1324_s1 = inlined_call_operand.vmem [shape: bf16[200,16], index: 1, kind: input, shape index: {}]   ;;  %s1325_s2 = inlined_call_operand.hbm [shape: f32[1,16], index: 2, kind: input, shape index: {}]   ;;  %s1326_s3 = inlined_call_operand.hbm [shape: f32[16,16], index: 3, kind: input, shape index: {}]   ;;  %s1327_s4 = inlined_call_operand.hbm [shape: f32[1,16], index: 4, kind: input, shape index: {}]   ;;  %s1328_s5 = inlined_call_operand.vmem [shape: bf16[128,16], index: 5, kind: output, shape index: {}]  }
   0x1   :  { %11 = vsyncpa [#allocation5], 0  ;;  %s1120_s18 = smov 0  }
   0x2 LB: > { %s184_s21 = sshll.u32 %s1326_s3, 4  ;;  %s781_s22 = sadd.s32 4294967295, %s1083_s18   ;;  %s1083_s18 = sphi %s1120_s18, %s17_s18   ;;  %s185_s21 = int_to_ptr.hbm [resolvable:$true] %s184_s21 }
   0x3   : > { %p783_p0 = scmp.ge.s32.totalorder %s1083_s18, 1  ;;  %p158_p1 = scmp.lt.s32.totalorder %s1083_s18, 3 }
   0x4   : > { %p1133_p2 = scmp.eq.s32.totalorder %s781_s22, 0  ;;  %s1085_s25 = smov [#allocation4]  }
   0x5   : > { %p1137_p3 = pnand %p783_p0, %p158_p1  ;;  %s186_s26 = sshll.u32 %s1085_s25, 4  ;;  %s187_s26 = int_to_ptr.vmem [resolvable:$true] %s186_s26 }
   0x6   : > { %s173_s29 = sshll.u32 %s1325_s2, 4  ;;  %s1086_s6 = smov [#allocation2]   ;;  %s174_s29 = int_to_ptr.hbm [resolvable:$true] %s173_s29 }
   0x7   : > { %p932_p4 = pneg %p1137_p3  ;;  %s175_s7 = sshll.u32 %s1086_s6, 4  ;;  %s176_s7 = int_to_ptr.vmem [resolvable:$true] %s175_s7 }
   0x8   : > { %s199_s10 = sshll.u32 %s1327_s4, 4  ;;  %s1087_s11 = smov 128   ;;  %s200_s10 = int_to_ptr.hbm [resolvable:$true] %s199_s10 }
   0x9   : > { %p1148_p5 = pnand %p1133_p2, %p932_p4  ;;  %s1088_s12 = smov 8  }
   0xa   : > { %s1089_s13 = smov [#allocation6]   ;;  %224 = sbr.rel (%p1137_p3) target bundleno = 397 (0x18d), region = 40 }
   0xb   : > { %938 = dma.hbm_to_vmem [thread:$0]  (!%p1148_p5), %s185_s21, 256, %s187_s26, [#allocation5], %s1087_s11, %s1087_s11, %s1088_s12  }
   0xc   : > { %935 = dma.hbm_to_vmem [thread:$0]  (!%p1148_p5), %s174_s29, 16, %s176_s7, [#allocation3]  }
   0xd   : > { %s201_s14 = sshll.u32 %s1089_s13, 4  ;;  %s202_s14 = int_to_ptr.vmem [resolvable:$true] %s201_s14 }
   0xe   : > { %941 = dma.hbm_to_vmem [thread:$0]  (!%p1148_p5), %s200_s10, 16, %s202_s14, [#allocation5]  }
   0xf   : > { %1074 = dma.done.wait (%p1133_p2), [#allocation3], 16  }
  0x10   : > { %1076 = vsyncadd (%p1133_p2), [#allocation3], 4294967280 }
  0x11   : > { %1078 = dma.done.wait (%p1133_p2), [#allocation5], 272  }
  0x12   : > { %1080 = vsyncadd (%p1133_p2), [#allocation5], 4294967024  ;;  %v907_v0 = vld [vmem:[%s1324_s1 + $0x38] sm:$0xff]  ;;  %v310_v1 = vld [vmem:[%s1324_s1 + $0x60] sm:$0xf]  ;;  %vm439_vm0 = vcmask 1043456  }
  0x13   : > { %v400_v2 = vunpack.c.l.b16 %v310_v1  ;;  %443 = vmatpush.bf16.msra.mxu0 %v907_v0  ;;  %912 = vmatpush.bf16.msra.mxu3 %v907_v0  ;;  %v906_v3 = vld [vmem:[%s1324_s1 + $0x30] sm:$0xff]  ;;  %s792_s23 = sshll.u32 %s781_s22, 3  ;;  %v905_v6 = vld [vmem:[%s1324_s1 + $0x28] sm:$0xff]  ;;  %v911_v7 = vld [vmem:[%s1324_s1 + $0x58] sm:$0xff]  ;;  %vm426_vm1 = vcmask 588800   ;;  %vm515_vm2 = vcmask 130048  }
  0x14   : > { %p265_p6 = scmp.lt.s32.totalorder %s792_s23, 15  ;;  %v904_v8 = vld [vmem:[%s1324_s1 + $0x20] sm:$0xff]  ;;  %v910_v9 = vld [vmem:[%s1324_s1 + $0x50] sm:$0xff]  ;;  %v903_v10 = vld [vmem:[%s1324_s1 + $0x18] sm:$0xff]  ;;  %vm685_vm6 = vcmask 125952  }
  0x15   : > { %v413_v4 = vpack.c.b16 %v400_v2, %v400_v2  ;;  %v909_v11 = vld [vmem:[%s1324_s1 + $0x48] sm:$0xff]  ;;  %v902_v12 = vld [vmem:[%s1324_s1 + $0x10] sm:$0xff]  ;;  %v908_v13 = vld [vmem:[%s1324_s1 + $0x40] sm:$0xff] }
  0x16   : > { %s1333_s23 = smov (!%p265_p6, %s792_s23), 15  ;;  %v901_v16 = vld [vmem:[%s1324_s1 + $0x8] sm:$0xff]  ;;  %v900_v18 = vld [vmem:[%s1324_s1] sm:$0xff] }
  0x17   : > { %v441_v5 = vsel %vm439_vm0, %v413_v4, 0  ;;  %444 = vmatpush.bf16.msra.mxu0 %v906_v3  ;;  %913 = vmatpush.bf16.msra.mxu3 %v906_v3  ;;  %s891_s6 = sshll.u32 %s1333_s23, 3  ;;  %v510_v40 = vld [vmem:[#allocation4 + $0x8] sm:$0xff]  ;;  %v509_v41 = vld [vmem:[#allocation4] sm:$0xff]  ;;  %v961_v43 = vld [vmem:[#allocation2] ss:$0 sm:$0xff] }
  0x18   : > { %475 = vmatpush.bf16.msra.mxu1 %v441_v5  ;;  %s1206_s13 = scalar_lea.vmem %s1323_s0, %s891_s6  ;;  %554 = vmatpush.msra.mxu2 %v510_v40  ;;  %s796_s25 = sshll.u32 %s1333_s23, 2 }
  0x19   : > { %v892_v14 = vld [vmem:[%s1206_s13 + $0x4] sm:$0xf]  ;;  %v801_v15 = vld [vmem:[%s1206_s13 + $0x8] sm:$0xf0]  ;;  %v799_v19 = vld [vmem:[%s1206_s13] sm:$0xf]  ;;  %s1290_s22 = scalar_lea.vmem %s1328_s5, %s796_s25 }
  0x1a   : > { %v804_v17 = vor.u32 %v892_v14, %v801_v15  ;;  %v893_v20 = vld [vmem:[%s1206_s13 + $0x4] sm:$0xf0]  ;;  %v807_v21 = vld [vmem:[%s1206_s13 + $0x10] sm:$0xf]  ;;  %v895_v22 = vld [vmem:[%s1206_s13 + $0x14] sm:$0xf0]  ;;  %555 = vmatpush.msra.mxu2 %v509_v41 }
  0x1b   : > { %445 = vmatpush.bf16.msra.mxu0 %v905_v6  ;;  %914 = vmatpush.bf16.msra.mxu3 %v905_v6  ;;  %v800_v23 = vor.u32 %v893_v20, %v799_v19  ;;  %v808_v24 = vor.u32 %v895_v22, %v807_v21  ;;  %v894_v25 = vld [vmem:[%s1206_s13 + $0x14] sm:$0xf]  ;;  %v809_v26 = vld [vmem:[%s1206_s13 + $0x18] sm:$0xf0]  ;;  %v815_v28 = vld [vmem:[%s1206_s13 + $0x20] sm:$0xf] }
  0x1c   : > { %476 = vmatpush.bf16.msra.mxu1 %v911_v7  ;;  %v812_v27 = vor.u32 %v894_v25, %v809_v26  ;;  %v897_v29 = vld [vmem:[%s1206_s13 + $0x24] sm:$0xf0]  ;;  %v896_v31 = vld [vmem:[%s1206_s13 + $0x24] sm:$0xf]  ;;  %v817_v32 = vld [vmem:[%s1206_s13 + $0x28] sm:$0xf0] }
  0x1d   : > { %v816_v30 = vor.u32 %v897_v29, %v815_v28  ;;  %v820_v33 = vor.u32 %v896_v31, %v817_v32  ;;  %v823_v34 = vld [vmem:[%s1206_s13 + $0x30] sm:$0xf]  ;;  %v899_v35 = vld [vmem:[%s1206_s13 + $0x34] sm:$0xf0]  ;;  %v898_v37 = vld [vmem:[%s1206_s13 + $0x34] sm:$0xf] }
  0x1e   : > { %v824_v36 = vor.u32 %v899_v35, %v823_v34  ;;  %v825_v38 = vld [vmem:[%s1206_s13 + $0x38] sm:$0xf0]  ;;  %v1280_v19 = vld [vmem:[#allocation6] ss:$0 sm:$0xff] }
  0x1f   : > { %446 = vmatpush.bf16.msra.mxu0 %v904_v8  ;;  %915 = vmatpush.bf16.msra.mxu3 %v904_v8  ;;  %v828_v39 = vor.u32 %v898_v37, %v825_v38 }
  0x20   : > { %477 = vmatpush.bf16.msra.mxu1 %v910_v9 }
  0x23   : > { %447 = vmatpush.bf16.msra.mxu0 %v903_v10  ;;  %916 = vmatpush.bf16.msra.mxu3 %v903_v10 }
  0x24   : > { %478 = vmatpush.bf16.msra.mxu1 %v909_v11 }
  0x27   : > { %448 = vmatpush.bf16.msra.mxu0 %v902_v12  ;;  %917 = vmatpush.bf16.msra.mxu3 %v902_v12 }
  0x28   : > { %479 = vmatpush.bf16.msra.mxu1 %v908_v13 }
  0x2b   : > { %449 = vmatpush.bf16.msra.mxu0 %v901_v16  ;;  %877 = vmatmul.msk.bf16.vlgmr.msra.gmra.mxu1 %vm426_vm1, %v804_v17 }
  0x2c   : > { %918 = vmatpush.bf16.msra.mxu3 %v901_v16 }
  0x2f   : > { %450 = vmatpush.bf16.msra.mxu0 %v900_v18 }
  0x30   : > { %919 = vmatpush.bf16.msra.mxu3 %v900_v18 }
  0x32   : > { %451 = vmatmul.bf16.vlgmr.msra.gmra.mxu0 %v800_v23 }
  0x33   : > { %456 = vmatmul.bf16.vlgmr.msra.gmra.mxu3 %v808_v24 }
  0x3b   : > { %878 = vmatmul.msk.bf16.gmra.mxu1 %vm426_vm1, %v812_v27 }
  0x43   : > { %461 = vmatmul.bf16.gmra.mxu3 %v816_v30 }
  0x4b   : > { %879 = vmatmul.msk.bf16.gmra.mxu1 %vm426_vm1, %v820_v33 }
  0x53   : > { %466 = vmatmul.bf16.gmra.mxu3 %v824_v36 }
  0x5b   : > { %880 = vmatmul.msk.bf16.gmra.mxu1 %vm426_vm1, %v828_v39 }
  0xa8   : > { %v481_v42 = vpop.f32.mrf.mxu1 }
  0xaf   : > { %v452_v44 = vpop.f32.mrf.mxu0 }
  0xb0   : > { %v453_v45 = vadd.f32 %v961_v43, %v452_v44  ;;  %v483_v46 = vpop.f32.mrf.mxu1 }
  0xb2   : > { %v1240_v47 = vadd.f32 %v481_v42, %v453_v45 }
  0xb4   : > { %v501_v48 = vmul.f32 %v1240_v47, %v1240_v47 }
  0xb6   : > { %881 = vmatmul.msk.f32.vlgmr.msra.gmra.mxu2 %vm515_vm2, %v501_v48  ;;  %v457_v49 = vpop.f32.mrf.mxu3 }
  0xb7   : > { %v454_v50 = vpop.f32.mrf.mxu0  ;;  %v458_v54 = vadd.f32 %v961_v43, %v457_v49 }
  0xb8   : > { %v455_v51 = vadd.f32 %v961_v43, %v454_v50  ;;  %v486_v52 = vpop.f32.mrf.mxu1 }
  0xb9   : > { %v1249_v56 = vadd.f32 %v486_v52, %v458_v54 }
  0xba   : > { %v1245_v53 = vadd.f32 %v483_v46, %v455_v51 }
  0xbb   : > { %v503_v59 = vmul.f32 %v1249_v56, %v1249_v56 }
  0xbc   : > { %v502_v55 = vmul.f32 %v1245_v53, %v1245_v53 }
  0xbe   : > { %882 = vmatmul.msk.f32.gmra.mxu2 %vm515_vm2, %v502_v55  ;;  %v459_v57 = vpop.f32.mrf.mxu3 }
  0xbf   : > { %v460_v60 = vadd.f32 %v961_v43, %v459_v57 }
  0xc0   : > { %v488_v58 = vpop.f32.mrf.mxu1 }
  0xc1   : > { %v1255_v62 = vadd.f32 %v488_v58, %v460_v60 }
  0xc3   : > { %v504_v1 = vmul.f32 %v1255_v62, %v1255_v62 }
  0xc6   : > { %883 = vmatmul.msk.f32.gmra.mxu2 %vm515_vm2, %v503_v59  ;;  %v462_v61 = vpop.f32.mrf.mxu3 }
  0xc7   : > { %v463_v0 = vadd.f32 %v961_v43, %v462_v61 }
  0xc8   : > { %v491_v63 = vpop.f32.mrf.mxu1 }
  0xc9   : > { %v1259_v2 = vadd.f32 %v491_v63, %v463_v0 }
  0xcb   : > { %v505_v5 = vmul.f32 %v1259_v2, %v1259_v2 }
  0xce   : > { %884 = vmatmul.msk.f32.gmra.mxu2 %vm515_vm2, %v504_v1  ;;  %v464_v3 = vpop.f32.mrf.mxu3 }
  0xcf   : > { %v465_v6 = vadd.f32 %v961_v43, %v464_v3 }
  0xd0   : > { %v493_v4 = vpop.f32.mrf.mxu1 }
  0xd1   : > { %v1265_v8 = vadd.f32 %v493_v4, %v465_v6 }
  0xd3   : > { %v506_v11 = vmul.f32 %v1265_v8, %v1265_v8 }
  0xd6   : > { %885 = vmatmul.msk.f32.gmra.mxu2 %vm515_vm2, %v505_v5  ;;  %v467_v7 = vpop.f32.mrf.mxu3 }
  0xd7   : > { %v468_v9 = vadd.f32 %v961_v43, %v467_v7 }
  0xd8   : > { %v496_v10 = vpop.f32.mrf.mxu1 }
  0xd9   : > { %v1269_v12 = vadd.f32 %v496_v10, %v468_v9 }
  0xdb   : > { %v507_v14 = vmul.f32 %v1269_v12, %v1269_v12 }
  0xde   : > { %886 = vmatmul.msk.f32.gmra.mxu2 %vm515_vm2, %v506_v11  ;;  %v469_v13 = vpop.f32.mrf.mxu3 }
  0xdf   : > { %v470_v15 = vadd.f32 %v961_v43, %v469_v13 }
  0xe0   : > { %v498_v16 = vpop.f32.mrf.mxu1 }
  0xe1   : > { %v1275_v17 = vadd.f32 %v498_v16, %v470_v15 }
  0xe3   : > { %v508_v18 = vmul.f32 %v1275_v17, %v1275_v17 }
  0xe6   : > { %887 = vmatmul.msk.f32.gmra.mxu2 %vm515_vm2, %v507_v14 }
  0xee   : > { %888 = vmatmul.msk.f32.gmra.mxu2 %vm515_vm2, %v508_v18 }
 0x139   : > { %v557_v20 = vpop.f32.mrf.mxu2 }
 0x13a   : > { %v558_v21 = vadd.f32 %v1280_v19, %v557_v20 }
 0x13c   : > { %v581_v22 = vmax.f32 %v558_v21, 1e-12 }
 0x13e   : > { %963 = vrsqrt.f32 %v581_v22  ;;  %vm595_vm4 = vweird.f32 %v581_v22 }
 0x141   : > { %v560_v23 = vpop.f32.mrf.mxu2 }
 0x142   : > { %v561_v24 = vadd.f32 %v1280_v19, %v560_v23 }
 0x144   : > { %v964_v25 = vpop.eup %963  ;;  %v582_v26 = vmax.f32 %v561_v24, 1e-12 }
 0x145   : > { %v590_v27 = vmul.f32 %v964_v25, %v581_v22  ;;  %vm596_vm3 = vweird.f32 %v964_v25 }
 0x146   : > { %965 = vrsqrt.f32 %v582_v26  ;;  %vm597_vm5 = vmor %vm595_vm4, %vm596_vm3  ;;  %vm605_vm8 = vweird.f32 %v582_v26 }
 0x147   : > { %v591_v28 = vmul.f32 %v964_v25, %v590_v27 }
 0x149   : > { %v592_v29 = vmul.f32 0.5, %v591_v28  ;;  %v563_v30 = vpop.f32.mrf.mxu2 }
 0x14a   : > { %v564_v31 = vadd.f32 %v1280_v19, %v563_v30 }
 0x14b   : > { %v593_v32 = vsub.f32 1.5, %v592_v29 }
 0x14c   : > { %v966_v33 = vpop.eup %965  ;;  %v583_v34 = vmax.f32 %v564_v31, 1e-12 }
 0x14d   : > { %v594_v35 = vmul.f32 %v964_v25, %v593_v32  ;;  %v600_v36 = vmul.f32 %v966_v33, %v582_v26  ;;  %vm606_vm7 = vweird.f32 %v966_v33 }
 0x14e   : > { %967 = vrsqrt.f32 %v583_v34  ;;  %vm607_vm9 = vmor %vm605_vm8, %vm606_vm7  ;;  %vm615_vm11 = vweird.f32 %v583_v34 }
 0x14f   : > { %v598_v37 = vsel %vm597_vm5, %v964_v25, %v594_v35  ;;  %v601_v38 = vmul.f32 %v966_v33, %v600_v36 }
 0x150   : > { %v669_v39 = vmul.f32 %v598_v37, %v1240_v47 }
 0x151   : > { %v602_v40 = vmul.f32 0.5, %v601_v38  ;;  %v566_v41 = vpop.f32.mrf.mxu2 }
 0x152   : > { %v677_v42 = vpack.c.bf16 %v669_v39, %v669_v39  ;;  %v567_v43 = vadd.f32 %v1280_v19, %v566_v41 }
 0x153   : > { %v603_v44 = vsub.f32 1.5, %v602_v40 }
 0x154   : > { %v968_v45 = vpop.eup %967  ;;  %686 = vst.msk [vmem:[%s1290_s22] sm:$0xf] %vm685_vm6, %v677_v42  ;;  %v584_v46 = vmax.f32 %v567_v43, 1e-12 }
 0x155   : > { %v604_v47 = vmul.f32 %v966_v33, %v603_v44  ;;  %v610_v48 = vmul.f32 %v968_v45, %v583_v34  ;;  %vm616_vm10 = vweird.f32 %v968_v45 }
 0x156   : > { %969 = vrsqrt.f32 %v584_v46  ;;  %vm617_vm12 = vmor %vm615_vm11, %vm616_vm10  ;;  %vm625_vm14 = vweird.f32 %v584_v46 }
 0x157   : > { %v608_v49 = vsel %vm607_vm9, %v966_v33, %v604_v47  ;;  %v611_v50 = vmul.f32 %v968_v45, %v610_v48 }
 0x158   : > { %v670_v51 = vmul.f32 %v608_v49, %v1245_v53 }
 0x159   : > { %v612_v52 = vmul.f32 0.5, %v611_v50  ;;  %v569_v54 = vpop.f32.mrf.mxu2 }
 0x15a   : > { %v678_v55 = vpack.c.bf16 %v670_v51, %v670_v51  ;;  %v570_v57 = vadd.f32 %v1280_v19, %v569_v54 }
 0x15b   : > { %v613_v58 = vsub.f32 1.5, %v612_v52 }
 0x15c   : > { %v970_v59 = vpop.eup %969  ;;  %687 = vst.msk [vmem:[%s1290_s22 + $0x4] sm:$0xf] %vm685_vm6, %v678_v55  ;;  %v585_v60 = vmax.f32 %v570_v57, 1e-12 }
 0x15d   : > { %v614_v61 = vmul.f32 %v968_v45, %v613_v58  ;;  %v620_v63 = vmul.f32 %v970_v59, %v584_v46  ;;  %vm626_vm13 = vweird.f32 %v970_v59 }
 0x15e   : > { %971 = vrsqrt.f32 %v585_v60  ;;  %vm627_vm15 = vmor %vm625_vm14, %vm626_vm13  ;;  %vm635_vm1 = vweird.f32 %v585_v60 }
 0x15f   : > { %v618_v0 = vsel %vm617_vm12, %v968_v45, %v614_v61  ;;  %v621_v1 = vmul.f32 %v970_v59, %v620_v63 }
 0x160   : > { %v671_v53 = vmul.f32 %v618_v0, %v1249_v56 }
 0x161   : > { %v622_v3 = vmul.f32 0.5, %v621_v1  ;;  %v572_v4 = vpop.f32.mrf.mxu2 }
 0x162   : > { %v679_v5 = vpack.c.bf16 %v671_v53, %v671_v53  ;;  %v573_v6 = vadd.f32 %v1280_v19, %v572_v4 }
 0x163   : > { %v623_v7 = vsub.f32 1.5, %v622_v3 }
 0x164   : > { %v972_v9 = vpop.eup %971  ;;  %688 = vst.msk [vmem:[%s1290_s22 + $0x8] sm:$0xf] %vm685_vm6, %v679_v5  ;;  %v586_v10 = vmax.f32 %v573_v6, 1e-12 }
 0x165   : > { %v624_v11 = vmul.f32 %v970_v59, %v623_v7  ;;  %v630_v13 = vmul.f32 %v972_v9, %v585_v60  ;;  %vm636_vm0 = vweird.f32 %v972_v9 }
 0x166   : > { %973 = vrsqrt.f32 %v586_v10  ;;  %vm637_vm2 = vmor %vm635_vm1, %vm636_vm0  ;;  %vm645_vm4 = vweird.f32 %v586_v10 }
 0x167   : > { %v628_v14 = vsel %vm627_vm15, %v970_v59, %v624_v11  ;;  %v631_v15 = vmul.f32 %v972_v9, %v630_v13 }
 0x168   : > { %v672_v56 = vmul.f32 %v628_v14, %v1255_v62 }
 0x169   : > { %v632_v16 = vmul.f32 0.5, %v631_v15  ;;  %v575_v18 = vpop.f32.mrf.mxu2 }
 0x16a   : > { %v680_v20 = vpack.c.bf16 %v672_v56, %v672_v56  ;;  %v576_v21 = vadd.f32 %v1280_v19, %v575_v18 }
 0x16b   : > { %v633_v22 = vsub.f32 1.5, %v632_v16 }
 0x16c   : > { %v974_v23 = vpop.eup %973  ;;  %689 = vst.msk [vmem:[%s1290_s22 + $0xc] sm:$0xf] %vm685_vm6, %v680_v20  ;;  %v587_v24 = vmax.f32 %v576_v21, 1e-12 }
 0x16d   : > { %v634_v25 = vmul.f32 %v972_v9, %v633_v22  ;;  %v640_v26 = vmul.f32 %v974_v23, %v586_v10  ;;  %vm646_vm3 = vweird.f32 %v974_v23 }
 0x16e   : > { %975 = vrsqrt.f32 %v587_v24  ;;  %vm647_vm5 = vmor %vm645_vm4, %vm646_vm3  ;;  %vm655_vm8 = vweird.f32 %v587_v24 }
 0x16f   : > { %v638_v27 = vsel %vm637_vm2, %v972_v9, %v634_v25  ;;  %v641_v28 = vmul.f32 %v974_v23, %v640_v26 }
 0x170   : > { %v673_v62 = vmul.f32 %v638_v27, %v1259_v2 }
 0x171   : > { %v642_v29 = vmul.f32 0.5, %v641_v28  ;;  %v578_v30 = vpop.f32.mrf.mxu2 }
 0x172   : > { %v681_v31 = vpack.c.bf16 %v673_v62, %v673_v62  ;;  %v579_v32 = vadd.f32 %v1280_v19, %v578_v30 }
 0x173   : > { %v643_v33 = vsub.f32 1.5, %v642_v29 }
 0x174   : > { %v976_v34 = vpop.eup %975  ;;  %690 = vst.msk [vmem:[%s1290_s22 + $0x10] sm:$0xf] %vm685_vm6, %v681_v31  ;;  %v588_v35 = vmax.f32 %v579_v32, 1e-12 }
 0x175   : > { %v644_v36 = vmul.f32 %v974_v23, %v643_v33  ;;  %v650_v37 = vmul.f32 %v976_v34, %v587_v24  ;;  %vm656_vm7 = vweird.f32 %v976_v34 }
 0x176   : > { %977 = vrsqrt.f32 %v588_v35  ;;  %vm657_vm9 = vmor %vm655_vm8, %vm656_vm7  ;;  %vm665_vm11 = vweird.f32 %v588_v35 }
 0x177   : > { %v648_v38 = vsel %vm647_vm5, %v974_v23, %v644_v36  ;;  %v651_v39 = vmul.f32 %v976_v34, %v650_v37 }
 0x178   : > { %v674_v2 = vmul.f32 %v648_v38, %v1265_v8 }
 0x179   : > { %v652_v40 = vmul.f32 0.5, %v651_v39 }
 0x17a   : > { %v682_v41 = vpack.c.bf16 %v674_v2, %v674_v2 }
 0x17b   : > { %v653_v19 = vsub.f32 1.5, %v652_v40 }
 0x17c   : > { %v978_v42 = vpop.eup %977  ;;  %691 = vst.msk [vmem:[%s1290_s22 + $0x14] sm:$0xf] %vm685_vm6, %v682_v41 }
 0x17d   : > { %v654_v43 = vmul.f32 %v976_v34, %v653_v19  ;;  %v660_v44 = vmul.f32 %v978_v42, %v588_v35  ;;  %vm666_vm10 = vweird.f32 %v978_v42 }
 0x17e   : > { %vm667_vm12 = vmor %vm665_vm11, %vm666_vm10 }
 0x17f   : > { %v658_v45 = vsel %vm657_vm9, %v976_v34, %v654_v43  ;;  %v661_v46 = vmul.f32 %v978_v42, %v660_v44 }
 0x180   : > { %v675_v47 = vmul.f32 %v658_v45, %v1269_v12 }
 0x181   : > { %v662_v48 = vmul.f32 0.5, %v661_v46 }
 0x182   : > { %v683_v49 = vpack.c.bf16 %v675_v47, %v675_v47 }
 0x183   : > { %v663_v8 = vsub.f32 1.5, %v662_v48 }
 0x184   : > { %692 = vst.msk [vmem:[%s1290_s22 + $0x18] sm:$0xf] %vm685_vm6, %v683_v49 }
 0x185   : > { %v664_v50 = vmul.f32 %v978_v42, %v663_v8 }
 0x187   : > { %v668_v51 = vsel %vm667_vm12, %v978_v42, %v664_v50 }
 0x188   : > { %v676_v52 = vmul.f32 %v668_v51, %v1275_v17 }
 0x18a   : > { %v684_v54 = vpack.c.bf16 %v676_v52, %v676_v52 }
 0x18c   : > { %693 = vst.msk [vmem:[%s1290_s22 + $0x1c] sm:$0xf] %vm685_vm6, %v684_v54 }
 0x18d PF: > { %s17_s18 = sadd.s32 1, %s1083_s18  }
 0x18e   : > { %p14_p7 = scmp.ge.s32.totalorder %s17_s18, 4  }
 0x190   :  { %16 = sbr.rel (!%p14_p7) target bundleno = 2 (0x2), region = 83 }
 0x195   :  { %716 = vsyncpa [#allocation3], 1 }
 0x196   :  { %718 = vsyncpa [#allocation3 + $0x1], 1 }
 0x197   :  { %719 = vsyncpa [#allocation5], 1 }

// kernel: forward.9
= control target key start
LH: loop header
LB: loop body
LE: loop exit
PB: predicated region body
PF: predicated region fallthrough
CT: control target
= control target key end

     0   :  { %10 = vsyncpa [#allocation3], 0  ;;  %s1681_s0 = inlined_call_operand.vmem [shape: bf16[128,400], index: 0, kind: input, shape index: {}]   ;;  %s1682_s1 = inlined_call_operand.vmem [shape: bf16[400,32], index: 1, kind: input, shape index: {}]   ;;  %s1683_s2 = inlined_call_operand.hbm [shape: f32[1,32], index: 2, kind: input, shape index: {}]   ;;  %s1684_s3 = inlined_call_operand.hbm [shape: f32[32,32], index: 3, kind: input, shape index: {}]   ;;  %s1685_s4 = inlined_call_operand.hbm [shape: f32[1,32], index: 4, kind: input, shape index: {}]   ;;  %s1686_s5 = inlined_call_operand.vmem [shape: bf16[128,32], index: 5, kind: output, shape index: {}]  }
   0x1   :  { %11 = vsyncpa [#allocation5], 0  ;;  %s1426_s18 = smov 0  }
   0x2 LB: > { %s184_s21 = sshll.u32 %s1684_s3, 4  ;;  %s985_s22 = sadd.s32 4294967295, %s1389_s18   ;;  %s1389_s18 = sphi %s1426_s18, %s17_s18   ;;  %s185_s21 = int_to_ptr.hbm [resolvable:$true] %s184_s21 }
   0x3   : > { %p987_p0 = scmp.ge.s32.totalorder %s1389_s18, 1  ;;  %p158_p1 = scmp.lt.s32.totalorder %s1389_s18, 3 }
   0x4   : > { %p1439_p2 = scmp.eq.s32.totalorder %s985_s22, 0  ;;  %s1391_s25 = smov [#allocation4]  }
   0x5   : > { %p1443_p3 = pnand %p987_p0, %p158_p1  ;;  %s186_s26 = sshll.u32 %s1391_s25, 4  ;;  %s187_s26 = int_to_ptr.vmem [resolvable:$true] %s186_s26 }
   0x6   : > { %s173_s29 = sshll.u32 %s1683_s2, 4  ;;  %s1392_s6 = smov [#allocation2]   ;;  %s174_s29 = int_to_ptr.hbm [resolvable:$true] %s173_s29 }
   0x7   : > { %p1238_p4 = pneg %p1443_p3  ;;  %s175_s7 = sshll.u32 %s1392_s6, 4  ;;  %s176_s7 = int_to_ptr.vmem [resolvable:$true] %s175_s7 }
   0x8   : > { %s199_s10 = sshll.u32 %s1685_s4, 4  ;;  %s1393_s11 = smov 128   ;;  %s200_s10 = int_to_ptr.hbm [resolvable:$true] %s199_s10 }
   0x9   : > { %p1454_p5 = pnand %p1439_p2, %p1238_p4  ;;  %s1394_s12 = smov 8  }
   0xa   : > { %s1395_s13 = smov [#allocation6]   ;;  %224 = sbr.rel (%p1443_p3) target bundleno = 459 (0x1cb), region = 40 }
   0xb   : > { %1244 = dma.hbm_to_vmem [thread:$0]  (!%p1454_p5), %s185_s21, 512, %s187_s26, [#allocation5], %s1393_s11, %s1393_s11, %s1394_s12  }
   0xc   : > { %1241 = dma.hbm_to_vmem [thread:$0]  (!%p1454_p5), %s174_s29, 16, %s176_s7, [#allocation3]  }
   0xd   : > { %s201_s14 = sshll.u32 %s1395_s13, 4  ;;  %s202_s14 = int_to_ptr.vmem [resolvable:$true] %s201_s14 }
   0xe   : > { %1247 = dma.hbm_to_vmem [thread:$0]  (!%p1454_p5), %s200_s10, 16, %s202_s14, [#allocation5]  }
   0xf   : > { %1380 = dma.done.wait (%p1439_p2), [#allocation3], 16  }
  0x10   : > { %1382 = vsyncadd (%p1439_p2), [#allocation3], 4294967280 }
  0x11   : > { %1384 = dma.done.wait (%p1439_p2), [#allocation5], 528  }
  0x12   : > { %1386 = vsyncadd (%p1439_p2), [#allocation5], 4294966768  ;;  %v1203_v0 = vld [vmem:[%s1682_s1 + $0x38] sm:$0xff]  ;;  %s996_s24 = sshll.u32 %s985_s22, 3  ;;  %v1202_v3 = vld [vmem:[%s1682_s1 + $0x30] sm:$0xff]  ;;  %vm574_vm0 = vcmask 130048  }
  0x13   : > { %v1219_v1 = vld [vmem:[%s1682_s1 + $0xb8] sm:$0xff]  ;;  %587 = vmatpush.bf16.msra.mxu0 %v1203_v0  ;;  %v1218_v4 = vld [vmem:[%s1682_s1 + $0xb0] sm:$0xff]  ;;  %p265_p6 = scmp.lt.s32.totalorder %s996_s24, 15  ;;  %v1201_v6 = vld [vmem:[%s1682_s1 + $0x28] sm:$0xff]  ;;  %vm719_vm1 = vcmask 261120   ;;  %vm889_vm5 = vcmask 257024  }
  0x14   : > { %v1211_v2 = vld [vmem:[%s1682_s1 + $0x78] sm:$0xff]  ;;  %645 = vmatpush.bf16.msra.mxu2 %v1219_v1  ;;  %v1210_v5 = vld [vmem:[%s1682_s1 + $0x70] sm:$0xff]  ;;  %v1217_v7 = vld [vmem:[%s1682_s1 + $0xa8] sm:$0xff] }
  0x15   : > { %616 = vmatpush.bf16.msra.mxu1 %v1211_v2  ;;  %v1209_v8 = vld [vmem:[%s1682_s1 + $0x68] sm:$0xff]  ;;  %s1691_s24 = smov (!%p265_p6, %s996_s24), 15  ;;  %v1220_v9 = vld [vmem:[%s1682_s1 + $0xc0] sm:$0xff]  ;;  %v1199_v13 = vld [vmem:[%s1682_s1 + $0x18] sm:$0xff] }
  0x16   : > { %v1200_v10 = vld [vmem:[%s1682_s1 + $0x20] sm:$0xff]  ;;  %1221 = vmatpush.bf16.msra.mxu3 %v1220_v9  ;;  %s1179_s19 = sshll.u32 %s1691_s24, 4  ;;  %v1215_v14 = vld [vmem:[%s1682_s1 + $0x98] sm:$0xff]  ;;  %v1198_v18 = vld [vmem:[%s1682_s1 + $0x10] sm:$0xff]  ;;  %s1000_s26 = sshll.u32 %s1691_s24, 2 }
  0x17   : > { %588 = vmatpush.bf16.msra.mxu0 %v1202_v3  ;;  %v1216_v11 = vld [vmem:[%s1682_s1 + $0xa0] sm:$0xff]  ;;  %v1207_v15 = vld [vmem:[%s1682_s1 + $0x58] sm:$0xff]  ;;  %s1533_s30 = scalar_lea.vmem %s1681_s0, %s1179_s19  ;;  %v1214_v19 = vld [vmem:[%s1682_s1 + $0x90] sm:$0xff]  ;;  %s1648_s29 = scalar_lea.vmem %s1686_s5, %s1000_s26 }
  0x18   : > { %646 = vmatpush.bf16.msra.mxu2 %v1218_v4  ;;  %v1208_v12 = vld [vmem:[%s1682_s1 + $0x60] sm:$0xff]  ;;  %v1185_v16 = vld [vmem:[%s1533_s30 + $0x2c] sm:$0xf]  ;;  %v1029_v17 = vld [vmem:[%s1533_s30 + $0x38] sm:$0xf0] }
  0x19   : > { %617 = vmatpush.bf16.msra.mxu1 %v1210_v5  ;;  %v1032_v20 = vor.u32 %v1185_v16, %v1029_v17  ;;  %v1206_v21 = vld [vmem:[%s1682_s1 + $0x50] sm:$0xff]  ;;  %v1197_v22 = vld [vmem:[%s1682_s1 + $0x8] sm:$0xff]  ;;  %v1196_v25 = vld [vmem:[%s1682_s1] sm:$0xff] }
  0x1a   : > { %v1213_v23 = vld [vmem:[%s1682_s1 + $0x88] sm:$0xff]  ;;  %v1212_v26 = vld [vmem:[%s1682_s1 + $0x80] sm:$0xff]  ;;  %v1182_v28 = vld [vmem:[%s1533_s30 + $0xc] sm:$0xf0] }
  0x1b   : > { %589 = vmatpush.bf16.msra.mxu0 %v1201_v6  ;;  %1166 = vmatmul.msk.bf16.vlgmr.msra.gmra.mxu3 %vm574_vm0, %v1032_v20  ;;  %v1205_v24 = vld [vmem:[%s1682_s1 + $0x48] sm:$0xff]  ;;  %v1003_v27 = vld [vmem:[%s1533_s30] sm:$0xf]  ;;  %v1183_v30 = vld [vmem:[%s1533_s30 + $0x14] sm:$0xf0] }
  0x1c   : > { %647 = vmatpush.bf16.msra.mxu2 %v1217_v7  ;;  %v1011_v29 = vld [vmem:[%s1533_s30 + $0x8] sm:$0xf]  ;;  %v1204_v31 = vld [vmem:[%s1682_s1 + $0x40] sm:$0xff]  ;;  %v1005_v33 = vld [vmem:[%s1533_s30 + $0x10] sm:$0xf0]  ;;  %v1004_v34 = vor.u32 %v1182_v28, %v1003_v27 }
  0x1d   : > { %618 = vmatpush.bf16.msra.mxu1 %v1209_v8  ;;  %v1180_v32 = vld [vmem:[%s1533_s30 + $0x4] sm:$0xf]  ;;  %v1012_v35 = vor.u32 %v1183_v30, %v1011_v29  ;;  %v1189_v37 = vld [vmem:[%s1533_s30 + $0x4c] sm:$0xf]  ;;  %v1045_v38 = vld [vmem:[%s1533_s30 + $0x58] sm:$0xf0] }
  0x1e   : > { %v1008_v36 = vor.u32 %v1180_v32, %v1005_v33  ;;  %v1048_v39 = vor.u32 %v1189_v37, %v1045_v38  ;;  %v1019_v40 = vld [vmem:[%s1533_s30 + $0x20] sm:$0xf]  ;;  %v1186_v41 = vld [vmem:[%s1533_s30 + $0x2c] sm:$0xf0]  ;;  %v1027_v42 = vld [vmem:[%s1533_s30 + $0x28] sm:$0xf] }
  0x1f   : > { %590 = vmatpush.bf16.msra.mxu0 %v1200_v10  ;;  %v1187_v43 = vld [vmem:[%s1533_s30 + $0x34] sm:$0xf0]  ;;  %v1184_v44 = vld [vmem:[%s1533_s30 + $0x24] sm:$0xf]  ;;  %v1021_v45 = vld [vmem:[%s1533_s30 + $0x30] sm:$0xf0]  ;;  %v1020_v46 = vor.u32 %v1186_v41, %v1019_v40 }
  0x20   : > { %648 = vmatpush.bf16.msra.mxu2 %v1216_v11  ;;  %v1028_v47 = vor.u32 %v1187_v43, %v1027_v42  ;;  %v1024_v48 = vor.u32 %v1184_v44, %v1021_v45  ;;  %v1193_v49 = vld [vmem:[%s1533_s30 + $0x6c] sm:$0xf]  ;;  %v1061_v50 = vld [vmem:[%s1533_s30 + $0x78] sm:$0xf0]  ;;  %v1035_v52 = vld [vmem:[%s1533_s30 + $0x40] sm:$0xf] }
  0x21   : > { %619 = vmatpush.bf16.msra.mxu1 %v1208_v12  ;;  %v1064_v51 = vor.u32 %v1193_v49, %v1061_v50  ;;  %v1190_v53 = vld [vmem:[%s1533_s30 + $0x4c] sm:$0xf0]  ;;  %v1043_v54 = vld [vmem:[%s1533_s30 + $0x48] sm:$0xf]  ;;  %v1191_v55 = vld [vmem:[%s1533_s30 + $0x54] sm:$0xf0] }
  0x22   : > { %v1188_v56 = vld [vmem:[%s1533_s30 + $0x44] sm:$0xf]  ;;  %v1037_v57 = vld [vmem:[%s1533_s30 + $0x50] sm:$0xf0]  ;;  %v1036_v58 = vor.u32 %v1190_v53, %v1035_v52  ;;  %v1044_v59 = vor.u32 %v1191_v55, %v1043_v54  ;;  %v1051_v61 = vld [vmem:[%s1533_s30 + $0x60] sm:$0xf] }
  0x23   : > { %591 = vmatpush.bf16.msra.mxu0 %v1199_v13  ;;  %v1040_v60 = vor.u32 %v1188_v56, %v1037_v57  ;;  %v1194_v62 = vld [vmem:[%s1533_s30 + $0x6c] sm:$0xf0]  ;;  %v1059_v63 = vld [vmem:[%s1533_s30 + $0x68] sm:$0xf]  ;;  %v1195_v0 = vld [vmem:[%s1533_s30 + $0x74] sm:$0xf0] }
  0x24   : > { %649 = vmatpush.bf16.msra.mxu2 %v1215_v14  ;;  %v1192_v1 = vld [vmem:[%s1533_s30 + $0x64] sm:$0xf]  ;;  %v1053_v2 = vld [vmem:[%s1533_s30 + $0x70] sm:$0xf0]  ;;  %v1052_v3 = vor.u32 %v1194_v62, %v1051_v61  ;;  %v1060_v4 = vor.u32 %v1195_v0, %v1059_v63  ;;  %v1181_v6 = vld [vmem:[%s1533_s30 + $0xc] sm:$0xf] }
  0x25   : > { %620 = vmatpush.bf16.msra.mxu1 %v1207_v15  ;;  %v1056_v5 = vor.u32 %v1192_v1, %v1053_v2  ;;  %v1013_v7 = vld [vmem:[%s1533_s30 + $0x18] sm:$0xf0]  ;;  %v713_v12 = vld [vmem:[#allocation4 + $0x10] sm:$0xff]  ;;  %v712_v14 = vld [vmem:[#allocation4 + $0x8] sm:$0xff] }
  0x26   : > { %v1016_v8 = vor.u32 %v1181_v6, %v1013_v7  ;;  %v711_v17 = vld [vmem:[#allocation4] sm:$0xff] }
  0x27   : > { %592 = vmatpush.bf16.msra.mxu0 %v1198_v18 }
  0x28   : > { %650 = vmatpush.bf16.msra.mxu2 %v1214_v19 }
  0x29   : > { %621 = vmatpush.bf16.msra.mxu1 %v1206_v21 }
  0x2b   : > { %593 = vmatpush.bf16.msra.mxu0 %v1197_v22  ;;  %1167 = vmatmul.msk.bf16.gmra.mxu3 %vm574_vm0, %v1048_v39 }
  0x2c   : > { %651 = vmatpush.bf16.msra.mxu2 %v1213_v23 }
  0x2d   : > { %622 = vmatpush.bf16.msra.mxu1 %v1205_v24  ;;  %v1267_v24 = vld [vmem:[#allocation2] ss:$0 sm:$0xff] }
  0x2f   : > { %594 = vmatpush.bf16.msra.mxu0 %v1196_v25 }
  0x30   : > { %652 = vmatpush.bf16.msra.mxu2 %v1212_v26 }
  0x31   : > { %623 = vmatpush.bf16.msra.mxu1 %v1204_v31 }
  0x32   : > { %595 = vmatmul.bf16.vlgmr.msra.gmra.mxu0 %v1004_v34 }
  0x33   : > { %681 = vmatpush.bf16.msrb.mxu0 %v1220_v9  ;;  %653 = vmatmul.bf16.vlgmr.msra.gmra.mxu2 %v1012_v35  ;;  %v714_v9 = vld [vmem:[#allocation4 + $0x18] sm:$0xff] }
  0x34   : > { %624 = vmatmul.bf16.vlgmr.msra.gmra.mxu1 %v1008_v36  ;;  %1222 = vmatpush.msrb.mxu3 %v714_v9 }
  0x35   : > { %756 = vmatpush.msrb.mxu1 %v714_v9 }
  0x36   : > { %1223 = vmatpush.msrb.mxu3 %v713_v12 }
  0x37   : > { %757 = vmatpush.msrb.mxu1 %v713_v12 }
  0x38   : > { %1224 = vmatpush.msrb.mxu3 %v712_v14 }
  0x39   : > { %758 = vmatpush.msrb.mxu1 %v712_v14 }
  0x3a   : > { %1225 = vmatpush.msrb.mxu3 %v711_v17 }
  0x3b   : > { %1168 = vmatmul.msk.bf16.gmra.mxu3 %vm574_vm0, %v1064_v51  ;;  %759 = vmatpush.msrb.mxu1 %v711_v17 }
  0x42   : > { %600 = vmatmul.bf16.gmra.mxu0 %v1020_v46 }
  0x43   : > { %658 = vmatmul.bf16.gmra.mxu2 %v1028_v47 }
  0x44   : > { %629 = vmatmul.bf16.gmra.mxu1 %v1024_v48 }
  0x52   : > { %605 = vmatmul.bf16.gmra.mxu0 %v1036_v58 }
  0x53   : > { %663 = vmatmul.bf16.gmra.mxu2 %v1044_v59 }
  0x54   : > { %634 = vmatmul.bf16.gmra.mxu1 %v1040_v60 }
  0x62   : > { %610 = vmatmul.bf16.gmra.mxu0 %v1052_v3 }
  0x63   : > { %668 = vmatmul.bf16.gmra.mxu2 %v1060_v4 }
  0x64   : > { %639 = vmatmul.bf16.gmra.mxu1 %v1056_v5 }
  0x72   : > { %1165 = vmatmul.msk.bf16.vlgmr.msrb.gmra.mxu0 %vm574_vm0, %v1016_v8 }
  0x9e   : > { %v688_v34 = vpop.f32.mrf.mxu3 }
  0xa6   : > { %v690_v46 = vpop.f32.mrf.mxu3 }
  0xae   : > { %v693_v55 = vpop.f32.mrf.mxu3 }
  0xaf   : > { %v596_v10 = vpop.f32.mrf.mxu0 }
  0xb0   : > { %v597_v26 = vadd.f32 %v1267_v24, %v596_v10 }
  0xb1   : > { %v625_v18 = vpop.f32.mrf.mxu1 }
  0xb2   : > { %v626_v28 = vadd.f32 %v625_v18, %v597_v26 }
  0xb6   : > { %v654_v20 = vpop.f32.mrf.mxu2  ;;  %v695_v0 = vpop.f32.mrf.mxu3 }
  0xb7   : > { %v598_v11 = vpop.f32.mrf.mxu0  ;;  %v655_v30 = vadd.f32 %v654_v20, %v626_v28 }
  0xb8   : > { %v599_v32 = vadd.f32 %v1267_v24, %v598_v11 }
  0xb9   : > { %v627_v22 = vpop.f32.mrf.mxu1 }
  0xba   : > { %v628_v36 = vadd.f32 %v627_v22, %v599_v32  ;;  %v1638_v22 = vld [vmem:[#allocation6] ss:$0 sm:$0xff] }
  0xbe   : > { %v656_v23 = vpop.f32.mrf.mxu2  ;;  %v698_v9 = vpop.f32.mrf.mxu3 }
  0xbf   : > { %v601_v13 = vpop.f32.mrf.mxu0  ;;  %v657_v39 = vadd.f32 %v656_v23, %v628_v36 }
  0xc0   : > { %v602_v37 = vadd.f32 %v1267_v24, %v601_v13 }
  0xc1   : > { %v630_v27 = vpop.f32.mrf.mxu1 }
  0xc2   : > { %v631_v42 = vadd.f32 %v630_v27, %v602_v37 }
  0xc6   : > { %v659_v29 = vpop.f32.mrf.mxu2 }
  0xc7   : > { %v603_v15 = vpop.f32.mrf.mxu0  ;;  %v660_v44 = vadd.f32 %v659_v29, %v631_v42 }
  0xc8   : > { %v604_v47 = vadd.f32 %v1267_v24, %v603_v15 }
  0xc9   : > { %v632_v38 = vpop.f32.mrf.mxu1  ;;  %v1608_v48 = vadd.f32 %v688_v34, %v660_v44 }
  0xca   : > { %v633_v50 = vadd.f32 %v632_v38, %v604_v47 }
  0xcb   : > { %v705_v52 = vmul.f32 %v1608_v48, %v1608_v48 }
  0xce   : > { %v661_v40 = vpop.f32.mrf.mxu2 }
  0xcf   : > { %v606_v16 = vpop.f32.mrf.mxu0  ;;  %v662_v53 = vadd.f32 %v661_v40, %v633_v50 }
  0xd0   : > { %v607_v54 = vadd.f32 %v1267_v24, %v606_v16 }
  0xd1   : > { %v635_v49 = vpop.f32.mrf.mxu1  ;;  %v1613_v56 = vadd.f32 %v690_v46, %v662_v53 }
  0xd2   : > { %v636_v57 = vadd.f32 %v635_v49, %v607_v54 }
  0xd3   : > { %v706_v59 = vmul.f32 %v1613_v56, %v1613_v56 }
  0xd6   : > { %v664_v51 = vpop.f32.mrf.mxu2 }
  0xd7   : > { %v608_v19 = vpop.f32.mrf.mxu0  ;;  %v665_v60 = vadd.f32 %v664_v51, %v636_v57 }
  0xd8   : > { %v609_v62 = vadd.f32 %v1267_v24, %v608_v19  ;;  %v700_v19 = vpop.f32.mrf.mxu3 }
  0xd9   : > { %v637_v58 = vpop.f32.mrf.mxu1  ;;  %v1618_v63 = vadd.f32 %v693_v55, %v665_v60 }
  0xda   : > { %v638_v1 = vadd.f32 %v637_v58, %v609_v62 }
  0xdb   : > { %v707_v2 = vmul.f32 %v1618_v63, %v1618_v63 }
  0xde   : > { %v666_v61 = vpop.f32.mrf.mxu2 }
  0xdf   : > { %v611_v21 = vpop.f32.mrf.mxu0  ;;  %v667_v3 = vadd.f32 %v666_v61, %v638_v1 }
  0xe0   : > { %v612_v5 = vadd.f32 %v1267_v24, %v611_v21 }
  0xe1   : > { %v640_v4 = vpop.f32.mrf.mxu1  ;;  %v1623_v7 = vadd.f32 %v695_v0, %v667_v3 }
  0xe2   : > { %v641_v8 = vadd.f32 %v640_v4, %v612_v5 }
  0xe3   : > { %v708_v10 = vmul.f32 %v1623_v7, %v1623_v7 }
  0xe6   : > { %v669_v6 = vpop.f32.mrf.mxu2 }
  0xe7   : > { %v613_v25 = vpop.f32.mrf.mxu0  ;;  %v670_v11 = vadd.f32 %v669_v6, %v641_v8 }
  0xe8   : > { %v614_v12 = vadd.f32 %v1267_v24, %v613_v25 }
  0xe9   : > { %v642_v13 = vpop.f32.mrf.mxu1  ;;  %v1628_v14 = vadd.f32 %v698_v9, %v670_v11 }
  0xea   : > { %v643_v16 = vadd.f32 %v642_v13, %v614_v12 }
  0xeb   : > { %v709_v17 = vmul.f32 %v1628_v14, %v1628_v14 }
  0xee   : > { %v671_v15 = vpop.f32.mrf.mxu2 }
  0xef   : > { %v683_v31 = vpop.f32.mrf.mxu0  ;;  %v672_v18 = vadd.f32 %v671_v15, %v643_v16 }
  0xf0   : > { %v1598_v33 = vadd.f32 %v683_v31, %v655_v30 }
  0xf1   : > { %v1633_v20 = vadd.f32 %v700_v19, %v672_v18 }
  0xf2   : > { %v703_v35 = vmul.f32 %v1598_v33, %v1598_v33 }
  0xf3   : > { %v710_v21 = vmul.f32 %v1633_v20, %v1633_v20 }
  0xf4   : > { %1169 = vmatmul.msk.f32.vlgmr.msrb.gmra.mxu1 %vm719_vm1, %v703_v35 }
  0xf7   : > { %v685_v41 = vpop.f32.mrf.mxu0 }
  0xf8   : > { %v1603_v43 = vadd.f32 %v685_v41, %v657_v39 }
  0xfa   : > { %v704_v45 = vmul.f32 %v1603_v43, %v1603_v43 }
  0xfc   : > { %1170 = vmatmul.msk.f32.vlgmr.msrb.gmra.mxu3 %vm719_vm1, %v704_v45 }
 0x104   : > { %1171 = vmatmul.msk.f32.gmra.mxu3 %vm719_vm1, %v705_v52 }
 0x10c   : > { %1172 = vmatmul.msk.f32.gmra.mxu3 %vm719_vm1, %v706_v59 }
 0x114   : > { %1173 = vmatmul.msk.f32.gmra.mxu3 %vm719_vm1, %v707_v2 }
 0x11c   : > { %1174 = vmatmul.msk.f32.gmra.mxu3 %vm719_vm1, %v708_v10 }
 0x124   : > { %1175 = vmatmul.msk.f32.gmra.mxu3 %vm719_vm1, %v709_v17 }
 0x12c   : > { %1176 = vmatmul.msk.f32.gmra.mxu3 %vm719_vm1, %v710_v21 }
 0x171   : > { %v761_v23 = vpop.f32.mrf.mxu1 }
 0x172   : > { %v762_v24 = vadd.f32 %v1638_v22, %v761_v23 }
 0x174   : > { %v785_v25 = vmax.f32 %v762_v24, 1e-12 }
 0x176   : > { %1269 = vrsqrt.f32 %v785_v25  ;;  %vm799_vm3 = vweird.f32 %v785_v25 }
 0x17c   : > { %v1270_v26 = vpop.eup %1269 }
 0x17d   : > { %v794_v27 = vmul.f32 %v1270_v26, %v785_v25  ;;  %vm800_vm2 = vweird.f32 %v1270_v26 }
 0x17e   : > { %vm801_vm4 = vmor %vm799_vm3, %vm800_vm2 }
 0x17f   : > { %v795_v28 = vmul.f32 %v1270_v26, %v794_v27  ;;  %v764_v29 = vpop.f32.mrf.mxu3 }
 0x180   : > { %v765_v30 = vadd.f32 %v1638_v22, %v764_v29 }
 0x181   : > { %v796_v31 = vmul.f32 0.5, %v795_v28 }
 0x182   : > { %v786_v32 = vmax.f32 %v765_v30, 1e-12 }
 0x183   : > { %v797_v34 = vsub.f32 1.5, %v796_v31 }
 0x184   : > { %1271 = vrsqrt.f32 %v786_v32  ;;  %vm809_vm7 = vweird.f32 %v786_v32 }
 0x185   : > { %v798_v35 = vmul.f32 %v1270_v26, %v797_v34 }
 0x187   : > { %v802_v36 = vsel %vm801_vm4, %v1270_v26, %v798_v35  ;;  %v767_v37 = vpop.f32.mrf.mxu3 }
 0x188   : > { %v873_v38 = vmul.f32 %v802_v36, %v1598_v33  ;;  %v768_v39 = vadd.f32 %v1638_v22, %v767_v37 }
 0x18a   : > { %v1272_v40 = vpop.eup %1271  ;;  %v881_v41 = vpack.c.bf16 %v873_v38, %v873_v38  ;;  %v787_v42 = vmax.f32 %v768_v39, 1e-12 }
 0x18b   : > { %v804_v44 = vmul.f32 %v1272_v40, %v786_v32  ;;  %vm810_vm6 = vweird.f32 %v1272_v40 }
 0x18c   : > { %890 = vst.msk [vmem:[%s1648_s29] sm:$0xf] %vm889_vm5, %v881_v41  ;;  %1273 = vrsqrt.f32 %v787_v42  ;;  %vm811_vm8 = vmor %vm809_vm7, %vm810_vm6  ;;  %vm819_vm10 = vweird.f32 %v787_v42 }
 0x18d   : > { %v805_v45 = vmul.f32 %v1272_v40, %v804_v44 }
 0x18f   : > { %v806_v46 = vmul.f32 0.5, %v805_v45  ;;  %v770_v47 = vpop.f32.mrf.mxu3 }
 0x190   : > { %v771_v33 = vadd.f32 %v1638_v22, %v770_v47 }
 0x191   : > { %v807_v49 = vsub.f32 1.5, %v806_v46 }
 0x192   : > { %v1274_v50 = vpop.eup %1273  ;;  %v788_v51 = vmax.f32 %v771_v33, 1e-12 }
 0x193   : > { %v808_v52 = vmul.f32 %v1272_v40, %v807_v49  ;;  %v814_v53 = vmul.f32 %v1274_v50, %v787_v42  ;;  %vm820_vm9 = vweird.f32 %v1274_v50 }
 0x194   : > { %1275 = vrsqrt.f32 %v788_v51  ;;  %vm821_vm11 = vmor %vm819_vm10, %vm820_vm9  ;;  %vm829_vm13 = vweird.f32 %v788_v51 }
 0x195   : > { %v812_v54 = vsel %vm811_vm8, %v1272_v40, %v808_v52  ;;  %v815_v55 = vmul.f32 %v1274_v50, %v814_v53 }
 0x196   : > { %v874_v57 = vmul.f32 %v812_v54, %v1603_v43 }
 0x197   : > { %v816_v58 = vmul.f32 0.5, %v815_v55  ;;  %v773_v59 = vpop.f32.mrf.mxu3 }
 0x198   : > { %v882_v60 = vpack.c.bf16 %v874_v57, %v874_v57  ;;  %v774_v61 = vadd.f32 %v1638_v22, %v773_v59 }
 0x199   : > { %v817_v62 = vsub.f32 1.5, %v816_v58 }
 0x19a   : > { %v1276_v0 = vpop.eup %1275  ;;  %891 = vst.msk [vmem:[%s1648_s29 + $0x4] sm:$0xf] %vm889_vm5, %v882_v60  ;;  %v789_v1 = vmax.f32 %v774_v61, 1e-12 }
 0x19b   : > { %v818_v2 = vmul.f32 %v1274_v50, %v817_v62  ;;  %v824_v3 = vmul.f32 %v1276_v0, %v788_v51  ;;  %vm830_vm12 = vweird.f32 %v1276_v0 }
 0x19c   : > { %1277 = vrsqrt.f32 %v789_v1  ;;  %vm831_vm14 = vmor %vm829_vm13, %vm830_vm12  ;;  %vm839_vm0 = vweird.f32 %v789_v1 }
 0x19d   : > { %v822_v4 = vsel %vm821_vm11, %v1274_v50, %v818_v2  ;;  %v825_v5 = vmul.f32 %v1276_v0, %v824_v3 }
 0x19e   : > { %v875_v43 = vmul.f32 %v822_v4, %v1608_v48 }
 0x19f   : > { %v826_v6 = vmul.f32 0.5, %v825_v5  ;;  %v776_v8 = vpop.f32.mrf.mxu3 }
 0x1a0   : > { %v883_v9 = vpack.c.bf16 %v875_v43, %v875_v43  ;;  %v777_v10 = vadd.f32 %v1638_v22, %v776_v8 }
 0x1a1   : > { %v827_v11 = vsub.f32 1.5, %v826_v6 }
 0x1a2   : > { %v1278_v12 = vpop.eup %1277  ;;  %892 = vst.msk [vmem:[%s1648_s29 + $0x8] sm:$0xf] %vm889_vm5, %v883_v9  ;;  %v790_v13 = vmax.f32 %v777_v10, 1e-12 }
 0x1a3   : > { %v828_v15 = vmul.f32 %v1276_v0, %v827_v11  ;;  %v834_v16 = vmul.f32 %v1278_v12, %v789_v1  ;;  %vm840_vm15 = vweird.f32 %v1278_v12 }
 0x1a4   : > { %1279 = vrsqrt.f32 %v790_v13  ;;  %vm841_vm1 = vmor %vm839_vm0, %vm840_vm15  ;;  %vm849_vm3 = vweird.f32 %v790_v13 }
 0x1a5   : > { %v832_v17 = vsel %vm831_vm14, %v1276_v0, %v828_v15  ;;  %v835_v18 = vmul.f32 %v1278_v12, %v834_v16 }
 0x1a6   : > { %v876_v48 = vmul.f32 %v832_v17, %v1613_v56 }
 0x1a7   : > { %v836_v19 = vmul.f32 0.5, %v835_v18  ;;  %v779_v21 = vpop.f32.mrf.mxu3 }
 0x1a8   : > { %v884_v23 = vpack.c.bf16 %v876_v48, %v876_v48  ;;  %v780_v24 = vadd.f32 %v1638_v22, %v779_v21 }
 0x1a9   : > { %v837_v25 = vsub.f32 1.5, %v836_v19 }
 0x1aa   : > { %v1280_v26 = vpop.eup %1279  ;;  %893 = vst.msk [vmem:[%s1648_s29 + $0xc] sm:$0xf] %vm889_vm5, %v884_v23  ;;  %v791_v27 = vmax.f32 %v780_v24, 1e-12 }
 0x1ab   : > { %v838_v28 = vmul.f32 %v1278_v12, %v837_v25  ;;  %v844_v29 = vmul.f32 %v1280_v26, %v790_v13  ;;  %vm850_vm2 = vweird.f32 %v1280_v26 }
 0x1ac   : > { %1281 = vrsqrt.f32 %v791_v27  ;;  %vm851_vm4 = vmor %vm849_vm3, %vm850_vm2  ;;  %vm859_vm7 = vweird.f32 %v791_v27 }
 0x1ad   : > { %v842_v30 = vsel %vm841_vm1, %v1278_v12, %v838_v28  ;;  %v845_v31 = vmul.f32 %v1280_v26, %v844_v29 }
 0x1ae   : > { %v877_v56 = vmul.f32 %v842_v30, %v1618_v63 }
 0x1af   : > { %v846_v32 = vmul.f32 0.5, %v845_v31  ;;  %v782_v34 = vpop.f32.mrf.mxu3 }
 0x1b0   : > { %v885_v35 = vpack.c.bf16 %v877_v56, %v877_v56  ;;  %v783_v36 = vadd.f32 %v1638_v22, %v782_v34 }
 0x1b1   : > { %v847_v37 = vsub.f32 1.5, %v846_v32 }
 0x1b2   : > { %v1282_v38 = vpop.eup %1281  ;;  %894 = vst.msk [vmem:[%s1648_s29 + $0x10] sm:$0xf] %vm889_vm5, %v885_v35  ;;  %v792_v39 = vmax.f32 %v783_v36, 1e-12 }
 0x1b3   : > { %v848_v40 = vmul.f32 %v1280_v26, %v847_v37  ;;  %v854_v41 = vmul.f32 %v1282_v38, %v791_v27  ;;  %vm860_vm6 = vweird.f32 %v1282_v38 }
 0x1b4   : > { %1283 = vrsqrt.f32 %v792_v39  ;;  %vm861_vm8 = vmor %vm859_vm7, %vm860_vm6  ;;  %vm869_vm10 = vweird.f32 %v792_v39 }
 0x1b5   : > { %v852_v42 = vsel %vm851_vm4, %v1280_v26, %v848_v40  ;;  %v855_v44 = vmul.f32 %v1282_v38, %v854_v41 }
 0x1b6   : > { %v878_v63 = vmul.f32 %v852_v42, %v1623_v7 }
 0x1b7   : > { %v856_v45 = vmul.f32 0.5, %v855_v44 }
 0x1b8   : > { %v886_v46 = vpack.c.bf16 %v878_v63, %v878_v63 }
 0x1b9   : > { %v857_v22 = vsub.f32 1.5, %v856_v45 }
 0x1ba   : > { %v1284_v47 = vpop.eup %1283  ;;  %895 = vst.msk [vmem:[%s1648_s29 + $0x14] sm:$0xf] %vm889_vm5, %v886_v46 }
 0x1bb   : > { %v858_v33 = vmul.f32 %v1282_v38, %v857_v22  ;;  %v864_v49 = vmul.f32 %v1284_v47, %v792_v39  ;;  %vm870_vm9 = vweird.f32 %v1284_v47 }
 0x1bc   : > { %vm871_vm11 = vmor %vm869_vm10, %vm870_vm9 }
 0x1bd   : > { %v862_v50 = vsel %vm861_vm8, %v1282_v38, %v858_v33  ;;  %v865_v51 = vmul.f32 %v1284_v47, %v864_v49 }
 0x1be   : > { %v879_v52 = vmul.f32 %v862_v50, %v1628_v14 }
 0x1bf   : > { %v866_v53 = vmul.f32 0.5, %v865_v51 }
 0x1c0   : > { %v887_v54 = vpack.c.bf16 %v879_v52, %v879_v52 }
 0x1c1   : > { %v867_v7 = vsub.f32 1.5, %v866_v53 }
 0x1c2   : > { %896 = vst.msk [vmem:[%s1648_s29 + $0x18] sm:$0xf] %vm889_vm5, %v887_v54 }
 0x1c3   : > { %v868_v55 = vmul.f32 %v1284_v47, %v867_v7 }
 0x1c5   : > { %v872_v57 = vsel %vm871_vm11, %v1284_v47, %v868_v55 }
 0x1c6   : > { %v880_v58 = vmul.f32 %v872_v57, %v1633_v20 }
 0x1c8   : > { %v888_v59 = vpack.c.bf16 %v880_v58, %v880_v58 }
 0x1ca   : > { %897 = vst.msk [vmem:[%s1648_s29 + $0x1c] sm:$0xf] %vm889_vm5, %v888_v59 }
 0x1cb PF: > { %s17_s18 = sadd.s32 1, %s1389_s18  }
 0x1cc   : > { %p14_p7 = scmp.ge.s32.totalorder %s17_s18, 4  }
 0x1ce   :  { %16 = sbr.rel (!%p14_p7) target bundleno = 2 (0x2), region = 83 }
 0x1d3   :  { %920 = vsyncpa [#allocation3], 1 }
 0x1d4   :  { %922 = vsyncpa [#allocation3 + $0x1], 1 }
 0x1d5   :  { %923 = vsyncpa [#allocation5], 1 }

// kernel: forward.10
= control target key start
LH: loop header
LB: loop body
LE: loop exit
PB: predicated region body
PF: predicated region fallthrough
CT: control target
= control target key end

     0   :  { %s1257_s18 = smov 0   ;;  %s1465_s0 = inlined_call_operand.vmem [shape: bf16[32,800], index: 0, kind: input, shape index: {}]   ;;  %s1466_s1 = inlined_call_operand.vmem [shape: bf16[800,32], index: 1, kind: input, shape index: {}]   ;;  %s1467_s2 = inlined_call_operand.vmem [shape: f32[1,32], index: 2, kind: input, shape index: {}]   ;;  %s1468_s3 = inlined_call_operand.vmem [shape: f32[32,32], index: 3, kind: input, shape index: {}]   ;;  %s1469_s4 = inlined_call_operand.vmem [shape: f32[1,32], index: 4, kind: input, shape index: {}]   ;;  %s1470_s5 = inlined_call_operand.vmem [shape: bf16[32,32], index: 5, kind: output, shape index: {}]  }
   0x1 LB: > { %s905_s19 = sadd.s32 4294967295, %s1225_s18   ;;  %p909_p0 = scmp.ge.s32.totalorder %s1225_s18, 1  ;;  %s1225_s18 = sphi %s1257_s18, %s15_s18  }
   0x2   : > { %p189_p1 = scmp.lt.s32.totalorder %s1225_s18, 3 }
   0x4   : > { %p190_p2 = pnand %p909_p0, %p189_p1 }
   0x5   : > { %s910_s21 = sshll.u32 (!%p190_p2), %s905_s19, 1 }
   0x6   : > { %193 = sbr.rel (%p190_p2) target bundleno = 376 (0x178), region = 40  ;;  %p219_p3 = scmp.lt.s32.totalorder (!%p190_p2), %s910_s21, 3 }
   0xb   : > { %v1161_v0 = vld [vmem:[%s1466_s1 + $0x38] sm:$0xff]  ;;  %v1160_v4 = vld [vmem:[%s1466_s1 + $0x30] sm:$0xff]  ;;  %v1159_v8 = vld [vmem:[%s1466_s1 + $0x28] sm:$0xff]  ;;  %s1472_s21 = smov (!%p219_p3, %s910_s21), 3  ;;  %vm679_vm0 = vcmask 261120   ;;  %vm846_vm4 = vcmask 257024  }
   0xc   : > { %v1169_v1 = vld [vmem:[%s1466_s1 + $0x78] sm:$0xff]  ;;  %683 = vmatpush.bf16.msra.mxu0 %v1161_v0  ;;  %v1168_v5 = vld [vmem:[%s1466_s1 + $0x70] sm:$0xff]  ;;  %v1167_v9 = vld [vmem:[%s1466_s1 + $0x68] sm:$0xff]  ;;  %s1204_s23 = smul.u32 28, %s1472_s21 }
   0xd   : > { %v1177_v2 = vld [vmem:[%s1466_s1 + $0xb8] sm:$0xff]  ;;  %697 = vmatpush.bf16.msra.mxu1 %v1169_v1  ;;  %v1176_v6 = vld [vmem:[%s1466_s1 + $0xb0] sm:$0xff]  ;;  %v1175_v10 = vld [vmem:[%s1466_s1 + $0xa8] sm:$0xff] }
   0xe   : > { %v1185_v3 = vld [vmem:[%s1466_s1 + $0xf8] sm:$0xff]  ;;  %711 = vmatpush.bf16.msra.mxu2 %v1177_v2  ;;  %v1184_v7 = vld [vmem:[%s1466_s1 + $0xf0] sm:$0xff]  ;;  %v1183_v11 = vld [vmem:[%s1466_s1 + $0xe8] sm:$0xff]  ;;  %s1355_s8 = scalar_lea.vmem %s1465_s0, %s1204_s23  ;;  %s913_s23 = sshll.u32 %s1472_s21, 2 }
   0xf   : > { %725 = vmatpush.bf16.msra.mxu3 %v1185_v3  ;;  %v1158_v12 = vld [vmem:[%s1466_s1 + $0x20] sm:$0xff]  ;;  %v1157_v16 = vld [vmem:[%s1466_s1 + $0x18] sm:$0xff]  ;;  %v1156_v20 = vld [vmem:[%s1466_s1 + $0x10] sm:$0xff]  ;;  %s229_s26 = scalar_lea.vmem %s1470_s5, %s913_s23 }
  0x10   : > { %684 = vmatpush.bf16.msra.mxu0 %v1160_v4  ;;  %v1166_v13 = vld [vmem:[%s1466_s1 + $0x60] sm:$0xff]  ;;  %v1165_v17 = vld [vmem:[%s1466_s1 + $0x58] sm:$0xff]  ;;  %v1164_v21 = vld [vmem:[%s1466_s1 + $0x50] sm:$0xff] }
  0x11   : > { %698 = vmatpush.bf16.msra.mxu1 %v1168_v5  ;;  %v1174_v14 = vld [vmem:[%s1466_s1 + $0xa0] sm:$0xff]  ;;  %v1173_v18 = vld [vmem:[%s1466_s1 + $0x98] sm:$0xff]  ;;  %v1172_v22 = vld [vmem:[%s1466_s1 + $0x90] sm:$0xff] }
  0x12   : > { %712 = vmatpush.bf16.msra.mxu2 %v1176_v6  ;;  %v1182_v15 = vld [vmem:[%s1466_s1 + $0xe0] sm:$0xff]  ;;  %v1181_v19 = vld [vmem:[%s1466_s1 + $0xd8] sm:$0xff]  ;;  %v1180_v23 = vld [vmem:[%s1466_s1 + $0xd0] sm:$0xff] }
  0x13   : > { %726 = vmatpush.bf16.msra.mxu3 %v1184_v7  ;;  %v1155_v24 = vld [vmem:[%s1466_s1 + $0x8] sm:$0xff]  ;;  %v1154_v28 = vld [vmem:[%s1466_s1] sm:$0xff]  ;;  %v1150_v31 = vld [vmem:[%s1355_s8 + $0x18] sm:$0xf0] }
  0x14   : > { %685 = vmatpush.bf16.msra.mxu0 %v1159_v8  ;;  %v1163_v25 = vld [vmem:[%s1466_s1 + $0x48] sm:$0xff]  ;;  %v1162_v29 = vld [vmem:[%s1466_s1 + $0x40] sm:$0xff]  ;;  %v1193_v34 = vld [vmem:[%s1466_s1 + $0x138] sm:$0xff] }
  0x15   : > { %699 = vmatpush.bf16.msra.mxu1 %v1167_v9  ;;  %v1171_v26 = vld [vmem:[%s1466_s1 + $0x88] sm:$0xff]  ;;  %v916_v30 = vld [vmem:[%s1355_s8] sm:$0xf]  ;;  %v1147_v32 = vld [vmem:[%s1355_s8 + $0x4] sm:$0xf] }
  0x16   : > { %713 = vmatpush.bf16.msra.mxu2 %v1175_v10  ;;  %v1179_v27 = vld [vmem:[%s1466_s1 + $0xc8] sm:$0xff]  ;;  %v918_v33 = vld [vmem:[%s1355_s8 + $0x1c] sm:$0xf0]  ;;  %v1201_v35 = vld [vmem:[%s1466_s1 + $0x178] sm:$0xff]  ;;  %v917_v40 = vor.u32 %v1150_v31, %v916_v30 }
  0x17   : > { %727 = vmatpush.bf16.msra.mxu3 %v1183_v11  ;;  %v1170_v36 = vld [vmem:[%s1466_s1 + $0x80] sm:$0xff]  ;;  %v924_v38 = vld [vmem:[%s1355_s8 + $0x8] sm:$0xf]  ;;  %v1148_v41 = vld [vmem:[%s1355_s8 + $0xc] sm:$0xf]  ;;  %v921_v43 = vor.u32 %v1147_v32, %v918_v33 }
  0x18   : > { %686 = vmatpush.bf16.msra.mxu0 %v1158_v12  ;;  %v1178_v37 = vld [vmem:[%s1466_s1 + $0xc0] sm:$0xff]  ;;  %v926_v42 = vld [vmem:[%s1355_s8 + $0x24] sm:$0xf0]  ;;  %v1192_v45 = vld [vmem:[%s1466_s1 + $0x130] sm:$0xff] }
  0x19   : > { %700 = vmatpush.bf16.msra.mxu1 %v1166_v13  ;;  %v1151_v39 = vld [vmem:[%s1355_s8 + $0x20] sm:$0xf0]  ;;  %v1203_v44 = vld [vmem:[%s1466_s1 + $0x188] sm:$0xff]  ;;  %v1200_v46 = vld [vmem:[%s1466_s1 + $0x170] sm:$0xff]  ;;  %v929_v48 = vor.u32 %v1148_v41, %v926_v42 }
  0x1a   : > { %714 = vmatpush.bf16.msra.mxu2 %v1174_v14  ;;  %v925_v47 = vor.u32 %v1151_v39, %v924_v38  ;;  %v1202_v49 = vld [vmem:[%s1466_s1 + $0x180] sm:$0xff]  ;;  %v1191_v50 = vld [vmem:[%s1466_s1 + $0x128] sm:$0xff]  ;;  %v1189_v54 = vld [vmem:[%s1466_s1 + $0x118] sm:$0xff] }
  0x1b   : > { %728 = vmatpush.bf16.msra.mxu3 %v1182_v15  ;;  %v1199_v51 = vld [vmem:[%s1466_s1 + $0x168] sm:$0xff]  ;;  %v1190_v52 = vld [vmem:[%s1466_s1 + $0x120] sm:$0xff]  ;;  %v1197_v55 = vld [vmem:[%s1466_s1 + $0x158] sm:$0xff] }
  0x1c   : > { %687 = vmatpush.bf16.msra.mxu0 %v1157_v16  ;;  %v1198_v53 = vld [vmem:[%s1466_s1 + $0x160] sm:$0xff]  ;;  %v940_v56 = vld [vmem:[%s1355_s8 + $0x18] sm:$0xf]  ;;  %v1153_v57 = vld [vmem:[%s1355_s8 + $0x30] sm:$0xf0] }
  0x1d   : > { %701 = vmatpush.bf16.msra.mxu1 %v1165_v17  ;;  %v1188_v58 = vld [vmem:[%s1466_s1 + $0x110] sm:$0xff]  ;;  %v941_v60 = vor.u32 %v1153_v57, %v940_v56  ;;  %v1187_v61 = vld [vmem:[%s1466_s1 + $0x108] sm:$0xff]  ;;  %v1186_v63 = vld [vmem:[%s1466_s1 + $0x100] sm:$0xff] }
  0x1e   : > { %715 = vmatpush.bf16.msra.mxu2 %v1173_v18  ;;  %v1196_v59 = vld [vmem:[%s1466_s1 + $0x150] sm:$0xff]  ;;  %v1195_v62 = vld [vmem:[%s1466_s1 + $0x148] sm:$0xff]  ;;  %v1194_v0 = vld [vmem:[%s1466_s1 + $0x140] sm:$0xff] }
  0x1f   : > { %729 = vmatpush.bf16.msra.mxu3 %v1181_v19  ;;  %v932_v1 = vld [vmem:[%s1355_s8 + $0x10] sm:$0xf]  ;;  %v1152_v2 = vld [vmem:[%s1355_s8 + $0x28] sm:$0xf0]  ;;  %v1149_v3 = vld [vmem:[%s1355_s8 + $0x14] sm:$0xf] }
  0x20   : > { %688 = vmatpush.bf16.msra.mxu0 %v1156_v20  ;;  %v934_v4 = vld [vmem:[%s1355_s8 + $0x2c] sm:$0xf0]  ;;  %v933_v5 = vor.u32 %v1152_v2, %v932_v1  ;;  %v786_v7 = vld [vmem:[%s1468_s3 + $0x18] sm:$0xff]  ;;  %v784_v9 = vld [vmem:[%s1468_s3 + $0x8] sm:$0xff] }
  0x21   : > { %702 = vmatpush.bf16.msra.mxu1 %v1164_v21  ;;  %v937_v6 = vor.u32 %v1149_v3, %v934_v4  ;;  %v785_v8 = vld [vmem:[%s1468_s3 + $0x10] sm:$0xff]  ;;  %v783_v10 = vld [vmem:[%s1468_s3] sm:$0xff] }
  0x22   : > { %716 = vmatpush.bf16.msra.mxu2 %v1172_v22  ;;  %v1213_v14 = vld [vmem:[%s1467_s2] ss:$0 sm:$0xff] }
  0x23   : > { %730 = vmatpush.bf16.msra.mxu3 %v1180_v23  ;;  %v1214_v42 = vld [vmem:[%s1469_s4] ss:$0 sm:$0xff] }
  0x24   : > { %689 = vmatpush.bf16.msra.mxu0 %v1155_v24 }
  0x25   : > { %703 = vmatpush.bf16.msra.mxu1 %v1163_v25 }
  0x26   : > { %717 = vmatpush.bf16.msra.mxu2 %v1171_v26 }
  0x27   : > { %731 = vmatpush.bf16.msra.mxu3 %v1179_v27 }
  0x28   : > { %690 = vmatpush.bf16.msra.mxu0 %v1154_v28 }
  0x29   : > { %704 = vmatpush.bf16.msra.mxu1 %v1162_v29 }
  0x2a   : > { %718 = vmatpush.bf16.msra.mxu2 %v1170_v36 }
  0x2b   : > { %732 = vmatpush.bf16.msra.mxu3 %v1178_v37  ;;  %691 = vmatmul.bf16.vlgmr.msra.gmra.mxu0 %v917_v40 }
  0x2c   : > { %739 = vmatpush.bf16.msrb.mxu0 %v1193_v34  ;;  %705 = vmatmul.bf16.vlgmr.msra.gmra.mxu1 %v921_v43 }
  0x2d   : > { %753 = vmatpush.bf16.msrb.mxu1 %v1201_v35  ;;  %719 = vmatmul.bf16.vlgmr.msra.gmra.mxu2 %v925_v47 }
  0x2e   : > { %773 = vmatpush.bf16.msrb.mxu2 %v1203_v44  ;;  %733 = vmatmul.bf16.vlgmr.msra.gmra.mxu3 %v929_v48 }
  0x2f   : > { %809 = vmatpush.msrb.mxu3 %v786_v7 }
  0x30   : > { %740 = vmatpush.bf16.msrb.mxu0 %v1192_v45 }
  0x31   : > { %754 = vmatpush.bf16.msrb.mxu1 %v1200_v46  ;;  %810 = vmatpush.msrb.mxu3 %v785_v8 }
  0x32   : > { %774 = vmatpush.bf16.msrb.mxu2 %v1202_v49 }
  0x33   : > { %811 = vmatpush.msrb.mxu3 %v784_v9 }
  0x34   : > { %741 = vmatpush.bf16.msrb.mxu0 %v1191_v50 }
  0x35   : > { %755 = vmatpush.bf16.msrb.mxu1 %v1199_v51  ;;  %812 = vmatpush.msrb.mxu3 %v783_v10 }
  0x38   : > { %742 = vmatpush.bf16.msrb.mxu0 %v1190_v52 }
  0x39   : > { %756 = vmatpush.bf16.msrb.mxu1 %v1198_v53 }
  0x3c   : > { %743 = vmatpush.bf16.msrb.mxu0 %v1189_v54 }
  0x3d   : > { %757 = vmatpush.bf16.msrb.mxu1 %v1197_v55  ;;  %1142 = vmatmul.msk.bf16.vlgmr.msrb.gmra.mxu2 %vm679_vm0, %v941_v60 }
  0x40   : > { %744 = vmatpush.bf16.msrb.mxu0 %v1188_v58 }
  0x41   : > { %758 = vmatpush.bf16.msrb.mxu1 %v1196_v59 }
  0x44   : > { %745 = vmatpush.bf16.msrb.mxu0 %v1187_v61 }
  0x45   : > { %759 = vmatpush.bf16.msrb.mxu1 %v1195_v62 }
  0x48   : > { %746 = vmatpush.bf16.msrb.mxu0 %v1186_v63 }
  0x49   : > { %760 = vmatpush.bf16.msrb.mxu1 %v1194_v0 }
  0x4b   : > { %747 = vmatmul.bf16.vlgmr.msrb.gmra.mxu0 %v933_v5 }
  0x4c   : > { %761 = vmatmul.bf16.vlgmr.msrb.gmra.mxu1 %v937_v6 }
  0xa8   : > { %v692_v11 = vpop.f32.mrf.mxu0 }
  0xa9   : > { %v706_v12 = vpop.f32.mrf.mxu1  ;;  %v693_v15 = vadd.f32 %v1213_v14, %v692_v11 }
  0xab   : > { %v707_v16 = vadd.f32 %v706_v12, %v693_v15 }
  0xb0   : > { %v720_v13 = vpop.f32.mrf.mxu2  ;;  %v694_v17 = vpop.f32.mrf.mxu0 }
  0xb1   : > { %v708_v18 = vpop.f32.mrf.mxu1  ;;  %v734_v20 = vpop.f32.mrf.mxu3  ;;  %v721_v21 = vadd.f32 %v720_v13, %v707_v16  ;;  %v695_v22 = vadd.f32 %v1213_v14, %v694_v17 }
  0xb3   : > { %v735_v23 = vadd.f32 %v734_v20, %v721_v21  ;;  %v709_v24 = vadd.f32 %v708_v18, %v695_v22 }
  0xb8   : > { %v722_v19 = vpop.f32.mrf.mxu2 }
  0xb9   : > { %v723_v29 = vadd.f32 %v722_v19, %v709_v24  ;;  %v736_v31 = vpop.f32.mrf.mxu3 }
  0xbb   : > { %v737_v33 = vadd.f32 %v736_v31, %v723_v29 }
  0xc0   : > { %v776_v28 = vpop.f32.mrf.mxu2 }
  0xc8   : > { %v748_v25 = vpop.f32.mrf.mxu0  ;;  %v778_v39 = vpop.f32.mrf.mxu2 }
  0xc9   : > { %v762_v26 = vpop.f32.mrf.mxu1  ;;  %v749_v27 = vadd.f32 %v748_v25, %v735_v23 }
  0xcb   : > { %v763_v30 = vadd.f32 %v762_v26, %v749_v27 }
  0xcd   : > { %v777_v32 = vadd.f32 %v776_v28, %v763_v30 }
  0xcf   : > { %v781_v34 = vmul.f32 %v777_v32, %v777_v32 }
  0xd0   : > { %v750_v35 = vpop.f32.mrf.mxu0 }
  0xd1   : > { %v751_v36 = vadd.f32 %v750_v35, %v737_v33  ;;  %1143 = vmatmul.msk.f32.vlgmr.msrb.gmra.mxu3 %vm679_vm0, %v781_v34  ;;  %v764_v37 = vpop.f32.mrf.mxu1 }
  0xd3   : > { %v765_v38 = vadd.f32 %v764_v37, %v751_v36 }
  0xd5   : > { %v779_v40 = vadd.f32 %v778_v39, %v765_v38 }
  0xd7   : > { %v782_v41 = vmul.f32 %v779_v40, %v779_v40 }
  0xd9   : > { %1144 = vmatmul.msk.f32.gmra.mxu3 %vm679_vm0, %v782_v41 }
 0x154   : > { %v814_v43 = vpop.f32.mrf.mxu3 }
 0x155   : > { %v815_v44 = vadd.f32 %v1214_v42, %v814_v43 }
 0x157   : > { %v820_v45 = vmax.f32 %v815_v44, 1e-12 }
 0x159   : > { %1215 = vrsqrt.f32 %v820_v45  ;;  %vm828_vm2 = vweird.f32 %v820_v45 }
 0x15c   : > { %v817_v46 = vpop.f32.mrf.mxu3 }
 0x15d   : > { %v818_v47 = vadd.f32 %v1214_v42, %v817_v46 }
 0x15f   : > { %v1216_v48 = vpop.eup %1215  ;;  %v821_v49 = vmax.f32 %v818_v47, 1e-12 }
 0x160   : > { %v823_v50 = vmul.f32 %v1216_v48, %v820_v45  ;;  %vm829_vm1 = vweird.f32 %v1216_v48 }
 0x161   : > { %1217 = vrsqrt.f32 %v821_v49  ;;  %vm830_vm3 = vmor %vm828_vm2, %vm829_vm1  ;;  %vm838_vm6 = vweird.f32 %v821_v49 }
 0x162   : > { %v824_v51 = vmul.f32 %v1216_v48, %v823_v50 }
 0x164   : > { %v825_v52 = vmul.f32 0.5, %v824_v51 }
 0x166   : > { %v826_v53 = vsub.f32 1.5, %v825_v52 }
 0x167   : > { %v1218_v54 = vpop.eup %1217 }
 0x168   : > { %v827_v55 = vmul.f32 %v1216_v48, %v826_v53  ;;  %v833_v56 = vmul.f32 %v1218_v54, %v821_v49  ;;  %vm839_vm5 = vweird.f32 %v1218_v54 }
 0x169   : > { %vm840_vm7 = vmor %vm838_vm6, %vm839_vm5 }
 0x16a   : > { %v831_v57 = vsel %vm830_vm3, %v1216_v48, %v827_v55  ;;  %v834_v58 = vmul.f32 %v1218_v54, %v833_v56 }
 0x16b   : > { %v842_v59 = vmul.f32 %v831_v57, %v777_v32 }
 0x16c   : > { %v835_v60 = vmul.f32 0.5, %v834_v58 }
 0x16d   : > { %v844_v61 = vpack.c.bf16 %v842_v59, %v842_v59 }
 0x16e   : > { %v836_v62 = vsub.f32 1.5, %v835_v60 }
 0x16f   : > { %847 = vst.msk [vmem:[%s229_s26] sm:$0xf] %vm846_vm4, %v844_v61 }
 0x170   : > { %v837_v63 = vmul.f32 %v1218_v54, %v836_v62 }
 0x172   : > { %v841_v0 = vsel %vm840_vm7, %v1218_v54, %v837_v63 }
 0x173   : > { %v843_v1 = vmul.f32 %v841_v0, %v779_v40 }
 0x175   : > { %v845_v2 = vpack.c.bf16 %v843_v1, %v843_v1 }
 0x177   : > { %848 = vst.msk [vmem:[%s229_s26 + $0x4] sm:$0xf] %vm846_vm4, %v845_v2 }
 0x178 PF: > { %s15_s18 = sadd.s32 1, %s1225_s18  }
 0x179   : > { %p12_p4 = scmp.ge.s32.totalorder %s15_s18, 4  }
 0x17b   :  { %14 = sbr.rel (!%p12_p4) target bundleno = 1 (0x1), region = 70 }

// kernel: reverse
= control target key start
LH: loop header
LB: loop body
LE: loop exit
PB: predicated region body
PF: predicated region fallthrough
CT: control target
= control target key end

     0   :  { %s9909_s0 = inlined_call_operand.vmem [shape: bf16[5,5,32,800], index: 0, kind: input, shape index: {}]   ;;  %s9910_s1 = inlined_call_operand.vmem [shape: bf16[5,5,32,800], index: 1, kind: output, shape index: {}]  }
   0x1   :  { %v7199_v0 = vld [vmem:[%s9909_s0 + $0xa80] sm:$0xff]  ;;  %v7200_v1 = vld [vmem:[%s9909_s0 + $0x850] sm:$0xff]  ;;  %v7249_v50 = vld [vmem:[%s9909_s0 + $0xab8] sm:$0xff] }
   0x2   :  { %v7201_v2 = vld [vmem:[%s9909_s0 + $0x620] sm:$0xff]  ;;  %v7202_v3 = vld [vmem:[%s9909_s0 + $0x3f0] sm:$0xff]  ;;  %5004 = vst [vmem:[%s9910_s1] sm:$0xff] %v7199_v0  ;;  %v7250_v51 = vld [vmem:[%s9909_s0 + $0x888] sm:$0xff] }
   0x3   :  { %v7203_v4 = vld [vmem:[%s9909_s0 + $0x1c0] sm:$0xff]  ;;  %5010 = vst [vmem:[%s9910_s1 + $0x230] sm:$0xff] %v7200_v1  ;;  %v7204_v5 = vld [vmem:[%s9909_s0 + $0xa10] sm:$0xff]  ;;  %v7251_v52 = vld [vmem:[%s9909_s0 + $0x658] sm:$0xff] }
   0x4   :  { %5016 = vst [vmem:[%s9910_s1 + $0x460] sm:$0xff] %v7201_v2  ;;  %v7205_v6 = vld [vmem:[%s9909_s0 + $0x7e0] sm:$0xff]  ;;  %v7206_v7 = vld [vmem:[%s9909_s0 + $0x5b0] sm:$0xff]  ;;  %v7252_v53 = vld [vmem:[%s9909_s0 + $0x428] sm:$0xff] }
   0x5   :  { %5022 = vst [vmem:[%s9910_s1 + $0x690] sm:$0xff] %v7202_v3  ;;  %v7207_v8 = vld [vmem:[%s9909_s0 + $0x380] sm:$0xff]  ;;  %v7208_v9 = vld [vmem:[%s9909_s0 + $0x150] sm:$0xff]  ;;  %v7253_v54 = vld [vmem:[%s9909_s0 + $0x1f8] sm:$0xff] }
   0x6   :  { %5028 = vst [vmem:[%s9910_s1 + $0x8c0] sm:$0xff] %v7203_v4  ;;  %v7209_v10 = vld [vmem:[%s9909_s0 + $0x9a0] sm:$0xff]  ;;  %v7210_v11 = vld [vmem:[%s9909_s0 + $0x770] sm:$0xff]  ;;  %v7254_v55 = vld [vmem:[%s9909_s0 + $0xa48] sm:$0xff] }
   0x7   :  { %5034 = vst [vmem:[%s9910_s1 + $0x70] sm:$0xff] %v7204_v5  ;;  %v7211_v12 = vld [vmem:[%s9909_s0 + $0x540] sm:$0xff]  ;;  %v7212_v13 = vld [vmem:[%s9909_s0 + $0x310] sm:$0xff]  ;;  %v7255_v56 = vld [vmem:[%s9909_s0 + $0x818] sm:$0xff] }
   0x8   :  { %5040 = vst [vmem:[%s9910_s1 + $0x2a0] sm:$0xff] %v7205_v6  ;;  %v7213_v14 = vld [vmem:[%s9909_s0 + $0xe0] sm:$0xff]  ;;  %v7214_v15 = vld [vmem:[%s9909_s0 + $0x930] sm:$0xff]  ;;  %v7256_v57 = vld [vmem:[%s9909_s0 + $0x5e8] sm:$0xff] }
   0x9   :  { %5046 = vst [vmem:[%s9910_s1 + $0x4d0] sm:$0xff] %v7206_v7  ;;  %v7215_v16 = vld [vmem:[%s9909_s0 + $0x700] sm:$0xff]  ;;  %v7216_v17 = vld [vmem:[%s9909_s0 + $0x4d0] sm:$0xff]  ;;  %v7257_v58 = vld [vmem:[%s9909_s0 + $0x3b8] sm:$0xff] }
   0xa   :  { %5052 = vst [vmem:[%s9910_s1 + $0x700] sm:$0xff] %v7207_v8  ;;  %v7217_v18 = vld [vmem:[%s9909_s0 + $0x2a0] sm:$0xff]  ;;  %v7218_v19 = vld [vmem:[%s9909_s0 + $0x70] sm:$0xff]  ;;  %v7258_v59 = vld [vmem:[%s9909_s0 + $0x188] sm:$0xff] }
   0xb   :  { %5058 = vst [vmem:[%s9910_s1 + $0x930] sm:$0xff] %v7208_v9  ;;  %v7219_v20 = vld [vmem:[%s9909_s0 + $0x8c0] sm:$0xff]  ;;  %v7220_v21 = vld [vmem:[%s9909_s0 + $0x690] sm:$0xff]  ;;  %v7259_v60 = vld [vmem:[%s9909_s0 + $0x9d8] sm:$0xff] }
   0xc   :  { %5064 = vst [vmem:[%s9910_s1 + $0xe0] sm:$0xff] %v7209_v10  ;;  %v7221_v22 = vld [vmem:[%s9909_s0 + $0x460] sm:$0xff]  ;;  %v7222_v23 = vld [vmem:[%s9909_s0 + $0x230] sm:$0xff]  ;;  %v7260_v61 = vld [vmem:[%s9909_s0 + $0x7a8] sm:$0xff] }
   0xd   :  { %5070 = vst [vmem:[%s9910_s1 + $0x310] sm:$0xff] %v7210_v11  ;;  %v7223_v24 = vld [vmem:[%s9909_s0] sm:$0xff]  ;;  %v7225_v26 = vld [vmem:[%s9909_s0 + $0x86c] sm:$0xff]  ;;  %v7261_v62 = vld [vmem:[%s9909_s0 + $0x578] sm:$0xff] }
   0xe   :  { %5076 = vst [vmem:[%s9910_s1 + $0x540] sm:$0xff] %v7211_v12  ;;  %v7224_v25 = vld [vmem:[%s9909_s0 + $0xa9c] sm:$0xff]  ;;  %v7227_v28 = vld [vmem:[%s9909_s0 + $0x40c] sm:$0xff]  ;;  %v7274_v11 = vld [vmem:[%s9909_s0 + $0xad4] sm:$0xff] }
   0xf   :  { %5082 = vst [vmem:[%s9910_s1 + $0x770] sm:$0xff] %v7212_v13  ;;  %v7226_v27 = vld [vmem:[%s9909_s0 + $0x63c] sm:$0xff]  ;;  %v7229_v30 = vld [vmem:[%s9909_s0 + $0xa2c] sm:$0xff]  ;;  %v7275_v12 = vld [vmem:[%s9909_s0 + $0x8a4] sm:$0xff] }
  0x10   :  { %5088 = vst [vmem:[%s9910_s1 + $0x9a0] sm:$0xff] %v7213_v14  ;;  %v7228_v29 = vld [vmem:[%s9909_s0 + $0x1dc] sm:$0xff]  ;;  %v7231_v32 = vld [vmem:[%s9909_s0 + $0x5cc] sm:$0xff]  ;;  %v7276_v13 = vld [vmem:[%s9909_s0 + $0x674] sm:$0xff] }
  0x11   :  { %5094 = vst [vmem:[%s9910_s1 + $0x150] sm:$0xff] %v7214_v15  ;;  %v7230_v31 = vld [vmem:[%s9909_s0 + $0x7fc] sm:$0xff]  ;;  %v7233_v34 = vld [vmem:[%s9909_s0 + $0x16c] sm:$0xff]  ;;  %v7277_v14 = vld [vmem:[%s9909_s0 + $0x444] sm:$0xff] }
  0x12   :  { %5100 = vst [vmem:[%s9910_s1 + $0x380] sm:$0xff] %v7215_v16  ;;  %v7232_v33 = vld [vmem:[%s9909_s0 + $0x39c] sm:$0xff]  ;;  %v7235_v36 = vld [vmem:[%s9909_s0 + $0x78c] sm:$0xff]  ;;  %v7278_v15 = vld [vmem:[%s9909_s0 + $0x214] sm:$0xff] }
  0x13   :  { %5106 = vst [vmem:[%s9910_s1 + $0x5b0] sm:$0xff] %v7216_v17  ;;  %v7234_v35 = vld [vmem:[%s9909_s0 + $0x9bc] sm:$0xff]  ;;  %v7237_v38 = vld [vmem:[%s9909_s0 + $0x32c] sm:$0xff]  ;;  %v7279_v16 = vld [vmem:[%s9909_s0 + $0xa64] sm:$0xff] }
  0x14   :  { %5112 = vst [vmem:[%s9910_s1 + $0x7e0] sm:$0xff] %v7217_v18  ;;  %v7236_v37 = vld [vmem:[%s9909_s0 + $0x55c] sm:$0xff]  ;;  %v7239_v40 = vld [vmem:[%s9909_s0 + $0x94c] sm:$0xff]  ;;  %v7280_v17 = vld [vmem:[%s9909_s0 + $0x834] sm:$0xff] }
  0x15   :  { %5118 = vst [vmem:[%s9910_s1 + $0xa10] sm:$0xff] %v7218_v19  ;;  %v7238_v39 = vld [vmem:[%s9909_s0 + $0xfc] sm:$0xff]  ;;  %v7241_v42 = vld [vmem:[%s9909_s0 + $0x4ec] sm:$0xff]  ;;  %v7281_v18 = vld [vmem:[%s9909_s0 + $0x604] sm:$0xff] }
  0x16   :  { %5124 = vst [vmem:[%s9910_s1 + $0x1c0] sm:$0xff] %v7219_v20  ;;  %v7240_v41 = vld [vmem:[%s9909_s0 + $0x71c] sm:$0xff]  ;;  %v7243_v44 = vld [vmem:[%s9909_s0 + $0x8c] sm:$0xff]  ;;  %v7282_v19 = vld [vmem:[%s9909_s0 + $0x3d4] sm:$0xff] }
  0x17   :  { %5130 = vst [vmem:[%s9910_s1 + $0x3f0] sm:$0xff] %v7220_v21  ;;  %v7242_v43 = vld [vmem:[%s9909_s0 + $0x2bc] sm:$0xff]  ;;  %v7245_v46 = vld [vmem:[%s9909_s0 + $0x6ac] sm:$0xff]  ;;  %v7283_v20 = vld [vmem:[%s9909_s0 + $0x1a4] sm:$0xff] }
  0x18   :  { %5136 = vst [vmem:[%s9910_s1 + $0x620] sm:$0xff] %v7221_v22  ;;  %v7244_v45 = vld [vmem:[%s9909_s0 + $0x8dc] sm:$0xff]  ;;  %v7247_v48 = vld [vmem:[%s9909_s0 + $0x24c] sm:$0xff]  ;;  %v7284_v21 = vld [vmem:[%s9909_s0 + $0x9f4] sm:$0xff] }
  0x19   :  { %5142 = vst [vmem:[%s9910_s1 + $0x850] sm:$0xff] %v7222_v23  ;;  %v7246_v47 = vld [vmem:[%s9909_s0 + $0x47c] sm:$0xff]  ;;  %v7262_v63 = vld [vmem:[%s9909_s0 + $0x348] sm:$0xff]  ;;  %v7286_v23 = vld [vmem:[%s9909_s0 + $0x594] sm:$0xff] }
  0x1a   :  { %5148 = vst [vmem:[%s9910_s1 + $0xa80] sm:$0xff] %v7223_v24  ;;  %v7248_v49 = vld [vmem:[%s9909_s0 + $0x1c] sm:$0xff]  ;;  %v7264_v1 = vld [vmem:[%s9909_s0 + $0x968] sm:$0xff] }
  0x1b   :  { %5154 = vst [vmem:[%s9910_s1 + $0x1c] sm:$0xff] %v7224_v25  ;;  %v7263_v0 = vld [vmem:[%s9909_s0 + $0x118] sm:$0xff]  ;;  %v7266_v3 = vld [vmem:[%s9909_s0 + $0x508] sm:$0xff] }
  0x1c   :  { %5160 = vst [vmem:[%s9910_s1 + $0x24c] sm:$0xff] %v7225_v26  ;;  %v7265_v2 = vld [vmem:[%s9909_s0 + $0x738] sm:$0xff]  ;;  %v7268_v5 = vld [vmem:[%s9909_s0 + $0xa8] sm:$0xff] }
  0x1d   :  { %5166 = vst [vmem:[%s9910_s1 + $0x47c] sm:$0xff] %v7226_v27  ;;  %v7267_v4 = vld [vmem:[%s9909_s0 + $0x2d8] sm:$0xff]  ;;  %v7270_v7 = vld [vmem:[%s9909_s0 + $0x6c8] sm:$0xff] }
  0x1e   :  { %5172 = vst [vmem:[%s9910_s1 + $0x6ac] sm:$0xff] %v7227_v28  ;;  %v7269_v6 = vld [vmem:[%s9909_s0 + $0x8f8] sm:$0xff]  ;;  %v7272_v9 = vld [vmem:[%s9909_s0 + $0x268] sm:$0xff] }
  0x1f   :  { %5178 = vst [vmem:[%s9910_s1 + $0x8dc] sm:$0xff] %v7228_v29  ;;  %v7271_v8 = vld [vmem:[%s9909_s0 + $0x498] sm:$0xff]  ;;  %v7285_v22 = vld [vmem:[%s9909_s0 + $0x7c4] sm:$0xff] }
  0x20   :  { %5184 = vst [vmem:[%s9910_s1 + $0x8c] sm:$0xff] %v7229_v30  ;;  %v7273_v10 = vld [vmem:[%s9909_s0 + $0x38] sm:$0xff]  ;;  %v7287_v24 = vld [vmem:[%s9909_s0 + $0x364] sm:$0xff] }
  0x21   :  { %5190 = vst [vmem:[%s9910_s1 + $0x2bc] sm:$0xff] %v7230_v31  ;;  %v7288_v25 = vld [vmem:[%s9909_s0 + $0x134] sm:$0xff]  ;;  %v7289_v26 = vld [vmem:[%s9909_s0 + $0x984] sm:$0xff] }
  0x22   :  { %5196 = vst [vmem:[%s9910_s1 + $0x4ec] sm:$0xff] %v7231_v32  ;;  %v7290_v27 = vld [vmem:[%s9909_s0 + $0x754] sm:$0xff]  ;;  %v7291_v28 = vld [vmem:[%s9909_s0 + $0x524] sm:$0xff] }
  0x23   :  { %5202 = vst [vmem:[%s9910_s1 + $0x71c] sm:$0xff] %v7232_v33  ;;  %v7292_v29 = vld [vmem:[%s9909_s0 + $0x2f4] sm:$0xff]  ;;  %v7293_v30 = vld [vmem:[%s9909_s0 + $0xc4] sm:$0xff] }
  0x24   :  { %5208 = vst [vmem:[%s9910_s1 + $0x94c] sm:$0xff] %v7233_v34  ;;  %v7294_v31 = vld [vmem:[%s9909_s0 + $0x914] sm:$0xff]  ;;  %v7295_v32 = vld [vmem:[%s9909_s0 + $0x6e4] sm:$0xff] }
  0x25   :  { %5214 = vst [vmem:[%s9910_s1 + $0xfc] sm:$0xff] %v7234_v35  ;;  %v7296_v33 = vld [vmem:[%s9909_s0 + $0x4b4] sm:$0xff]  ;;  %v7297_v34 = vld [vmem:[%s9909_s0 + $0x284] sm:$0xff] }
  0x26   :  { %5220 = vst [vmem:[%s9910_s1 + $0x32c] sm:$0xff] %v7235_v36  ;;  %v7298_v35 = vld [vmem:[%s9909_s0 + $0x54] sm:$0xff]  ;;  %v7299_v36 = vld [vmem:[%s9909_s0 + $0xa88] sm:$0xff] }
  0x27   :  { %5226 = vst [vmem:[%s9910_s1 + $0x55c] sm:$0xff] %v7236_v37  ;;  %v7300_v37 = vld [vmem:[%s9909_s0 + $0x858] sm:$0xff] }
  0x28   :  { %5232 = vst [vmem:[%s9910_s1 + $0x78c] sm:$0xff] %v7237_v38  ;;  %v7301_v38 = vld [vmem:[%s9909_s0 + $0x628] sm:$0xff] }
  0x29   :  { %5238 = vst [vmem:[%s9910_s1 + $0x9bc] sm:$0xff] %v7238_v39  ;;  %v7302_v39 = vld [vmem:[%s9909_s0 + $0x3f8] sm:$0xff] }
  0x2a   :  { %5244 = vst [vmem:[%s9910_s1 + $0x16c] sm:$0xff] %v7239_v40  ;;  %v7303_v40 = vld [vmem:[%s9909_s0 + $0x1c8] sm:$0xff] }
  0x2b   :  { %5250 = vst [vmem:[%s9910_s1 + $0x39c] sm:$0xff] %v7240_v41  ;;  %v7304_v41 = vld [vmem:[%s9909_s0 + $0xa18] sm:$0xff] }
  0x2c   :  { %5256 = vst [vmem:[%s9910_s1 + $0x5cc] sm:$0xff] %v7241_v42  ;;  %v7305_v42 = vld [vmem:[%s9909_s0 + $0x7e8] sm:$0xff] }
  0x2d   :  { %5262 = vst [vmem:[%s9910_s1 + $0x7fc] sm:$0xff] %v7242_v43  ;;  %v7306_v43 = vld [vmem:[%s9909_s0 + $0x5b8] sm:$0xff] }
  0x2e   :  { %5268 = vst [vmem:[%s9910_s1 + $0xa2c] sm:$0xff] %v7243_v44  ;;  %v7307_v44 = vld [vmem:[%s9909_s0 + $0x388] sm:$0xff] }
  0x2f   :  { %5274 = vst [vmem:[%s9910_s1 + $0x1dc] sm:$0xff] %v7244_v45  ;;  %v7308_v45 = vld [vmem:[%s9909_s0 + $0x158] sm:$0xff] }
  0x30   :  { %5280 = vst [vmem:[%s9910_s1 + $0x40c] sm:$0xff] %v7245_v46  ;;  %v7309_v46 = vld [vmem:[%s9909_s0 + $0x9a8] sm:$0xff] }
  0x31   :  { %5286 = vst [vmem:[%s9910_s1 + $0x63c] sm:$0xff] %v7246_v47  ;;  %v7310_v47 = vld [vmem:[%s9909_s0 + $0x778] sm:$0xff] }
  0x32   :  { %5292 = vst [vmem:[%s9910_s1 + $0x86c] sm:$0xff] %v7247_v48  ;;  %v7311_v48 = vld [vmem:[%s9909_s0 + $0x548] sm:$0xff] }
  0x33   :  { %5298 = vst [vmem:[%s9910_s1 + $0xa9c] sm:$0xff] %v7248_v49  ;;  %v7312_v49 = vld [vmem:[%s9909_s0 + $0x318] sm:$0xff] }
  0x34   :  { %5304 = vst [vmem:[%s9910_s1 + $0x38] sm:$0xff] %v7249_v50  ;;  %v7313_v50 = vld [vmem:[%s9909_s0 + $0xe8] sm:$0xff] }
  0x35   :  { %5310 = vst [vmem:[%s9910_s1 + $0x268] sm:$0xff] %v7250_v51  ;;  %v7314_v51 = vld [vmem:[%s9909_s0 + $0x938] sm:$0xff] }
  0x36   :  { %5316 = vst [vmem:[%s9910_s1 + $0x498] sm:$0xff] %v7251_v52  ;;  %v7315_v52 = vld [vmem:[%s9909_s0 + $0x708] sm:$0xff] }
  0x37   :  { %5322 = vst [vmem:[%s9910_s1 + $0x6c8] sm:$0xff] %v7252_v53  ;;  %v7316_v53 = vld [vmem:[%s9909_s0 + $0x4d8] sm:$0xff] }
  0x38   :  { %5328 = vst [vmem:[%s9910_s1 + $0x8f8] sm:$0xff] %v7253_v54  ;;  %v7317_v54 = vld [vmem:[%s9909_s0 + $0x2a8] sm:$0xff] }
  0x39   :  { %5334 = vst [vmem:[%s9910_s1 + $0xa8] sm:$0xff] %v7254_v55  ;;  %v7318_v55 = vld [vmem:[%s9909_s0 + $0x78] sm:$0xff] }
  0x3a   :  { %5340 = vst [vmem:[%s9910_s1 + $0x2d8] sm:$0xff] %v7255_v56  ;;  %v7319_v56 = vld [vmem:[%s9909_s0 + $0x8c8] sm:$0xff] }
  0x3b   :  { %5346 = vst [vmem:[%s9910_s1 + $0x508] sm:$0xff] %v7256_v57  ;;  %v7320_v57 = vld [vmem:[%s9909_s0 + $0x698] sm:$0xff] }
  0x3c   :  { %5352 = vst [vmem:[%s9910_s1 + $0x738] sm:$0xff] %v7257_v58  ;;  %v7321_v58 = vld [vmem:[%s9909_s0 + $0x468] sm:$0xff] }
  0x3d   :  { %5358 = vst [vmem:[%s9910_s1 + $0x968] sm:$0xff] %v7258_v59  ;;  %v7322_v59 = vld [vmem:[%s9909_s0 + $0x238] sm:$0xff] }
  0x3e   :  { %5364 = vst [vmem:[%s9910_s1 + $0x118] sm:$0xff] %v7259_v60  ;;  %v7323_v60 = vld [vmem:[%s9909_s0 + $0x8] sm:$0xff] }
  0x3f   :  { %5370 = vst [vmem:[%s9910_s1 + $0x348] sm:$0xff] %v7260_v61  ;;  %v7324_v61 = vld [vmem:[%s9909_s0 + $0xaa4] sm:$0xff] }
  0x40   :  { %5376 = vst [vmem:[%s9910_s1 + $0x578] sm:$0xff] %v7261_v62  ;;  %v7325_v62 = vld [vmem:[%s9909_s0 + $0x874] sm:$0xff] }
  0x41   :  { %5382 = vst [vmem:[%s9910_s1 + $0x7a8] sm:$0xff] %v7262_v63  ;;  %v7326_v63 = vld [vmem:[%s9909_s0 + $0x644] sm:$0xff] }
  0x42   :  { %5388 = vst [vmem:[%s9910_s1 + $0x9d8] sm:$0xff] %v7263_v0  ;;  %v7327_v0 = vld [vmem:[%s9909_s0 + $0x414] sm:$0xff] }
  0x43   :  { %5394 = vst [vmem:[%s9910_s1 + $0x188] sm:$0xff] %v7264_v1  ;;  %v7328_v1 = vld [vmem:[%s9909_s0 + $0x1e4] sm:$0xff] }
  0x44   :  { %5400 = vst [vmem:[%s9910_s1 + $0x3b8] sm:$0xff] %v7265_v2  ;;  %v7329_v2 = vld [vmem:[%s9909_s0 + $0xa34] sm:$0xff] }
  0x45   :  { %5406 = vst [vmem:[%s9910_s1 + $0x5e8] sm:$0xff] %v7266_v3  ;;  %v7330_v3 = vld [vmem:[%s9909_s0 + $0x804] sm:$0xff] }
  0x46   :  { %5412 = vst [vmem:[%s9910_s1 + $0x818] sm:$0xff] %v7267_v4  ;;  %v7331_v4 = vld [vmem:[%s9909_s0 + $0x5d4] sm:$0xff] }
  0x47   :  { %5418 = vst [vmem:[%s9910_s1 + $0xa48] sm:$0xff] %v7268_v5  ;;  %v7332_v5 = vld [vmem:[%s9909_s0 + $0x3a4] sm:$0xff] }
  0x48   :  { %5424 = vst [vmem:[%s9910_s1 + $0x1f8] sm:$0xff] %v7269_v6  ;;  %v7333_v6 = vld [vmem:[%s9909_s0 + $0x174] sm:$0xff] }
  0x49   :  { %5430 = vst [vmem:[%s9910_s1 + $0x428] sm:$0xff] %v7270_v7  ;;  %v7334_v7 = vld [vmem:[%s9909_s0 + $0x9c4] sm:$0xff] }
  0x4a   :  { %5436 = vst [vmem:[%s9910_s1 + $0x658] sm:$0xff] %v7271_v8  ;;  %v7335_v8 = vld [vmem:[%s9909_s0 + $0x794] sm:$0xff] }
  0x4b   :  { %5442 = vst [vmem:[%s9910_s1 + $0x888] sm:$0xff] %v7272_v9  ;;  %v7336_v9 = vld [vmem:[%s9909_s0 + $0x564] sm:$0xff] }
  0x4c   :  { %5448 = vst [vmem:[%s9910_s1 + $0xab8] sm:$0xff] %v7273_v10  ;;  %v7337_v10 = vld [vmem:[%s9909_s0 + $0x334] sm:$0xff] }
  0x4d   :  { %5454 = vst [vmem:[%s9910_s1 + $0x54] sm:$0xff] %v7274_v11  ;;  %v7338_v11 = vld [vmem:[%s9909_s0 + $0x104] sm:$0xff] }
  0x4e   :  { %5460 = vst [vmem:[%s9910_s1 + $0x284] sm:$0xff] %v7275_v12  ;;  %v7339_v12 = vld [vmem:[%s9909_s0 + $0x954] sm:$0xff] }
  0x4f   :  { %5466 = vst [vmem:[%s9910_s1 + $0x4b4] sm:$0xff] %v7276_v13  ;;  %v7340_v13 = vld [vmem:[%s9909_s0 + $0x724] sm:$0xff] }
  0x50   :  { %5472 = vst [vmem:[%s9910_s1 + $0x6e4] sm:$0xff] %v7277_v14  ;;  %v7341_v14 = vld [vmem:[%s9909_s0 + $0x4f4] sm:$0xff] }
  0x51   :  { %5478 = vst [vmem:[%s9910_s1 + $0x914] sm:$0xff] %v7278_v15  ;;  %v7342_v15 = vld [vmem:[%s9909_s0 + $0x2c4] sm:$0xff] }
  0x52   :  { %5484 = vst [vmem:[%s9910_s1 + $0xc4] sm:$0xff] %v7279_v16  ;;  %v7343_v16 = vld [vmem:[%s9909_s0 + $0x94] sm:$0xff] }
  0x53   :  { %5490 = vst [vmem:[%s9910_s1 + $0x2f4] sm:$0xff] %v7280_v17  ;;  %v7344_v17 = vld [vmem:[%s9909_s0 + $0x8e4] sm:$0xff] }
  0x54   :  { %5496 = vst [vmem:[%s9910_s1 + $0x524] sm:$0xff] %v7281_v18  ;;  %v7345_v18 = vld [vmem:[%s9909_s0 + $0x6b4] sm:$0xff] }
  0x55   :  { %5502 = vst [vmem:[%s9910_s1 + $0x754] sm:$0xff] %v7282_v19  ;;  %v7346_v19 = vld [vmem:[%s9909_s0 + $0x484] sm:$0xff] }
  0x56   :  { %5508 = vst [vmem:[%s9910_s1 + $0x984] sm:$0xff] %v7283_v20  ;;  %v7347_v20 = vld [vmem:[%s9909_s0 + $0x254] sm:$0xff] }
  0x57   :  { %5514 = vst [vmem:[%s9910_s1 + $0x134] sm:$0xff] %v7284_v21  ;;  %v7348_v21 = vld [vmem:[%s9909_s0 + $0x24] sm:$0xff] }
  0x58   :  { %5520 = vst [vmem:[%s9910_s1 + $0x364] sm:$0xff] %v7285_v22  ;;  %v7349_v22 = vld [vmem:[%s9909_s0 + $0xac0] sm:$0xff] }
  0x59   :  { %5526 = vst [vmem:[%s9910_s1 + $0x594] sm:$0xff] %v7286_v23  ;;  %v7350_v23 = vld [vmem:[%s9909_s0 + $0x890] sm:$0xff] }
  0x5a   :  { %5532 = vst [vmem:[%s9910_s1 + $0x7c4] sm:$0xff] %v7287_v24  ;;  %v7351_v24 = vld [vmem:[%s9909_s0 + $0x660] sm:$0xff] }
  0x5b   :  { %5538 = vst [vmem:[%s9910_s1 + $0x9f4] sm:$0xff] %v7288_v25  ;;  %v7352_v25 = vld [vmem:[%s9909_s0 + $0x430] sm:$0xff] }
  0x5c   :  { %5544 = vst [vmem:[%s9910_s1 + $0x1a4] sm:$0xff] %v7289_v26  ;;  %v7353_v26 = vld [vmem:[%s9909_s0 + $0x200] sm:$0xff] }
  0x5d   :  { %5550 = vst [vmem:[%s9910_s1 + $0x3d4] sm:$0xff] %v7290_v27  ;;  %v7354_v27 = vld [vmem:[%s9909_s0 + $0xa50] sm:$0xff] }
  0x5e   :  { %5556 = vst [vmem:[%s9910_s1 + $0x604] sm:$0xff] %v7291_v28  ;;  %v7355_v28 = vld [vmem:[%s9909_s0 + $0x820] sm:$0xff] }
  0x5f   :  { %5562 = vst [vmem:[%s9910_s1 + $0x834] sm:$0xff] %v7292_v29  ;;  %v7356_v29 = vld [vmem:[%s9909_s0 + $0x5f0] sm:$0xff] }
  0x60   :  { %5568 = vst [vmem:[%s9910_s1 + $0xa64] sm:$0xff] %v7293_v30  ;;  %v7357_v30 = vld [vmem:[%s9909_s0 + $0x3c0] sm:$0xff] }
  0x61   :  { %5574 = vst [vmem:[%s9910_s1 + $0x214] sm:$0xff] %v7294_v31  ;;  %v7358_v31 = vld [vmem:[%s9909_s0 + $0x190] sm:$0xff] }
  0x62   :  { %5580 = vst [vmem:[%s9910_s1 + $0x444] sm:$0xff] %v7295_v32  ;;  %v7359_v32 = vld [vmem:[%s9909_s0 + $0x9e0] sm:$0xff] }
  0x63   :  { %5586 = vst [vmem:[%s9910_s1 + $0x674] sm:$0xff] %v7296_v33  ;;  %v7360_v33 = vld [vmem:[%s9909_s0 + $0x7b0] sm:$0xff] }
  0x64   :  { %5592 = vst [vmem:[%s9910_s1 + $0x8a4] sm:$0xff] %v7297_v34  ;;  %v7361_v34 = vld [vmem:[%s9909_s0 + $0x580] sm:$0xff] }
  0x65   :  { %5598 = vst [vmem:[%s9910_s1 + $0xad4] sm:$0xff] %v7298_v35  ;;  %v7362_v35 = vld [vmem:[%s9909_s0 + $0x350] sm:$0xff] }
  0x66   :  { %5704 = vst [vmem:[%s9910_s1 + $0x8] sm:$0xff] %v7299_v36  ;;  %v7363_v36 = vld [vmem:[%s9909_s0 + $0x120] sm:$0xff] }
  0x67   :  { %5710 = vst [vmem:[%s9910_s1 + $0x238] sm:$0xff] %v7300_v37  ;;  %v7364_v37 = vld [vmem:[%s9909_s0 + $0x970] sm:$0xff] }
  0x68   :  { %5716 = vst [vmem:[%s9910_s1 + $0x468] sm:$0xff] %v7301_v38  ;;  %v7365_v38 = vld [vmem:[%s9909_s0 + $0x740] sm:$0xff] }
  0x69   :  { %5722 = vst [vmem:[%s9910_s1 + $0x698] sm:$0xff] %v7302_v39  ;;  %v7366_v39 = vld [vmem:[%s9909_s0 + $0x510] sm:$0xff] }
  0x6a   :  { %5728 = vst [vmem:[%s9910_s1 + $0x8c8] sm:$0xff] %v7303_v40  ;;  %v7367_v40 = vld [vmem:[%s9909_s0 + $0x2e0] sm:$0xff] }
  0x6b   :  { %5734 = vst [vmem:[%s9910_s1 + $0x78] sm:$0xff] %v7304_v41  ;;  %v7368_v41 = vld [vmem:[%s9909_s0 + $0xb0] sm:$0xff] }
  0x6c   :  { %5740 = vst [vmem:[%s9910_s1 + $0x2a8] sm:$0xff] %v7305_v42  ;;  %v7369_v42 = vld [vmem:[%s9909_s0 + $0x900] sm:$0xff] }
  0x6d   :  { %5746 = vst [vmem:[%s9910_s1 + $0x4d8] sm:$0xff] %v7306_v43  ;;  %v7370_v43 = vld [vmem:[%s9909_s0 + $0x6d0] sm:$0xff] }
  0x6e   :  { %5752 = vst [vmem:[%s9910_s1 + $0x708] sm:$0xff] %v7307_v44  ;;  %v7371_v44 = vld [vmem:[%s9909_s0 + $0x4a0] sm:$0xff] }
  0x6f   :  { %5758 = vst [vmem:[%s9910_s1 + $0x938] sm:$0xff] %v7308_v45  ;;  %v7372_v45 = vld [vmem:[%s9909_s0 + $0x270] sm:$0xff] }
  0x70   :  { %5764 = vst [vmem:[%s9910_s1 + $0xe8] sm:$0xff] %v7309_v46  ;;  %v7373_v46 = vld [vmem:[%s9909_s0 + $0x40] sm:$0xff] }
  0x71   :  { %5770 = vst [vmem:[%s9910_s1 + $0x318] sm:$0xff] %v7310_v47  ;;  %v7374_v47 = vld [vmem:[%s9909_s0 + $0xadc] sm:$0xff] }
  0x72   :  { %5776 = vst [vmem:[%s9910_s1 + $0x548] sm:$0xff] %v7311_v48  ;;  %v7375_v48 = vld [vmem:[%s9909_s0 + $0x8ac] sm:$0xff] }
  0x73   :  { %5782 = vst [vmem:[%s9910_s1 + $0x778] sm:$0xff] %v7312_v49  ;;  %v7376_v49 = vld [vmem:[%s9909_s0 + $0x67c] sm:$0xff] }
  0x74   :  { %5788 = vst [vmem:[%s9910_s1 + $0x9a8] sm:$0xff] %v7313_v50  ;;  %v7377_v50 = vld [vmem:[%s9909_s0 + $0x44c] sm:$0xff] }
  0x75   :  { %5794 = vst [vmem:[%s9910_s1 + $0x158] sm:$0xff] %v7314_v51  ;;  %v7378_v51 = vld [vmem:[%s9909_s0 + $0x21c] sm:$0xff] }
  0x76   :  { %5800 = vst [vmem:[%s9910_s1 + $0x388] sm:$0xff] %v7315_v52  ;;  %v7379_v52 = vld [vmem:[%s9909_s0 + $0xa6c] sm:$0xff] }
  0x77   :  { %5806 = vst [vmem:[%s9910_s1 + $0x5b8] sm:$0xff] %v7316_v53  ;;  %v7380_v53 = vld [vmem:[%s9909_s0 + $0x83c] sm:$0xff] }
  0x78   :  { %5812 = vst [vmem:[%s9910_s1 + $0x7e8] sm:$0xff] %v7317_v54  ;;  %v7381_v54 = vld [vmem:[%s9909_s0 + $0x60c] sm:$0xff] }
  0x79   :  { %5818 = vst [vmem:[%s9910_s1 + $0xa18] sm:$0xff] %v7318_v55  ;;  %v7382_v55 = vld [vmem:[%s9909_s0 + $0x3dc] sm:$0xff] }
  0x7a   :  { %5824 = vst [vmem:[%s9910_s1 + $0x1c8] sm:$0xff] %v7319_v56  ;;  %v7383_v56 = vld [vmem:[%s9909_s0 + $0x1ac] sm:$0xff] }
  0x7b   :  { %5830 = vst [vmem:[%s9910_s1 + $0x3f8] sm:$0xff] %v7320_v57  ;;  %v7384_v57 = vld [vmem:[%s9909_s0 + $0x9fc] sm:$0xff] }
  0x7c   :  { %5836 = vst [vmem:[%s9910_s1 + $0x628] sm:$0xff] %v7321_v58  ;;  %v7385_v58 = vld [vmem:[%s9909_s0 + $0x7cc] sm:$0xff] }
  0x7d   :  { %5842 = vst [vmem:[%s9910_s1 + $0x858] sm:$0xff] %v7322_v59  ;;  %v7386_v59 = vld [vmem:[%s9909_s0 + $0x59c] sm:$0xff] }
  0x7e   :  { %5848 = vst [vmem:[%s9910_s1 + $0xa88] sm:$0xff] %v7323_v60  ;;  %v7387_v60 = vld [vmem:[%s9909_s0 + $0x36c] sm:$0xff] }
  0x7f   :  { %5854 = vst [vmem:[%s9910_s1 + $0x24] sm:$0xff] %v7324_v61  ;;  %v7388_v61 = vld [vmem:[%s9909_s0 + $0x13c] sm:$0xff] }
  0x80   :  { %5860 = vst [vmem:[%s9910_s1 + $0x254] sm:$0xff] %v7325_v62  ;;  %v7389_v62 = vld [vmem:[%s9909_s0 + $0x98c] sm:$0xff] }
  0x81   :  { %5866 = vst [vmem:[%s9910_s1 + $0x484] sm:$0xff] %v7326_v63  ;;  %v7390_v63 = vld [vmem:[%s9909_s0 + $0x75c] sm:$0xff] }
  0x82   :  { %5872 = vst [vmem:[%s9910_s1 + $0x6b4] sm:$0xff] %v7327_v0  ;;  %v7391_v0 = vld [vmem:[%s9909_s0 + $0x52c] sm:$0xff] }
  0x83   :  { %5878 = vst [vmem:[%s9910_s1 + $0x8e4] sm:$0xff] %v7328_v1  ;;  %v7392_v1 = vld [vmem:[%s9909_s0 + $0x2fc] sm:$0xff] }
  0x84   :  { %5884 = vst [vmem:[%s9910_s1 + $0x94] sm:$0xff] %v7329_v2  ;;  %v7393_v2 = vld [vmem:[%s9909_s0 + $0xcc] sm:$0xff] }
  0x85   :  { %5890 = vst [vmem:[%s9910_s1 + $0x2c4] sm:$0xff] %v7330_v3  ;;  %v7394_v3 = vld [vmem:[%s9909_s0 + $0x91c] sm:$0xff] }
  0x86   :  { %5896 = vst [vmem:[%s9910_s1 + $0x4f4] sm:$0xff] %v7331_v4  ;;  %v7395_v4 = vld [vmem:[%s9909_s0 + $0x6ec] sm:$0xff] }
  0x87   :  { %5902 = vst [vmem:[%s9910_s1 + $0x724] sm:$0xff] %v7332_v5  ;;  %v7396_v5 = vld [vmem:[%s9909_s0 + $0x4bc] sm:$0xff] }
  0x88   :  { %5908 = vst [vmem:[%s9910_s1 + $0x954] sm:$0xff] %v7333_v6  ;;  %v7397_v6 = vld [vmem:[%s9909_s0 + $0x28c] sm:$0xff] }
  0x89   :  { %5914 = vst [vmem:[%s9910_s1 + $0x104] sm:$0xff] %v7334_v7  ;;  %v7398_v7 = vld [vmem:[%s9909_s0 + $0x5c] sm:$0xff] }
  0x8a   :  { %5920 = vst [vmem:[%s9910_s1 + $0x334] sm:$0xff] %v7335_v8  ;;  %v7399_v8 = vld [vmem:[%s9909_s0 + $0xa90] sm:$0xff] }
  0x8b   :  { %5926 = vst [vmem:[%s9910_s1 + $0x564] sm:$0xff] %v7336_v9  ;;  %v7400_v9 = vld [vmem:[%s9909_s0 + $0x860] sm:$0xff] }
  0x8c   :  { %5932 = vst [vmem:[%s9910_s1 + $0x794] sm:$0xff] %v7337_v10  ;;  %v7401_v10 = vld [vmem:[%s9909_s0 + $0x630] sm:$0xff] }
  0x8d   :  { %5938 = vst [vmem:[%s9910_s1 + $0x9c4] sm:$0xff] %v7338_v11  ;;  %v7402_v11 = vld [vmem:[%s9909_s0 + $0x400] sm:$0xff] }
  0x8e   :  { %5944 = vst [vmem:[%s9910_s1 + $0x174] sm:$0xff] %v7339_v12  ;;  %v7403_v12 = vld [vmem:[%s9909_s0 + $0x1d0] sm:$0xff] }
  0x8f   :  { %5950 = vst [vmem:[%s9910_s1 + $0x3a4] sm:$0xff] %v7340_v13  ;;  %v7404_v13 = vld [vmem:[%s9909_s0 + $0xa20] sm:$0xff] }
  0x90   :  { %5956 = vst [vmem:[%s9910_s1 + $0x5d4] sm:$0xff] %v7341_v14  ;;  %v7405_v14 = vld [vmem:[%s9909_s0 + $0x7f0] sm:$0xff] }
  0x91   :  { %5962 = vst [vmem:[%s9910_s1 + $0x804] sm:$0xff] %v7342_v15  ;;  %v7406_v15 = vld [vmem:[%s9909_s0 + $0x5c0] sm:$0xff] }
  0x92   :  { %5968 = vst [vmem:[%s9910_s1 + $0xa34] sm:$0xff] %v7343_v16  ;;  %v7407_v16 = vld [vmem:[%s9909_s0 + $0x390] sm:$0xff] }
  0x93   :  { %5974 = vst [vmem:[%s9910_s1 + $0x1e4] sm:$0xff] %v7344_v17  ;;  %v7408_v17 = vld [vmem:[%s9909_s0 + $0x160] sm:$0xff] }
  0x94   :  { %5980 = vst [vmem:[%s9910_s1 + $0x414] sm:$0xff] %v7345_v18  ;;  %v7409_v18 = vld [vmem:[%s9909_s0 + $0x9b0] sm:$0xff] }
  0x95   :  { %5986 = vst [vmem:[%s9910_s1 + $0x644] sm:$0xff] %v7346_v19  ;;  %v7410_v19 = vld [vmem:[%s9909_s0 + $0x780] sm:$0xff] }
  0x96   :  { %5992 = vst [vmem:[%s9910_s1 + $0x874] sm:$0xff] %v7347_v20  ;;  %v7411_v20 = vld [vmem:[%s9909_s0 + $0x550] sm:$0xff] }
  0x97   :  { %5998 = vst [vmem:[%s9910_s1 + $0xaa4] sm:$0xff] %v7348_v21  ;;  %v7412_v21 = vld [vmem:[%s9909_s0 + $0x320] sm:$0xff] }
  0x98   :  { %6004 = vst [vmem:[%s9910_s1 + $0x40] sm:$0xff] %v7349_v22  ;;  %v7413_v22 = vld [vmem:[%s9909_s0 + $0xf0] sm:$0xff] }
  0x99   :  { %6010 = vst [vmem:[%s9910_s1 + $0x270] sm:$0xff] %v7350_v23  ;;  %v7414_v23 = vld [vmem:[%s9909_s0 + $0x940] sm:$0xff] }
  0x9a   :  { %6016 = vst [vmem:[%s9910_s1 + $0x4a0] sm:$0xff] %v7351_v24  ;;  %v7415_v24 = vld [vmem:[%s9909_s0 + $0x710] sm:$0xff] }
  0x9b   :  { %6022 = vst [vmem:[%s9910_s1 + $0x6d0] sm:$0xff] %v7352_v25  ;;  %v7416_v25 = vld [vmem:[%s9909_s0 + $0x4e0] sm:$0xff] }
  0x9c   :  { %6028 = vst [vmem:[%s9910_s1 + $0x900] sm:$0xff] %v7353_v26  ;;  %v7417_v26 = vld [vmem:[%s9909_s0 + $0x2b0] sm:$0xff] }
  0x9d   :  { %6034 = vst [vmem:[%s9910_s1 + $0xb0] sm:$0xff] %v7354_v27  ;;  %v7418_v27 = vld [vmem:[%s9909_s0 + $0x80] sm:$0xff] }
  0x9e   :  { %6040 = vst [vmem:[%s9910_s1 + $0x2e0] sm:$0xff] %v7355_v28  ;;  %v7419_v28 = vld [vmem:[%s9909_s0 + $0x8d0] sm:$0xff] }
  0x9f   :  { %6046 = vst [vmem:[%s9910_s1 + $0x510] sm:$0xff] %v7356_v29  ;;  %v7420_v29 = vld [vmem:[%s9909_s0 + $0x6a0] sm:$0xff] }
  0xa0   :  { %6052 = vst [vmem:[%s9910_s1 + $0x740] sm:$0xff] %v7357_v30  ;;  %v7421_v30 = vld [vmem:[%s9909_s0 + $0x470] sm:$0xff] }
  0xa1   :  { %6058 = vst [vmem:[%s9910_s1 + $0x970] sm:$0xff] %v7358_v31  ;;  %v7422_v31 = vld [vmem:[%s9909_s0 + $0x240] sm:$0xff] }
  0xa2   :  { %6064 = vst [vmem:[%s9910_s1 + $0x120] sm:$0xff] %v7359_v32  ;;  %v7423_v32 = vld [vmem:[%s9909_s0 + $0x10] sm:$0xff] }
  0xa3   :  { %6070 = vst [vmem:[%s9910_s1 + $0x350] sm:$0xff] %v7360_v33  ;;  %v7424_v33 = vld [vmem:[%s9909_s0 + $0xaac] sm:$0xff] }
  0xa4   :  { %6076 = vst [vmem:[%s9910_s1 + $0x580] sm:$0xff] %v7361_v34  ;;  %v7425_v34 = vld [vmem:[%s9909_s0 + $0x87c] sm:$0xff] }
  0xa5   :  { %6082 = vst [vmem:[%s9910_s1 + $0x7b0] sm:$0xff] %v7362_v35  ;;  %v7426_v35 = vld [vmem:[%s9909_s0 + $0x64c] sm:$0xff] }
  0xa6   :  { %6088 = vst [vmem:[%s9910_s1 + $0x9e0] sm:$0xff] %v7363_v36  ;;  %v7427_v36 = vld [vmem:[%s9909_s0 + $0x41c] sm:$0xff] }
  0xa7   :  { %6094 = vst [vmem:[%s9910_s1 + $0x190] sm:$0xff] %v7364_v37  ;;  %v7428_v37 = vld [vmem:[%s9909_s0 + $0x1ec] sm:$0xff] }
  0xa8   :  { %6100 = vst [vmem:[%s9910_s1 + $0x3c0] sm:$0xff] %v7365_v38  ;;  %v7429_v38 = vld [vmem:[%s9909_s0 + $0xa3c] sm:$0xff] }
  0xa9   :  { %6106 = vst [vmem:[%s9910_s1 + $0x5f0] sm:$0xff] %v7366_v39  ;;  %v7430_v39 = vld [vmem:[%s9909_s0 + $0x80c] sm:$0xff] }
  0xaa   :  { %6112 = vst [vmem:[%s9910_s1 + $0x820] sm:$0xff] %v7367_v40  ;;  %v7431_v40 = vld [vmem:[%s9909_s0 + $0x5dc] sm:$0xff] }
  0xab   :  { %6118 = vst [vmem:[%s9910_s1 + $0xa50] sm:$0xff] %v7368_v41  ;;  %v7432_v41 = vld [vmem:[%s9909_s0 + $0x3ac] sm:$0xff] }
  0xac   :  { %6124 = vst [vmem:[%s9910_s1 + $0x200] sm:$0xff] %v7369_v42  ;;  %v7433_v42 = vld [vmem:[%s9909_s0 + $0x17c] sm:$0xff] }
  0xad   :  { %6130 = vst [vmem:[%s9910_s1 + $0x430] sm:$0xff] %v7370_v43  ;;  %v7434_v43 = vld [vmem:[%s9909_s0 + $0x9cc] sm:$0xff] }
  0xae   :  { %6136 = vst [vmem:[%s9910_s1 + $0x660] sm:$0xff] %v7371_v44  ;;  %v7435_v44 = vld [vmem:[%s9909_s0 + $0x79c] sm:$0xff] }
  0xaf   :  { %6142 = vst [vmem:[%s9910_s1 + $0x890] sm:$0xff] %v7372_v45  ;;  %v7436_v45 = vld [vmem:[%s9909_s0 + $0x56c] sm:$0xff] }
  0xb0   :  { %6148 = vst [vmem:[%s9910_s1 + $0xac0] sm:$0xff] %v7373_v46  ;;  %v7437_v46 = vld [vmem:[%s9909_s0 + $0x33c] sm:$0xff] }
  0xb1   :  { %6154 = vst [vmem:[%s9910_s1 + $0x5c] sm:$0xff] %v7374_v47  ;;  %v7438_v47 = vld [vmem:[%s9909_s0 + $0x10c] sm:$0xff] }
  0xb2   :  { %6160 = vst [vmem:[%s9910_s1 + $0x28c] sm:$0xff] %v7375_v48  ;;  %v7439_v48 = vld [vmem:[%s9909_s0 + $0x95c] sm:$0xff] }
  0xb3   :  { %6166 = vst [vmem:[%s9910_s1 + $0x4bc] sm:$0xff] %v7376_v49  ;;  %v7440_v49 = vld [vmem:[%s9909_s0 + $0x72c] sm:$0xff] }
  0xb4   :  { %6172 = vst [vmem:[%s9910_s1 + $0x6ec] sm:$0xff] %v7377_v50  ;;  %v7441_v50 = vld [vmem:[%s9909_s0 + $0x4fc] sm:$0xff] }
  0xb5   :  { %6178 = vst [vmem:[%s9910_s1 + $0x91c] sm:$0xff] %v7378_v51  ;;  %v7442_v51 = vld [vmem:[%s9909_s0 + $0x2cc] sm:$0xff] }
  0xb6   :  { %6184 = vst [vmem:[%s9910_s1 + $0xcc] sm:$0xff] %v7379_v52  ;;  %v7443_v52 = vld [vmem:[%s9909_s0 + $0x9c] sm:$0xff] }
  0xb7   :  { %6190 = vst [vmem:[%s9910_s1 + $0x2fc] sm:$0xff] %v7380_v53  ;;  %v7444_v53 = vld [vmem:[%s9909_s0 + $0x8ec] sm:$0xff] }
  0xb8   :  { %6196 = vst [vmem:[%s9910_s1 + $0x52c] sm:$0xff] %v7381_v54  ;;  %v7445_v54 = vld [vmem:[%s9909_s0 + $0x6bc] sm:$0xff] }
  0xb9   :  { %6202 = vst [vmem:[%s9910_s1 + $0x75c] sm:$0xff] %v7382_v55  ;;  %v7446_v55 = vld [vmem:[%s9909_s0 + $0x48c] sm:$0xff] }
  0xba   :  { %6208 = vst [vmem:[%s9910_s1 + $0x98c] sm:$0xff] %v7383_v56  ;;  %v7447_v56 = vld [vmem:[%s9909_s0 + $0x25c] sm:$0xff] }
  0xbb   :  { %6214 = vst [vmem:[%s9910_s1 + $0x13c] sm:$0xff] %v7384_v57  ;;  %v7448_v57 = vld [vmem:[%s9909_s0 + $0x2c] sm:$0xff] }
  0xbc   :  { %6220 = vst [vmem:[%s9910_s1 + $0x36c] sm:$0xff] %v7385_v58  ;;  %v7449_v58 = vld [vmem:[%s9909_s0 + $0xac8] sm:$0xff] }
  0xbd   :  { %6226 = vst [vmem:[%s9910_s1 + $0x59c] sm:$0xff] %v7386_v59  ;;  %v7450_v59 = vld [vmem:[%s9909_s0 + $0x898] sm:$0xff] }
  0xbe   :  { %6232 = vst [vmem:[%s9910_s1 + $0x7cc] sm:$0xff] %v7387_v60  ;;  %v7451_v60 = vld [vmem:[%s9909_s0 + $0x668] sm:$0xff] }
  0xbf   :  { %6238 = vst [vmem:[%s9910_s1 + $0x9fc] sm:$0xff] %v7388_v61  ;;  %v7452_v61 = vld [vmem:[%s9909_s0 + $0x438] sm:$0xff] }
  0xc0   :  { %6244 = vst [vmem:[%s9910_s1 + $0x1ac] sm:$0xff] %v7389_v62  ;;  %v7453_v62 = vld [vmem:[%s9909_s0 + $0x208] sm:$0xff] }
  0xc1   :  { %6250 = vst [vmem:[%s9910_s1 + $0x3dc] sm:$0xff] %v7390_v63  ;;  %v7454_v63 = vld [vmem:[%s9909_s0 + $0xa58] sm:$0xff] }
  0xc2   :  { %6256 = vst [vmem:[%s9910_s1 + $0x60c] sm:$0xff] %v7391_v0  ;;  %v7455_v0 = vld [vmem:[%s9909_s0 + $0x828] sm:$0xff] }
  0xc3   :  { %6262 = vst [vmem:[%s9910_s1 + $0x83c] sm:$0xff] %v7392_v1  ;;  %v7456_v1 = vld [vmem:[%s9909_s0 + $0x5f8] sm:$0xff] }
  0xc4   :  { %6268 = vst [vmem:[%s9910_s1 + $0xa6c] sm:$0xff] %v7393_v2  ;;  %v7457_v2 = vld [vmem:[%s9909_s0 + $0x3c8] sm:$0xff] }
  0xc5   :  { %6274 = vst [vmem:[%s9910_s1 + $0x21c] sm:$0xff] %v7394_v3  ;;  %v7458_v3 = vld [vmem:[%s9909_s0 + $0x198] sm:$0xff] }
  0xc6   :  { %6280 = vst [vmem:[%s9910_s1 + $0x44c] sm:$0xff] %v7395_v4  ;;  %v7459_v4 = vld [vmem:[%s9909_s0 + $0x9e8] sm:$0xff] }
  0xc7   :  { %6286 = vst [vmem:[%s9910_s1 + $0x67c] sm:$0xff] %v7396_v5  ;;  %v7460_v5 = vld [vmem:[%s9909_s0 + $0x7b8] sm:$0xff] }
  0xc8   :  { %6292 = vst [vmem:[%s9910_s1 + $0x8ac] sm:$0xff] %v7397_v6  ;;  %v7461_v6 = vld [vmem:[%s9909_s0 + $0x588] sm:$0xff] }
  0xc9   :  { %6298 = vst [vmem:[%s9910_s1 + $0xadc] sm:$0xff] %v7398_v7  ;;  %v7462_v7 = vld [vmem:[%s9909_s0 + $0x358] sm:$0xff] }
  0xca   :  { %6404 = vst [vmem:[%s9910_s1 + $0x10] sm:$0xff] %v7399_v8  ;;  %v7463_v8 = vld [vmem:[%s9909_s0 + $0x128] sm:$0xff] }
  0xcb   :  { %6410 = vst [vmem:[%s9910_s1 + $0x240] sm:$0xff] %v7400_v9  ;;  %v7464_v9 = vld [vmem:[%s9909_s0 + $0x978] sm:$0xff] }
  0xcc   :  { %6416 = vst [vmem:[%s9910_s1 + $0x470] sm:$0xff] %v7401_v10  ;;  %v7465_v10 = vld [vmem:[%s9909_s0 + $0x748] sm:$0xff] }
  0xcd   :  { %6422 = vst [vmem:[%s9910_s1 + $0x6a0] sm:$0xff] %v7402_v11  ;;  %v7466_v11 = vld [vmem:[%s9909_s0 + $0x518] sm:$0xff] }
  0xce   :  { %6428 = vst [vmem:[%s9910_s1 + $0x8d0] sm:$0xff] %v7403_v12  ;;  %v7467_v12 = vld [vmem:[%s9909_s0 + $0x2e8] sm:$0xff] }
  0xcf   :  { %6434 = vst [vmem:[%s9910_s1 + $0x80] sm:$0xff] %v7404_v13  ;;  %v7468_v13 = vld [vmem:[%s9909_s0 + $0xb8] sm:$0xff] }
  0xd0   :  { %6440 = vst [vmem:[%s9910_s1 + $0x2b0] sm:$0xff] %v7405_v14  ;;  %v7469_v14 = vld [vmem:[%s9909_s0 + $0x908] sm:$0xff] }
  0xd1   :  { %6446 = vst [vmem:[%s9910_s1 + $0x4e0] sm:$0xff] %v7406_v15  ;;  %v7470_v15 = vld [vmem:[%s9909_s0 + $0x6d8] sm:$0xff] }
  0xd2   :  { %6452 = vst [vmem:[%s9910_s1 + $0x710] sm:$0xff] %v7407_v16  ;;  %v7471_v16 = vld [vmem:[%s9909_s0 + $0x4a8] sm:$0xff] }
  0xd3   :  { %6458 = vst [vmem:[%s9910_s1 + $0x940] sm:$0xff] %v7408_v17  ;;  %v7472_v17 = vld [vmem:[%s9909_s0 + $0x278] sm:$0xff] }
  0xd4   :  { %6464 = vst [vmem:[%s9910_s1 + $0xf0] sm:$0xff] %v7409_v18  ;;  %v7473_v18 = vld [vmem:[%s9909_s0 + $0x48] sm:$0xff] }
  0xd5   :  { %6470 = vst [vmem:[%s9910_s1 + $0x320] sm:$0xff] %v7410_v19  ;;  %v7474_v19 = vld [vmem:[%s9909_s0 + $0xae4] sm:$0xff] }
  0xd6   :  { %6476 = vst [vmem:[%s9910_s1 + $0x550] sm:$0xff] %v7411_v20  ;;  %v7475_v20 = vld [vmem:[%s9909_s0 + $0x8b4] sm:$0xff] }
  0xd7   :  { %6482 = vst [vmem:[%s9910_s1 + $0x780] sm:$0xff] %v7412_v21  ;;  %v7476_v21 = vld [vmem:[%s9909_s0 + $0x684] sm:$0xff] }
  0xd8   :  { %6488 = vst [vmem:[%s9910_s1 + $0x9b0] sm:$0xff] %v7413_v22  ;;  %v7477_v22 = vld [vmem:[%s9909_s0 + $0x454] sm:$0xff] }
  0xd9   :  { %6494 = vst [vmem:[%s9910_s1 + $0x160] sm:$0xff] %v7414_v23  ;;  %v7478_v23 = vld [vmem:[%s9909_s0 + $0x224] sm:$0xff] }
  0xda   :  { %6500 = vst [vmem:[%s9910_s1 + $0x390] sm:$0xff] %v7415_v24  ;;  %v7479_v24 = vld [vmem:[%s9909_s0 + $0xa74] sm:$0xff] }
  0xdb   :  { %6506 = vst [vmem:[%s9910_s1 + $0x5c0] sm:$0xff] %v7416_v25  ;;  %v7480_v25 = vld [vmem:[%s9909_s0 + $0x844] sm:$0xff] }
  0xdc   :  { %6512 = vst [vmem:[%s9910_s1 + $0x7f0] sm:$0xff] %v7417_v26  ;;  %v7481_v26 = vld [vmem:[%s9909_s0 + $0x614] sm:$0xff] }
  0xdd   :  { %6518 = vst [vmem:[%s9910_s1 + $0xa20] sm:$0xff] %v7418_v27  ;;  %v7482_v27 = vld [vmem:[%s9909_s0 + $0x3e4] sm:$0xff] }
  0xde   :  { %6524 = vst [vmem:[%s9910_s1 + $0x1d0] sm:$0xff] %v7419_v28  ;;  %v7483_v28 = vld [vmem:[%s9909_s0 + $0x1b4] sm:$0xff] }
  0xdf   :  { %6530 = vst [vmem:[%s9910_s1 + $0x400] sm:$0xff] %v7420_v29  ;;  %v7484_v29 = vld [vmem:[%s9909_s0 + $0xa04] sm:$0xff] }
  0xe0   :  { %6536 = vst [vmem:[%s9910_s1 + $0x630] sm:$0xff] %v7421_v30  ;;  %v7485_v30 = vld [vmem:[%s9909_s0 + $0x7d4] sm:$0xff] }
  0xe1   :  { %6542 = vst [vmem:[%s9910_s1 + $0x860] sm:$0xff] %v7422_v31  ;;  %v7486_v31 = vld [vmem:[%s9909_s0 + $0x5a4] sm:$0xff] }
  0xe2   :  { %6548 = vst [vmem:[%s9910_s1 + $0xa90] sm:$0xff] %v7423_v32  ;;  %v7487_v32 = vld [vmem:[%s9909_s0 + $0x374] sm:$0xff] }
  0xe3   :  { %6554 = vst [vmem:[%s9910_s1 + $0x2c] sm:$0xff] %v7424_v33  ;;  %v7488_v33 = vld [vmem:[%s9909_s0 + $0x144] sm:$0xff] }
  0xe4   :  { %6560 = vst [vmem:[%s9910_s1 + $0x25c] sm:$0xff] %v7425_v34  ;;  %v7489_v34 = vld [vmem:[%s9909_s0 + $0x994] sm:$0xff] }
  0xe5   :  { %6566 = vst [vmem:[%s9910_s1 + $0x48c] sm:$0xff] %v7426_v35  ;;  %v7490_v35 = vld [vmem:[%s9909_s0 + $0x764] sm:$0xff] }
  0xe6   :  { %6572 = vst [vmem:[%s9910_s1 + $0x6bc] sm:$0xff] %v7427_v36  ;;  %v7491_v36 = vld [vmem:[%s9909_s0 + $0x534] sm:$0xff] }
  0xe7   :  { %6578 = vst [vmem:[%s9910_s1 + $0x8ec] sm:$0xff] %v7428_v37  ;;  %v7492_v37 = vld [vmem:[%s9909_s0 + $0x304] sm:$0xff] }
  0xe8   :  { %6584 = vst [vmem:[%s9910_s1 + $0x9c] sm:$0xff] %v7429_v38  ;;  %v7493_v38 = vld [vmem:[%s9909_s0 + $0xd4] sm:$0xff] }
  0xe9   :  { %6590 = vst [vmem:[%s9910_s1 + $0x2cc] sm:$0xff] %v7430_v39  ;;  %v7494_v39 = vld [vmem:[%s9909_s0 + $0x924] sm:$0xff] }
  0xea   :  { %6596 = vst [vmem:[%s9910_s1 + $0x4fc] sm:$0xff] %v7431_v40  ;;  %v7495_v40 = vld [vmem:[%s9909_s0 + $0x6f4] sm:$0xff] }
  0xeb   :  { %6602 = vst [vmem:[%s9910_s1 + $0x72c] sm:$0xff] %v7432_v41  ;;  %v7496_v41 = vld [vmem:[%s9909_s0 + $0x4c4] sm:$0xff] }
  0xec   :  { %6608 = vst [vmem:[%s9910_s1 + $0x95c] sm:$0xff] %v7433_v42  ;;  %v7497_v42 = vld [vmem:[%s9909_s0 + $0x294] sm:$0xff] }
  0xed   :  { %6614 = vst [vmem:[%s9910_s1 + $0x10c] sm:$0xff] %v7434_v43  ;;  %v7498_v43 = vld [vmem:[%s9909_s0 + $0x64] sm:$0xff] }
  0xee   :  { %6620 = vst [vmem:[%s9910_s1 + $0x33c] sm:$0xff] %v7435_v44  ;;  %v6999_v44 = vld [vmem:[%s9909_s0 + $0xa98] sm:$0xf] }
  0xef   :  { %6626 = vst [vmem:[%s9910_s1 + $0x56c] sm:$0xff] %v7436_v45  ;;  %v7001_v45 = vld [vmem:[%s9909_s0 + $0x868] sm:$0xf] }
  0xf0   :  { %6632 = vst [vmem:[%s9910_s1 + $0x79c] sm:$0xff] %v7437_v46  ;;  %v7003_v46 = vld [vmem:[%s9909_s0 + $0x638] sm:$0xf] }
  0xf1   :  { %6638 = vst [vmem:[%s9910_s1 + $0x9cc] sm:$0xff] %v7438_v47  ;;  %v7005_v47 = vld [vmem:[%s9909_s0 + $0x408] sm:$0xf] }
  0xf2   :  { %6644 = vst [vmem:[%s9910_s1 + $0x17c] sm:$0xff] %v7439_v48  ;;  %v7007_v48 = vld [vmem:[%s9909_s0 + $0x1d8] sm:$0xf] }
  0xf3   :  { %6650 = vst [vmem:[%s9910_s1 + $0x3ac] sm:$0xff] %v7440_v49  ;;  %v7009_v49 = vld [vmem:[%s9909_s0 + $0xa28] sm:$0xf] }
  0xf4   :  { %6656 = vst [vmem:[%s9910_s1 + $0x5dc] sm:$0xff] %v7441_v50  ;;  %v7011_v50 = vld [vmem:[%s9909_s0 + $0x7f8] sm:$0xf] }
  0xf5   :  { %6662 = vst [vmem:[%s9910_s1 + $0x80c] sm:$0xff] %v7442_v51  ;;  %v7013_v51 = vld [vmem:[%s9909_s0 + $0x5c8] sm:$0xf] }
  0xf6   :  { %6668 = vst [vmem:[%s9910_s1 + $0xa3c] sm:$0xff] %v7443_v52  ;;  %v7015_v52 = vld [vmem:[%s9909_s0 + $0x398] sm:$0xf] }
  0xf7   :  { %6674 = vst [vmem:[%s9910_s1 + $0x1ec] sm:$0xff] %v7444_v53  ;;  %v7017_v53 = vld [vmem:[%s9909_s0 + $0x168] sm:$0xf] }
  0xf8   :  { %6680 = vst [vmem:[%s9910_s1 + $0x41c] sm:$0xff] %v7445_v54  ;;  %v7019_v54 = vld [vmem:[%s9909_s0 + $0x9b8] sm:$0xf] }
  0xf9   :  { %6686 = vst [vmem:[%s9910_s1 + $0x64c] sm:$0xff] %v7446_v55  ;;  %v7021_v55 = vld [vmem:[%s9909_s0 + $0x788] sm:$0xf] }
  0xfa   :  { %6692 = vst [vmem:[%s9910_s1 + $0x87c] sm:$0xff] %v7447_v56  ;;  %v7023_v56 = vld [vmem:[%s9909_s0 + $0x558] sm:$0xf] }
  0xfb   :  { %6698 = vst [vmem:[%s9910_s1 + $0xaac] sm:$0xff] %v7448_v57  ;;  %v7025_v57 = vld [vmem:[%s9909_s0 + $0x328] sm:$0xf] }
  0xfc   :  { %6704 = vst [vmem:[%s9910_s1 + $0x48] sm:$0xff] %v7449_v58  ;;  %v7027_v58 = vld [vmem:[%s9909_s0 + $0xf8] sm:$0xf] }
  0xfd   :  { %6710 = vst [vmem:[%s9910_s1 + $0x278] sm:$0xff] %v7450_v59  ;;  %v7029_v59 = vld [vmem:[%s9909_s0 + $0x948] sm:$0xf] }
  0xfe   :  { %6716 = vst [vmem:[%s9910_s1 + $0x4a8] sm:$0xff] %v7451_v60  ;;  %v7031_v60 = vld [vmem:[%s9909_s0 + $0x718] sm:$0xf] }
  0xff   :  { %6722 = vst [vmem:[%s9910_s1 + $0x6d8] sm:$0xff] %v7452_v61  ;;  %v7033_v61 = vld [vmem:[%s9909_s0 + $0x4e8] sm:$0xf] }
 0x100   :  { %6728 = vst [vmem:[%s9910_s1 + $0x908] sm:$0xff] %v7453_v62  ;;  %v7035_v62 = vld [vmem:[%s9909_s0 + $0x2b8] sm:$0xf] }
 0x101   :  { %6734 = vst [vmem:[%s9910_s1 + $0xb8] sm:$0xff] %v7454_v63  ;;  %v7037_v63 = vld [vmem:[%s9909_s0 + $0x88] sm:$0xf] }
 0x102   :  { %6740 = vst [vmem:[%s9910_s1 + $0x2e8] sm:$0xff] %v7455_v0  ;;  %v7039_v0 = vld [vmem:[%s9909_s0 + $0x8d8] sm:$0xf] }
 0x103   :  { %6746 = vst [vmem:[%s9910_s1 + $0x518] sm:$0xff] %v7456_v1  ;;  %v7041_v1 = vld [vmem:[%s9909_s0 + $0x6a8] sm:$0xf] }
 0x104   :  { %6752 = vst [vmem:[%s9910_s1 + $0x748] sm:$0xff] %v7457_v2  ;;  %v7043_v2 = vld [vmem:[%s9909_s0 + $0x478] sm:$0xf] }
 0x105   :  { %6758 = vst [vmem:[%s9910_s1 + $0x978] sm:$0xff] %v7458_v3  ;;  %v7045_v3 = vld [vmem:[%s9909_s0 + $0x248] sm:$0xf] }
 0x106   :  { %6764 = vst [vmem:[%s9910_s1 + $0x128] sm:$0xff] %v7459_v4  ;;  %v7047_v4 = vld [vmem:[%s9909_s0 + $0x18] sm:$0xf] }
 0x107   :  { %6770 = vst [vmem:[%s9910_s1 + $0x358] sm:$0xff] %v7460_v5  ;;  %v7049_v5 = vld [vmem:[%s9909_s0 + $0xab4] sm:$0xf] }
 0x108   :  { %6776 = vst [vmem:[%s9910_s1 + $0x588] sm:$0xff] %v7461_v6  ;;  %v7051_v6 = vld [vmem:[%s9909_s0 + $0x884] sm:$0xf] }
 0x109   :  { %6782 = vst [vmem:[%s9910_s1 + $0x7b8] sm:$0xff] %v7462_v7  ;;  %v7053_v7 = vld [vmem:[%s9909_s0 + $0x654] sm:$0xf] }
 0x10a   :  { %6788 = vst [vmem:[%s9910_s1 + $0x9e8] sm:$0xff] %v7463_v8  ;;  %v7055_v8 = vld [vmem:[%s9909_s0 + $0x424] sm:$0xf] }
 0x10b   :  { %6794 = vst [vmem:[%s9910_s1 + $0x198] sm:$0xff] %v7464_v9  ;;  %v7057_v9 = vld [vmem:[%s9909_s0 + $0x1f4] sm:$0xf] }
 0x10c   :  { %6800 = vst [vmem:[%s9910_s1 + $0x3c8] sm:$0xff] %v7465_v10  ;;  %v7059_v10 = vld [vmem:[%s9909_s0 + $0xa44] sm:$0xf] }
 0x10d   :  { %6806 = vst [vmem:[%s9910_s1 + $0x5f8] sm:$0xff] %v7466_v11  ;;  %v7061_v11 = vld [vmem:[%s9909_s0 + $0x814] sm:$0xf] }
 0x10e   :  { %6812 = vst [vmem:[%s9910_s1 + $0x828] sm:$0xff] %v7467_v12  ;;  %v7063_v12 = vld [vmem:[%s9909_s0 + $0x5e4] sm:$0xf] }
 0x10f   :  { %6818 = vst [vmem:[%s9910_s1 + $0xa58] sm:$0xff] %v7468_v13  ;;  %v7065_v13 = vld [vmem:[%s9909_s0 + $0x3b4] sm:$0xf] }
 0x110   :  { %6824 = vst [vmem:[%s9910_s1 + $0x208] sm:$0xff] %v7469_v14  ;;  %v7067_v14 = vld [vmem:[%s9909_s0 + $0x184] sm:$0xf] }
 0x111   :  { %6830 = vst [vmem:[%s9910_s1 + $0x438] sm:$0xff] %v7470_v15  ;;  %v7069_v15 = vld [vmem:[%s9909_s0 + $0x9d4] sm:$0xf] }
 0x112   :  { %6836 = vst [vmem:[%s9910_s1 + $0x668] sm:$0xff] %v7471_v16  ;;  %v7071_v16 = vld [vmem:[%s9909_s0 + $0x7a4] sm:$0xf] }
 0x113   :  { %6842 = vst [vmem:[%s9910_s1 + $0x898] sm:$0xff] %v7472_v17  ;;  %v7073_v17 = vld [vmem:[%s9909_s0 + $0x574] sm:$0xf] }
 0x114   :  { %6848 = vst [vmem:[%s9910_s1 + $0xac8] sm:$0xff] %v7473_v18  ;;  %v7075_v18 = vld [vmem:[%s9909_s0 + $0x344] sm:$0xf] }
 0x115   :  { %6854 = vst [vmem:[%s9910_s1 + $0x64] sm:$0xff] %v7474_v19  ;;  %v7077_v19 = vld [vmem:[%s9909_s0 + $0x114] sm:$0xf] }
 0x116   :  { %6860 = vst [vmem:[%s9910_s1 + $0x294] sm:$0xff] %v7475_v20  ;;  %v7079_v20 = vld [vmem:[%s9909_s0 + $0x964] sm:$0xf] }
 0x117   :  { %6866 = vst [vmem:[%s9910_s1 + $0x4c4] sm:$0xff] %v7476_v21  ;;  %v7081_v21 = vld [vmem:[%s9909_s0 + $0x734] sm:$0xf] }
 0x118   :  { %6872 = vst [vmem:[%s9910_s1 + $0x6f4] sm:$0xff] %v7477_v22  ;;  %v7083_v22 = vld [vmem:[%s9909_s0 + $0x504] sm:$0xf] }
 0x119   :  { %6878 = vst [vmem:[%s9910_s1 + $0x924] sm:$0xff] %v7478_v23  ;;  %v7085_v23 = vld [vmem:[%s9909_s0 + $0x2d4] sm:$0xf] }
 0x11a   :  { %6884 = vst [vmem:[%s9910_s1 + $0xd4] sm:$0xff] %v7479_v24  ;;  %v7087_v24 = vld [vmem:[%s9909_s0 + $0xa4] sm:$0xf] }
 0x11b   :  { %6890 = vst [vmem:[%s9910_s1 + $0x304] sm:$0xff] %v7480_v25  ;;  %v7089_v25 = vld [vmem:[%s9909_s0 + $0x8f4] sm:$0xf] }
 0x11c   :  { %6896 = vst [vmem:[%s9910_s1 + $0x534] sm:$0xff] %v7481_v26  ;;  %v7091_v26 = vld [vmem:[%s9909_s0 + $0x6c4] sm:$0xf] }
 0x11d   :  { %6902 = vst [vmem:[%s9910_s1 + $0x764] sm:$0xff] %v7482_v27  ;;  %v7093_v27 = vld [vmem:[%s9909_s0 + $0x494] sm:$0xf] }
 0x11e   :  { %6908 = vst [vmem:[%s9910_s1 + $0x994] sm:$0xff] %v7483_v28  ;;  %v7095_v28 = vld [vmem:[%s9909_s0 + $0x264] sm:$0xf] }
 0x11f   :  { %6914 = vst [vmem:[%s9910_s1 + $0x144] sm:$0xff] %v7484_v29  ;;  %v7097_v29 = vld [vmem:[%s9909_s0 + $0x34] sm:$0xf] }
 0x120   :  { %6920 = vst [vmem:[%s9910_s1 + $0x374] sm:$0xff] %v7485_v30  ;;  %v7099_v30 = vld [vmem:[%s9909_s0 + $0xad0] sm:$0xf] }
 0x121   :  { %6926 = vst [vmem:[%s9910_s1 + $0x5a4] sm:$0xff] %v7486_v31  ;;  %v7101_v31 = vld [vmem:[%s9909_s0 + $0x8a0] sm:$0xf] }
 0x122   :  { %6932 = vst [vmem:[%s9910_s1 + $0x7d4] sm:$0xff] %v7487_v32  ;;  %v7103_v32 = vld [vmem:[%s9909_s0 + $0x670] sm:$0xf] }
 0x123   :  { %6938 = vst [vmem:[%s9910_s1 + $0xa04] sm:$0xff] %v7488_v33  ;;  %v7105_v33 = vld [vmem:[%s9909_s0 + $0x440] sm:$0xf] }
 0x124   :  { %6944 = vst [vmem:[%s9910_s1 + $0x1b4] sm:$0xff] %v7489_v34  ;;  %v7107_v34 = vld [vmem:[%s9909_s0 + $0x210] sm:$0xf] }
 0x125   :  { %6950 = vst [vmem:[%s9910_s1 + $0x3e4] sm:$0xff] %v7490_v35  ;;  %v7109_v35 = vld [vmem:[%s9909_s0 + $0xa60] sm:$0xf] }
 0x126   :  { %6956 = vst [vmem:[%s9910_s1 + $0x614] sm:$0xff] %v7491_v36  ;;  %v7111_v36 = vld [vmem:[%s9909_s0 + $0x830] sm:$0xf] }
 0x127   :  { %6962 = vst [vmem:[%s9910_s1 + $0x844] sm:$0xff] %v7492_v37  ;;  %v7113_v37 = vld [vmem:[%s9909_s0 + $0x600] sm:$0xf] }
 0x128   :  { %6968 = vst [vmem:[%s9910_s1 + $0xa74] sm:$0xff] %v7493_v38  ;;  %v7115_v38 = vld [vmem:[%s9909_s0 + $0x3d0] sm:$0xf] }
 0x129   :  { %6974 = vst [vmem:[%s9910_s1 + $0x224] sm:$0xff] %v7494_v39  ;;  %v7117_v39 = vld [vmem:[%s9909_s0 + $0x1a0] sm:$0xf] }
 0x12a   :  { %6980 = vst [vmem:[%s9910_s1 + $0x454] sm:$0xff] %v7495_v40  ;;  %v7119_v40 = vld [vmem:[%s9909_s0 + $0x9f0] sm:$0xf] }
 0x12b   :  { %6986 = vst [vmem:[%s9910_s1 + $0x684] sm:$0xff] %v7496_v41  ;;  %v7121_v41 = vld [vmem:[%s9909_s0 + $0x7c0] sm:$0xf] }
 0x12c   :  { %6992 = vst [vmem:[%s9910_s1 + $0x8b4] sm:$0xff] %v7497_v42  ;;  %v7123_v42 = vld [vmem:[%s9909_s0 + $0x590] sm:$0xf] }
 0x12d   :  { %6998 = vst [vmem:[%s9910_s1 + $0xae4] sm:$0xff] %v7498_v43  ;;  %v7125_v43 = vld [vmem:[%s9909_s0 + $0x360] sm:$0xf] }
 0x12e   :  { %7000 = vst [vmem:[%s9910_s1 + $0x18] sm:$0xf] %v6999_v44  ;;  %v7127_v44 = vld [vmem:[%s9909_s0 + $0x130] sm:$0xf] }
 0x12f   :  { %7002 = vst [vmem:[%s9910_s1 + $0x248] sm:$0xf] %v7001_v45  ;;  %v7129_v45 = vld [vmem:[%s9909_s0 + $0x980] sm:$0xf] }
 0x130   :  { %7004 = vst [vmem:[%s9910_s1 + $0x478] sm:$0xf] %v7003_v46  ;;  %v7131_v46 = vld [vmem:[%s9909_s0 + $0x750] sm:$0xf] }
 0x131   :  { %7006 = vst [vmem:[%s9910_s1 + $0x6a8] sm:$0xf] %v7005_v47  ;;  %v7133_v47 = vld [vmem:[%s9909_s0 + $0x520] sm:$0xf] }
 0x132   :  { %7008 = vst [vmem:[%s9910_s1 + $0x8d8] sm:$0xf] %v7007_v48  ;;  %v7135_v48 = vld [vmem:[%s9909_s0 + $0x2f0] sm:$0xf] }
 0x133   :  { %7010 = vst [vmem:[%s9910_s1 + $0x88] sm:$0xf] %v7009_v49  ;;  %v7137_v49 = vld [vmem:[%s9909_s0 + $0xc0] sm:$0xf] }
 0x134   :  { %7012 = vst [vmem:[%s9910_s1 + $0x2b8] sm:$0xf] %v7011_v50  ;;  %v7139_v50 = vld [vmem:[%s9909_s0 + $0x910] sm:$0xf] }
 0x135   :  { %7014 = vst [vmem:[%s9910_s1 + $0x4e8] sm:$0xf] %v7013_v51  ;;  %v7141_v51 = vld [vmem:[%s9909_s0 + $0x6e0] sm:$0xf] }
 0x136   :  { %7016 = vst [vmem:[%s9910_s1 + $0x718] sm:$0xf] %v7015_v52  ;;  %v7143_v52 = vld [vmem:[%s9909_s0 + $0x4b0] sm:$0xf] }
 0x137   :  { %7018 = vst [vmem:[%s9910_s1 + $0x948] sm:$0xf] %v7017_v53  ;;  %v7145_v53 = vld [vmem:[%s9909_s0 + $0x280] sm:$0xf] }
 0x138   :  { %7020 = vst [vmem:[%s9910_s1 + $0xf8] sm:$0xf] %v7019_v54  ;;  %v7147_v54 = vld [vmem:[%s9909_s0 + $0x50] sm:$0xf] }
 0x139   :  { %7022 = vst [vmem:[%s9910_s1 + $0x328] sm:$0xf] %v7021_v55  ;;  %v7149_v55 = vld [vmem:[%s9909_s0 + $0xaec] sm:$0xf] }
 0x13a   :  { %7024 = vst [vmem:[%s9910_s1 + $0x558] sm:$0xf] %v7023_v56  ;;  %v7151_v56 = vld [vmem:[%s9909_s0 + $0x8bc] sm:$0xf] }
 0x13b   :  { %7026 = vst [vmem:[%s9910_s1 + $0x788] sm:$0xf] %v7025_v57  ;;  %v7153_v57 = vld [vmem:[%s9909_s0 + $0x68c] sm:$0xf] }
 0x13c   :  { %7028 = vst [vmem:[%s9910_s1 + $0x9b8] sm:$0xf] %v7027_v58  ;;  %v7155_v58 = vld [vmem:[%s9909_s0 + $0x45c] sm:$0xf] }
 0x13d   :  { %7030 = vst [vmem:[%s9910_s1 + $0x168] sm:$0xf] %v7029_v59  ;;  %v7157_v59 = vld [vmem:[%s9909_s0 + $0x22c] sm:$0xf] }
 0x13e   :  { %7032 = vst [vmem:[%s9910_s1 + $0x398] sm:$0xf] %v7031_v60  ;;  %v7159_v60 = vld [vmem:[%s9909_s0 + $0xa7c] sm:$0xf] }
 0x13f   :  { %7034 = vst [vmem:[%s9910_s1 + $0x5c8] sm:$0xf] %v7033_v61  ;;  %v7161_v61 = vld [vmem:[%s9909_s0 + $0x84c] sm:$0xf] }
 0x140   :  { %7036 = vst [vmem:[%s9910_s1 + $0x7f8] sm:$0xf] %v7035_v62  ;;  %v7163_v62 = vld [vmem:[%s9909_s0 + $0x61c] sm:$0xf] }
 0x141   :  { %7038 = vst [vmem:[%s9910_s1 + $0xa28] sm:$0xf] %v7037_v63  ;;  %v7165_v63 = vld [vmem:[%s9909_s0 + $0x3ec] sm:$0xf] }
 0x142   :  { %7040 = vst [vmem:[%s9910_s1 + $0x1d8] sm:$0xf] %v7039_v0  ;;  %v7167_v0 = vld [vmem:[%s9909_s0 + $0x1bc] sm:$0xf] }
 0x143   :  { %7042 = vst [vmem:[%s9910_s1 + $0x408] sm:$0xf] %v7041_v1  ;;  %v7169_v1 = vld [vmem:[%s9909_s0 + $0xa0c] sm:$0xf] }
 0x144   :  { %7044 = vst [vmem:[%s9910_s1 + $0x638] sm:$0xf] %v7043_v2  ;;  %v7171_v2 = vld [vmem:[%s9909_s0 + $0x7dc] sm:$0xf] }
 0x145   :  { %7046 = vst [vmem:[%s9910_s1 + $0x868] sm:$0xf] %v7045_v3  ;;  %v7173_v3 = vld [vmem:[%s9909_s0 + $0x5ac] sm:$0xf] }
 0x146   :  { %7048 = vst [vmem:[%s9910_s1 + $0xa98] sm:$0xf] %v7047_v4  ;;  %v7175_v4 = vld [vmem:[%s9909_s0 + $0x37c] sm:$0xf] }
 0x147   :  { %7050 = vst [vmem:[%s9910_s1 + $0x34] sm:$0xf] %v7049_v5  ;;  %v7177_v5 = vld [vmem:[%s9909_s0 + $0x14c] sm:$0xf] }
 0x148   :  { %7052 = vst [vmem:[%s9910_s1 + $0x264] sm:$0xf] %v7051_v6  ;;  %v7179_v6 = vld [vmem:[%s9909_s0 + $0x99c] sm:$0xf] }
 0x149   :  { %7054 = vst [vmem:[%s9910_s1 + $0x494] sm:$0xf] %v7053_v7  ;;  %v7181_v7 = vld [vmem:[%s9909_s0 + $0x76c] sm:$0xf] }
 0x14a   :  { %7056 = vst [vmem:[%s9910_s1 + $0x6c4] sm:$0xf] %v7055_v8  ;;  %v7183_v8 = vld [vmem:[%s9909_s0 + $0x53c] sm:$0xf] }
 0x14b   :  { %7058 = vst [vmem:[%s9910_s1 + $0x8f4] sm:$0xf] %v7057_v9  ;;  %v7185_v9 = vld [vmem:[%s9909_s0 + $0x30c] sm:$0xf] }
 0x14c   :  { %7060 = vst [vmem:[%s9910_s1 + $0xa4] sm:$0xf] %v7059_v10  ;;  %v7187_v10 = vld [vmem:[%s9909_s0 + $0xdc] sm:$0xf] }
 0x14d   :  { %7062 = vst [vmem:[%s9910_s1 + $0x2d4] sm:$0xf] %v7061_v11  ;;  %v7189_v11 = vld [vmem:[%s9909_s0 + $0x92c] sm:$0xf] }
 0x14e   :  { %7064 = vst [vmem:[%s9910_s1 + $0x504] sm:$0xf] %v7063_v12  ;;  %v7191_v12 = vld [vmem:[%s9909_s0 + $0x6fc] sm:$0xf] }
 0x14f   :  { %7066 = vst [vmem:[%s9910_s1 + $0x734] sm:$0xf] %v7065_v13  ;;  %v7193_v13 = vld [vmem:[%s9909_s0 + $0x4cc] sm:$0xf] }
 0x150   :  { %7068 = vst [vmem:[%s9910_s1 + $0x964] sm:$0xf] %v7067_v14  ;;  %v7195_v14 = vld [vmem:[%s9909_s0 + $0x29c] sm:$0xf] }
 0x151   :  { %7070 = vst [vmem:[%s9910_s1 + $0x114] sm:$0xf] %v7069_v15  ;;  %v7197_v15 = vld [vmem:[%s9909_s0 + $0x6c] sm:$0xf] }
 0x152   :  { %7072 = vst [vmem:[%s9910_s1 + $0x344] sm:$0xf] %v7071_v16 }
 0x153   :  { %7074 = vst [vmem:[%s9910_s1 + $0x574] sm:$0xf] %v7073_v17 }
 0x154   :  { %7076 = vst [vmem:[%s9910_s1 + $0x7a4] sm:$0xf] %v7075_v18 }
 0x155   :  { %7078 = vst [vmem:[%s9910_s1 + $0x9d4] sm:$0xf] %v7077_v19 }
 0x156   :  { %7080 = vst [vmem:[%s9910_s1 + $0x184] sm:$0xf] %v7079_v20 }
 0x157   :  { %7082 = vst [vmem:[%s9910_s1 + $0x3b4] sm:$0xf] %v7081_v21 }
 0x158   :  { %7084 = vst [vmem:[%s9910_s1 + $0x5e4] sm:$0xf] %v7083_v22 }
 0x159   :  { %7086 = vst [vmem:[%s9910_s1 + $0x814] sm:$0xf] %v7085_v23 }
 0x15a   :  { %7088 = vst [vmem:[%s9910_s1 + $0xa44] sm:$0xf] %v7087_v24 }
 0x15b   :  { %7090 = vst [vmem:[%s9910_s1 + $0x1f4] sm:$0xf] %v7089_v25 }
 0x15c   :  { %7092 = vst [vmem:[%s9910_s1 + $0x424] sm:$0xf] %v7091_v26 }
 0x15d   :  { %7094 = vst [vmem:[%s9910_s1 + $0x654] sm:$0xf] %v7093_v27 }
 0x15e   :  { %7096 = vst [vmem:[%s9910_s1 + $0x884] sm:$0xf] %v7095_v28 }
 0x15f   :  { %7098 = vst [vmem:[%s9910_s1 + $0xab4] sm:$0xf] %v7097_v29 }
 0x160   :  { %7100 = vst [vmem:[%s9910_s1 + $0x50] sm:$0xf] %v7099_v30 }
 0x161   :  { %7102 = vst [vmem:[%s9910_s1 + $0x280] sm:$0xf] %v7101_v31 }
 0x162   :  { %7104 = vst [vmem:[%s9910_s1 + $0x4b0] sm:$0xf] %v7103_v32 }
 0x163   :  { %7106 = vst [vmem:[%s9910_s1 + $0x6e0] sm:$0xf] %v7105_v33 }
 0x164   :  { %7108 = vst [vmem:[%s9910_s1 + $0x910] sm:$0xf] %v7107_v34 }
 0x165   :  { %7110 = vst [vmem:[%s9910_s1 + $0xc0] sm:$0xf] %v7109_v35 }
 0x166   :  { %7112 = vst [vmem:[%s9910_s1 + $0x2f0] sm:$0xf] %v7111_v36 }
 0x167   :  { %7114 = vst [vmem:[%s9910_s1 + $0x520] sm:$0xf] %v7113_v37 }
 0x168   :  { %7116 = vst [vmem:[%s9910_s1 + $0x750] sm:$0xf] %v7115_v38 }
 0x169   :  { %7118 = vst [vmem:[%s9910_s1 + $0x980] sm:$0xf] %v7117_v39 }
 0x16a   :  { %7120 = vst [vmem:[%s9910_s1 + $0x130] sm:$0xf] %v7119_v40 }
 0x16b   :  { %7122 = vst [vmem:[%s9910_s1 + $0x360] sm:$0xf] %v7121_v41 }
 0x16c   :  { %7124 = vst [vmem:[%s9910_s1 + $0x590] sm:$0xf] %v7123_v42 }
 0x16d   :  { %7126 = vst [vmem:[%s9910_s1 + $0x7c0] sm:$0xf] %v7125_v43 }
 0x16e   :  { %7128 = vst [vmem:[%s9910_s1 + $0x9f0] sm:$0xf] %v7127_v44 }
 0x16f   :  { %7130 = vst [vmem:[%s9910_s1 + $0x1a0] sm:$0xf] %v7129_v45 }
 0x170   :  { %7132 = vst [vmem:[%s9910_s1 + $0x3d0] sm:$0xf] %v7131_v46 }
 0x171   :  { %7134 = vst [vmem:[%s9910_s1 + $0x600] sm:$0xf] %v7133_v47 }
 0x172   :  { %7136 = vst [vmem:[%s9910_s1 + $0x830] sm:$0xf] %v7135_v48 }
 0x173   :  { %7138 = vst [vmem:[%s9910_s1 + $0xa60] sm:$0xf] %v7137_v49 }
 0x174   :  { %7140 = vst [vmem:[%s9910_s1 + $0x210] sm:$0xf] %v7139_v50 }
 0x175   :  { %7142 = vst [vmem:[%s9910_s1 + $0x440] sm:$0xf] %v7141_v51 }
 0x176   :  { %7144 = vst [vmem:[%s9910_s1 + $0x670] sm:$0xf] %v7143_v52 }
 0x177   :  { %7146 = vst [vmem:[%s9910_s1 + $0x8a0] sm:$0xf] %v7145_v53 }
 0x178   :  { %7148 = vst [vmem:[%s9910_s1 + $0xad0] sm:$0xf] %v7147_v54 }
 0x179   :  { %7150 = vst [vmem:[%s9910_s1 + $0x6c] sm:$0xf] %v7149_v55 }
 0x17a   :  { %7152 = vst [vmem:[%s9910_s1 + $0x29c] sm:$0xf] %v7151_v56 }
 0x17b   :  { %7154 = vst [vmem:[%s9910_s1 + $0x4cc] sm:$0xf] %v7153_v57 }
 0x17c   :  { %7156 = vst [vmem:[%s9910_s1 + $0x6fc] sm:$0xf] %v7155_v58 }
 0x17d   :  { %7158 = vst [vmem:[%s9910_s1 + $0x92c] sm:$0xf] %v7157_v59 }
 0x17e   :  { %7160 = vst [vmem:[%s9910_s1 + $0xdc] sm:$0xf] %v7159_v60 }
 0x17f   :  { %7162 = vst [vmem:[%s9910_s1 + $0x30c] sm:$0xf] %v7161_v61 }
 0x180   :  { %7164 = vst [vmem:[%s9910_s1 + $0x53c] sm:$0xf] %v7163_v62 }
 0x181   :  { %7166 = vst [vmem:[%s9910_s1 + $0x76c] sm:$0xf] %v7165_v63 }
 0x182   :  { %7168 = vst [vmem:[%s9910_s1 + $0x99c] sm:$0xf] %v7167_v0 }
 0x183   :  { %7170 = vst [vmem:[%s9910_s1 + $0x14c] sm:$0xf] %v7169_v1 }
 0x184   :  { %7172 = vst [vmem:[%s9910_s1 + $0x37c] sm:$0xf] %v7171_v2 }
 0x185   :  { %7174 = vst [vmem:[%s9910_s1 + $0x5ac] sm:$0xf] %v7173_v3 }
 0x186   :  { %7176 = vst [vmem:[%s9910_s1 + $0x7dc] sm:$0xf] %v7175_v4 }
 0x187   :  { %7178 = vst [vmem:[%s9910_s1 + $0xa0c] sm:$0xf] %v7177_v5 }
 0x188   :  { %7180 = vst [vmem:[%s9910_s1 + $0x1bc] sm:$0xf] %v7179_v6 }
 0x189   :  { %7182 = vst [vmem:[%s9910_s1 + $0x3ec] sm:$0xf] %v7181_v7 }
 0x18a   :  { %7184 = vst [vmem:[%s9910_s1 + $0x61c] sm:$0xf] %v7183_v8 }
 0x18b   :  { %7186 = vst [vmem:[%s9910_s1 + $0x84c] sm:$0xf] %v7185_v9 }
 0x18c   :  { %7188 = vst [vmem:[%s9910_s1 + $0xa7c] sm:$0xf] %v7187_v10 }
 0x18d   :  { %7190 = vst [vmem:[%s9910_s1 + $0x22c] sm:$0xf] %v7189_v11 }
 0x18e   :  { %7192 = vst [vmem:[%s9910_s1 + $0x45c] sm:$0xf] %v7191_v12 }
 0x18f   :  { %7194 = vst [vmem:[%s9910_s1 + $0x68c] sm:$0xf] %v7193_v13 }
 0x190   :  { %7196 = vst [vmem:[%s9910_s1 + $0x8bc] sm:$0xf] %v7195_v14 }
 0x191   :  { %7198 = vst [vmem:[%s9910_s1 + $0xaec] sm:$0xf] %v7197_v15 }

// kernel: forward.11
= control target key start
LH: loop header
LB: loop body
LE: loop exit
PB: predicated region body
PF: predicated region fallthrough
CT: control target
= control target key end

     0   :  { %vm447_vm0 = vcmask 261120   ;;  %vm542_vm1 = vcmask 523264   ;;  %s988_s1 = inlined_call_operand.vmem [shape: bf16[800,64], index: 1, kind: input, shape index: {}]   ;;  %s989_s2 = inlined_call_operand.vmem [shape: f32[1,64], index: 2, kind: input, shape index: {}]   ;;  %s990_s0 = inlined_call_operand.vmem [shape: bf16[8,800], index: 0, kind: input, shape index: {}]   ;;  %s991_s3 = inlined_call_operand.vmem [shape: f32[8,64], index: 3, kind: output, shape index: {}]  }
   0x1   :  { %v756_v0 = vld [vmem:[%s988_s1 + $0x38] sm:$0xff]  ;;  %v755_v3 = vld [vmem:[%s988_s1 + $0x30] sm:$0xff]  ;;  %v754_v8 = vld [vmem:[%s988_s1 + $0x28] sm:$0xff] }
   0x2   :  { %v764_v1 = vld [vmem:[%s988_s1 + $0x78] sm:$0xff]  ;;  %451 = vmatpush.bf16.msra.mxu0 %v756_v0  ;;  %v763_v4 = vld [vmem:[%s988_s1 + $0x70] sm:$0xff]  ;;  %v762_v9 = vld [vmem:[%s988_s1 + $0x68] sm:$0xff] }
   0x3   :  { %v772_v2 = vld [vmem:[%s988_s1 + $0xb8] sm:$0xff]  ;;  %464 = vmatpush.bf16.msra.mxu1 %v764_v1  ;;  %v771_v5 = vld [vmem:[%s988_s1 + $0xb0] sm:$0xff]  ;;  %v770_v10 = vld [vmem:[%s988_s1 + $0xa8] sm:$0xff] }
   0x4   :  { %477 = vmatpush.bf16.msra.mxu2 %v772_v2  ;;  %v780_v6 = vld [vmem:[%s988_s1 + $0xf8] sm:$0xff]  ;;  %v779_v7 = vld [vmem:[%s988_s1 + $0xf0] sm:$0xff]  ;;  %v778_v11 = vld [vmem:[%s988_s1 + $0xe8] sm:$0xff] }
   0x5   :  { %490 = vmatpush.bf16.msra.mxu3 %v780_v6  ;;  %v753_v12 = vld [vmem:[%s988_s1 + $0x20] sm:$0xff]  ;;  %v752_v16 = vld [vmem:[%s988_s1 + $0x18] sm:$0xff]  ;;  %v751_v20 = vld [vmem:[%s988_s1 + $0x10] sm:$0xff] }
   0x6   :  { %452 = vmatpush.bf16.msra.mxu0 %v755_v3  ;;  %v761_v13 = vld [vmem:[%s988_s1 + $0x60] sm:$0xff]  ;;  %v760_v17 = vld [vmem:[%s988_s1 + $0x58] sm:$0xff]  ;;  %v759_v21 = vld [vmem:[%s988_s1 + $0x50] sm:$0xff] }
   0x7   :  { %465 = vmatpush.bf16.msra.mxu1 %v763_v4  ;;  %v769_v14 = vld [vmem:[%s988_s1 + $0xa0] sm:$0xff]  ;;  %v768_v18 = vld [vmem:[%s988_s1 + $0x98] sm:$0xff]  ;;  %v767_v22 = vld [vmem:[%s988_s1 + $0x90] sm:$0xff] }
   0x8   :  { %478 = vmatpush.bf16.msra.mxu2 %v771_v5  ;;  %v777_v15 = vld [vmem:[%s988_s1 + $0xe0] sm:$0xff]  ;;  %v776_v19 = vld [vmem:[%s988_s1 + $0xd8] sm:$0xff]  ;;  %v775_v23 = vld [vmem:[%s988_s1 + $0xd0] sm:$0xff] }
   0x9   :  { %491 = vmatpush.bf16.msra.mxu3 %v779_v7  ;;  %v750_v24 = vld [vmem:[%s988_s1 + $0x8] sm:$0xff]  ;;  %v15_v26 = vld [vmem:[%s990_s0] sm:$0xff]  ;;  %v788_v36 = vld [vmem:[%s988_s1 + $0x138] sm:$0xff] }
   0xa   :  { %453 = vmatpush.bf16.msra.mxu0 %v754_v8  ;;  %v758_v25 = vld [vmem:[%s988_s1 + $0x48] sm:$0xff]  ;;  %v127_v30 = vunpack.c.l.b16 %v15_v26  ;;  %v128_v31 = vunpack.c.h.b16 %v15_v26  ;;  %v749_v32 = vld [vmem:[%s988_s1] sm:$0xff]  ;;  %v796_v37 = vld [vmem:[%s988_s1 + $0x178] sm:$0xff] }
   0xb   :  { %466 = vmatpush.bf16.msra.mxu1 %v762_v9  ;;  %v766_v27 = vld [vmem:[%s988_s1 + $0x88] sm:$0xff]  ;;  %v757_v33 = vld [vmem:[%s988_s1 + $0x40] sm:$0xff]  ;;  %v787_v44 = vld [vmem:[%s988_s1 + $0x130] sm:$0xff] }
   0xc   :  { %479 = vmatpush.bf16.msra.mxu2 %v770_v10  ;;  %v16_v28 = vld [vmem:[%s990_s0 + $0x8] sm:$0xff]  ;;  %v765_v35 = vld [vmem:[%s988_s1 + $0x80] sm:$0xff]  ;;  %v134_v39 = vpack.c.b16 %v127_v30, %v127_v30  ;;  %v135_v40 = vpack.c.b16 %v128_v31, %v128_v31  ;;  %v795_v45 = vld [vmem:[%s988_s1 + $0x170] sm:$0xff] }
   0xd   :  { %492 = vmatpush.bf16.msra.mxu3 %v778_v11  ;;  %v774_v29 = vld [vmem:[%s988_s1 + $0xc8] sm:$0xff]  ;;  %v129_v34 = vunpack.c.l.b16 %v16_v28  ;;  %v130_v41 = vunpack.c.h.b16 %v16_v28  ;;  %v773_v43 = vld [vmem:[%s988_s1 + $0xc0] sm:$0xff]  ;;  %v18_v51 = vld [vmem:[%s990_s0 + $0x18] sm:$0xf] }
   0xe   :  { %454 = vmatpush.bf16.msra.mxu0 %v753_v12  ;;  %v798_v38 = vld [vmem:[%s988_s1 + $0x188] sm:$0xff]  ;;  %v797_v46 = vld [vmem:[%s988_s1 + $0x180] sm:$0xff]  ;;  %v133_v53 = vunpack.c.l.b16 %v18_v51  ;;  %v784_v54 = vld [vmem:[%s988_s1 + $0x118] sm:$0xff] }
   0xf   :  { %467 = vmatpush.bf16.msra.mxu1 %v761_v13  ;;  %v136_v42 = vpack.c.b16 %v129_v34, %v129_v34  ;;  %v137_v47 = vpack.c.b16 %v130_v41, %v130_v41  ;;  %v786_v48 = vld [vmem:[%s988_s1 + $0x128] sm:$0xff]  ;;  %v785_v50 = vld [vmem:[%s988_s1 + $0x120] sm:$0xff]  ;;  %v792_v55 = vld [vmem:[%s988_s1 + $0x158] sm:$0xff] }
  0x10   :  { %480 = vmatpush.bf16.msra.mxu2 %v769_v14  ;;  %v794_v49 = vld [vmem:[%s988_s1 + $0x168] sm:$0xff]  ;;  %v793_v52 = vld [vmem:[%s988_s1 + $0x160] sm:$0xff]  ;;  %v140_v56 = vpack.c.b16 %v133_v53, %v133_v53  ;;  %v783_v57 = vld [vmem:[%s988_s1 + $0x110] sm:$0xff] }
  0x11   :  { %493 = vmatpush.bf16.msra.mxu3 %v777_v15  ;;  %v791_v58 = vld [vmem:[%s988_s1 + $0x150] sm:$0xff]  ;;  %v782_v59 = vld [vmem:[%s988_s1 + $0x108] sm:$0xff]  ;;  %v781_v63 = vld [vmem:[%s988_s1 + $0x100] sm:$0xff] }
  0x12   :  { %455 = vmatpush.bf16.msra.mxu0 %v752_v16  ;;  %v17_v60 = vld [vmem:[%s990_s0 + $0x10] sm:$0xff]  ;;  %v790_v61 = vld [vmem:[%s988_s1 + $0x148] sm:$0xff]  ;;  %v789_v1 = vld [vmem:[%s988_s1 + $0x140] sm:$0xff] }
  0x13   :  { %468 = vmatpush.bf16.msra.mxu1 %v760_v17  ;;  %v131_v62 = vunpack.c.l.b16 %v17_v60  ;;  %v132_v0 = vunpack.c.h.b16 %v17_v60  ;;  %v799_v10 = vld [vmem:[%s989_s2] ss:$0 sm:$0xff] }
  0x14   :  { %481 = vmatpush.bf16.msra.mxu2 %v768_v18 }
  0x15   :  { %494 = vmatpush.bf16.msra.mxu3 %v776_v19  ;;  %v138_v2 = vpack.c.b16 %v131_v62, %v131_v62  ;;  %v139_v3 = vpack.c.b16 %v132_v0, %v132_v0 }
  0x16   :  { %456 = vmatpush.bf16.msra.mxu0 %v751_v20 }
  0x17   :  { %469 = vmatpush.bf16.msra.mxu1 %v759_v21 }
  0x18   :  { %482 = vmatpush.bf16.msra.mxu2 %v767_v22 }
  0x19   :  { %495 = vmatpush.bf16.msra.mxu3 %v775_v23 }
  0x1a   :  { %457 = vmatpush.bf16.msra.mxu0 %v750_v24 }
  0x1b   :  { %470 = vmatpush.bf16.msra.mxu1 %v758_v25 }
  0x1c   :  { %483 = vmatpush.bf16.msra.mxu2 %v766_v27 }
  0x1d   :  { %496 = vmatpush.bf16.msra.mxu3 %v774_v29 }
  0x1e   :  { %458 = vmatpush.bf16.msra.mxu0 %v749_v32 }
  0x1f   :  { %471 = vmatpush.bf16.msra.mxu1 %v757_v33 }
  0x20   :  { %484 = vmatpush.bf16.msra.mxu2 %v765_v35 }
  0x21   :  { %459 = vmatmul.bf16.vlgmr.msra.gmra.mxu0 %v134_v39  ;;  %497 = vmatpush.bf16.msra.mxu3 %v773_v43 }
  0x22   :  { %503 = vmatpush.bf16.msrb.mxu0 %v788_v36  ;;  %472 = vmatmul.bf16.vlgmr.msra.gmra.mxu1 %v135_v40 }
  0x23   :  { %516 = vmatpush.bf16.msrb.mxu1 %v796_v37  ;;  %485 = vmatmul.bf16.vlgmr.msra.gmra.mxu2 %v136_v42 }
  0x24   :  { %535 = vmatpush.bf16.msrb.mxu2 %v798_v38  ;;  %498 = vmatmul.bf16.vlgmr.msra.gmra.mxu3 %v137_v47 }
  0x26   :  { %504 = vmatpush.bf16.msrb.mxu0 %v787_v44 }
  0x27   :  { %517 = vmatpush.bf16.msrb.mxu1 %v795_v45 }
  0x28   :  { %536 = vmatpush.bf16.msrb.mxu2 %v797_v46 }
  0x2a   :  { %505 = vmatpush.bf16.msrb.mxu0 %v786_v48 }
  0x2b   :  { %518 = vmatpush.bf16.msrb.mxu1 %v794_v49 }
  0x2e   :  { %506 = vmatpush.bf16.msrb.mxu0 %v785_v50 }
  0x2f   :  { %519 = vmatpush.bf16.msrb.mxu1 %v793_v52 }
  0x32   :  { %507 = vmatpush.bf16.msrb.mxu0 %v784_v54 }
  0x33   :  { %520 = vmatpush.bf16.msrb.mxu1 %v792_v55  ;;  %748 = vmatmul.msk.bf16.vlgmr.msrb.gmra.mxu2 %vm447_vm0, %v140_v56 }
  0x36   :  { %508 = vmatpush.bf16.msrb.mxu0 %v783_v57 }
  0x37   :  { %521 = vmatpush.bf16.msrb.mxu1 %v791_v58 }
  0x3a   :  { %509 = vmatpush.bf16.msrb.mxu0 %v782_v59 }
  0x3b   :  { %522 = vmatpush.bf16.msrb.mxu1 %v790_v61 }
  0x3e   :  { %510 = vmatpush.bf16.msrb.mxu0 %v781_v63 }
  0x3f   :  { %523 = vmatpush.bf16.msrb.mxu1 %v789_v1 }
  0x41   :  { %511 = vmatmul.bf16.vlgmr.msrb.gmra.mxu0 %v138_v2 }
  0x42   :  { %524 = vmatmul.bf16.vlgmr.msrb.gmra.mxu1 %v139_v3 }
  0x9e   :  { %v460_v4 = vpop.f32.mrf.mxu0 }
  0x9f   :  { %v473_v5 = vpop.f32.mrf.mxu1  ;;  %v461_v12 = vadd.f32 %v799_v10, %v460_v4 }
  0xa1   :  { %v474_v14 = vadd.f32 %v473_v5, %v461_v12 }
  0xa6   :  { %v486_v6 = vpop.f32.mrf.mxu2  ;;  %v462_v7 = vpop.f32.mrf.mxu0 }
  0xa7   :  { %v475_v8 = vpop.f32.mrf.mxu1  ;;  %v499_v9 = vpop.f32.mrf.mxu3  ;;  %v487_v16 = vadd.f32 %v486_v6, %v474_v14 }
  0xa9   :  { %v500_v17 = vadd.f32 %v499_v9, %v487_v16 }
  0xae   :  { %v488_v11 = vpop.f32.mrf.mxu2 }
  0xaf   :  { %v501_v13 = vpop.f32.mrf.mxu3 }
  0xb6   :  { %v538_v15 = vpop.f32.mrf.mxu2 }
  0xbe   :  { %v512_v18 = vpop.f32.mrf.mxu0  ;;  %v540_v21 = vpop.f32.mrf.mxu2 }
  0xbf   :  { %v513_v19 = vadd.f32 %v512_v18, %v500_v17  ;;  %v525_v20 = vpop.f32.mrf.mxu1 }
  0xc1   :  { %v526_v22 = vadd.f32 %v525_v20, %v513_v19 }
  0xc3   :  { %v539_v23 = vadd.f32 %v538_v15, %v526_v22 }
  0xc5   :  { %543 = vst.msk [vmem:[%s991_s3] sm:$0xff] %vm542_vm1, %v539_v23 }
  0xc6   :  { %v514_v24 = vpop.f32.mrf.mxu0 }
  0xc7   :  { %v527_v25 = vpop.f32.mrf.mxu1 }

// kernel: reverse.1
= control target key start
LH: loop header
LB: loop body
LE: loop exit
PB: predicated region body
PF: predicated region fallthrough
CT: control target
= control target key end

     0   :  { %s2022_s6 = smov 0   ;;  %s2024_s7 = smov 0   ;;  %s2295_s0 = inlined_call_operand.vmem [shape: bf16[5,5,64,1600], index: 0, kind: input, shape index: {}]   ;;  %s2296_s1 = inlined_call_operand.vmem [shape: bf16[5,5,64,1600], index: 1, kind: output, shape index: {}]  }
   0x1   :  { %s2026_s8 = smov 0   ;;  %s2028_s9 = smov 0  }
   0x2   :  { %s2030_s10 = smov 0   ;;  %s2032_s11 = smov 0  }
   0x3   :  { %s2034_s12 = smov 0   ;;  %s2036_s13 = smov 0  }
   0x4   :  { %s2038_s14 = smov 0   ;;  %s2040_s15 = smov 0  }
   0x5   :  { %s2042_s16 = smov 0   ;;  %s2044_s17 = smov 0  }
   0x6   :  { %s2046_s18 = smov 0  }
   0x7 LB: > { %s65_s19 = sadd.s32 1, %s2002_s16  ;;  %s73_s20 = sadd.s32 1, %s2006_s17  ;;  %s2010_s18 = sphi %s2046_s18, %s7_s18   ;;  %s2006_s17 = sphi %s2044_s17, %s2310_s17   ;;  %s2002_s16 = sphi %s2042_s16, %s2309_s16   ;;  %s1998_s15 = sphi %s2040_s15, %s2308_s15   ;;  %s1994_s14 = sphi %s2038_s14, %s2307_s14   ;;  %s1990_s13 = sphi %s2036_s13, %s2306_s13   ;;  %s1986_s12 = sphi %s2034_s12, %s2305_s12   ;;  %s1982_s11 = sphi %s2032_s11, %s2304_s11   ;;  %s1978_s10 = sphi %s2030_s10, %s2303_s10   ;;  %s1974_s9 = sphi %s2028_s9, %s2302_s9   ;;  %s1970_s8 = sphi %s2026_s8, %s2301_s8   ;;  %s1966_s7 = sphi %s2024_s7, %s2300_s7   ;;  %s1962_s6 = sphi %s2022_s6, %s2299_s6  }
   0x8   : > { %p67_p0 = scmp.ge.s32.totalorder %s65_s19, 4  ;;  %p1294_p1 = scmp.ge.s32.totalorder %s2010_s18, 5 }
   0x9   : > { %p115_p2 = scmp.lt.s32.totalorder %s2010_s18, 25 }
   0xa   : > { %s2312_s19 = smov (%p67_p0, %s65_s19), 0  ;;  %s2314_s20 = smov (!%p67_p0, %s73_s20), %s2006_s17 }
   0xb   : > { %p116_p3 = pnand %p1294_p1, %p115_p2  ;;  %p75_p4 = scmp.ge.s32.totalorder %s2314_s20, 5 }
   0xc   : > { %s164_s21 = ssub.s32 (!%p116_p3), 4, %s1966_s7  ;;  %s1295_s22 = sshll.u32 (!%p116_p3), %s1962_s6, 1 }
   0xd   : > { %s2316_s20 = smov (%p75_p4, %s2314_s20), 0  ;;  %119 = sbr.rel (%p116_p3) target bundleno = 96 (0x60), region = 20 }
   0xe   : > { %p169_p5 = scmp.lt.s32.totalorder (!%p116_p3), %s164_s21, 4  ;;  %p173_p6 = scmp.lt.s32.totalorder (!%p116_p3), %s1295_s22, 7 }
   0xf   : > { %p193_p7 = scmp.lt.s32.totalorder (!%p116_p3), %s1966_s7, 4 }
  0x12   : > { %s2318_s21 = smov (!%p169_p5, %s164_s21), 4  ;;  %s2320_s22 = smov (!%p173_p6, %s1295_s22), 7 }
  0x13   : > { %s1802_s23 = smul.u32 520, %s2318_s21  ;;  %s2322_s7 = smov (!%p193_p7, %s1966_s7), 4 }
  0x14   : > { %s1801_s24 = smul.u32 13, %s2320_s22 }
  0x15   : > { %s1803_s27 = smul.u32 520, %s2322_s7 }
  0x16   : > { %s182_s25 = sadd.s32 %s1802_s23, %s1801_s24 }
  0x17   : > { %s1296_s26 = sshll.u32 %s182_s25, 2  ;;  %s206_s2 = sadd.s32 %s1803_s27, %s1801_s24 }
  0x18   : > { %s2103_s30 = scalar_lea.vmem %s2295_s0, %s1296_s26  ;;  %s1298_s3 = sshll.u32 %s206_s2, 2 }
  0x19   : > { %v1741_v0 = vld [vmem:[%s2103_s30 + $0x680] sm:$0xff]  ;;  %s2111_s6 = scalar_lea.vmem %s2296_s1, %s1298_s3  ;;  %v1746_v5 = vld [vmem:[%s2103_s30 + $0x6b4] sm:$0xff]  ;;  %v1751_v10 = vld [vmem:[%s2103_s30 + $0x688] sm:$0xff] }
  0x1a   : > { %v1742_v1 = vld [vmem:[%s2103_s30 + $0x4e0] sm:$0xff]  ;;  %1314 = vst [vmem:[%s2111_s6] sm:$0xff] %v1741_v0  ;;  %v1747_v6 = vld [vmem:[%s2103_s30 + $0x514] sm:$0xff]  ;;  %v1752_v11 = vld [vmem:[%s2103_s30 + $0x4e8] sm:$0xff] }
  0x1b   : > { %v1743_v2 = vld [vmem:[%s2103_s30 + $0x340] sm:$0xff]  ;;  %1320 = vst [vmem:[%s2111_s6 + $0x1a0] sm:$0xff] %v1742_v1  ;;  %v1748_v7 = vld [vmem:[%s2103_s30 + $0x374] sm:$0xff]  ;;  %v1753_v12 = vld [vmem:[%s2103_s30 + $0x348] sm:$0xff] }
  0x1c   : > { %v1744_v3 = vld [vmem:[%s2103_s30 + $0x1a0] sm:$0xff]  ;;  %1326 = vst [vmem:[%s2111_s6 + $0x340] sm:$0xff] %v1743_v2  ;;  %v1749_v8 = vld [vmem:[%s2103_s30 + $0x1d4] sm:$0xff]  ;;  %v1754_v13 = vld [vmem:[%s2103_s30 + $0x1a8] sm:$0xff] }
  0x1d   : > { %v1745_v4 = vld [vmem:[%s2103_s30] sm:$0xff]  ;;  %1332 = vst [vmem:[%s2111_s6 + $0x4e0] sm:$0xff] %v1744_v3  ;;  %v1750_v9 = vld [vmem:[%s2103_s30 + $0x34] sm:$0xff]  ;;  %v1755_v14 = vld [vmem:[%s2103_s30 + $0x8] sm:$0xff] }
  0x1e   : > { %1338 = vst [vmem:[%s2111_s6 + $0x680] sm:$0xff] %v1745_v4  ;;  %v1756_v15 = vld [vmem:[%s2103_s30 + $0x6bc] sm:$0xff]  ;;  %v1761_v20 = vld [vmem:[%s2103_s30 + $0x690] sm:$0xff]  ;;  %v1766_v25 = vld [vmem:[%s2103_s30 + $0x6c4] sm:$0xff] }
  0x1f   : > { %1344 = vst [vmem:[%s2111_s6 + $0x34] sm:$0xff] %v1746_v5  ;;  %v1757_v16 = vld [vmem:[%s2103_s30 + $0x51c] sm:$0xff]  ;;  %v1762_v21 = vld [vmem:[%s2103_s30 + $0x4f0] sm:$0xff]  ;;  %v1767_v26 = vld [vmem:[%s2103_s30 + $0x524] sm:$0xff] }
  0x20   : > { %1350 = vst [vmem:[%s2111_s6 + $0x1d4] sm:$0xff] %v1747_v6  ;;  %v1758_v17 = vld [vmem:[%s2103_s30 + $0x37c] sm:$0xff]  ;;  %v1763_v22 = vld [vmem:[%s2103_s30 + $0x350] sm:$0xff]  ;;  %v1768_v27 = vld [vmem:[%s2103_s30 + $0x384] sm:$0xff] }
  0x21   : > { %1356 = vst [vmem:[%s2111_s6 + $0x374] sm:$0xff] %v1748_v7  ;;  %v1759_v18 = vld [vmem:[%s2103_s30 + $0x1dc] sm:$0xff]  ;;  %v1764_v23 = vld [vmem:[%s2103_s30 + $0x1b0] sm:$0xff]  ;;  %v1769_v28 = vld [vmem:[%s2103_s30 + $0x1e4] sm:$0xff] }
  0x22   : > { %1362 = vst [vmem:[%s2111_s6 + $0x514] sm:$0xff] %v1749_v8  ;;  %v1760_v19 = vld [vmem:[%s2103_s30 + $0x3c] sm:$0xff]  ;;  %v1765_v24 = vld [vmem:[%s2103_s30 + $0x10] sm:$0xff]  ;;  %v1770_v29 = vld [vmem:[%s2103_s30 + $0x44] sm:$0xff] }
  0x23   : > { %1368 = vst [vmem:[%s2111_s6 + $0x6b4] sm:$0xff] %v1750_v9  ;;  %v1771_v30 = vld [vmem:[%s2103_s30 + $0x698] sm:$0xff]  ;;  %v1776_v35 = vld [vmem:[%s2103_s30 + $0x6cc] sm:$0xff]  ;;  %v1781_v40 = vld [vmem:[%s2103_s30 + $0x6a0] sm:$0xff] }
  0x24   : > { %1384 = vst [vmem:[%s2111_s6 + $0x8] sm:$0xff] %v1751_v10  ;;  %v1772_v31 = vld [vmem:[%s2103_s30 + $0x4f8] sm:$0xff]  ;;  %v1777_v36 = vld [vmem:[%s2103_s30 + $0x52c] sm:$0xff]  ;;  %v1782_v41 = vld [vmem:[%s2103_s30 + $0x500] sm:$0xff] }
  0x25   : > { %1390 = vst [vmem:[%s2111_s6 + $0x1a8] sm:$0xff] %v1752_v11  ;;  %v1773_v32 = vld [vmem:[%s2103_s30 + $0x358] sm:$0xff]  ;;  %v1778_v37 = vld [vmem:[%s2103_s30 + $0x38c] sm:$0xff]  ;;  %v1783_v42 = vld [vmem:[%s2103_s30 + $0x360] sm:$0xff] }
  0x26   : > { %1396 = vst [vmem:[%s2111_s6 + $0x348] sm:$0xff] %v1753_v12  ;;  %v1774_v33 = vld [vmem:[%s2103_s30 + $0x1b8] sm:$0xff]  ;;  %v1779_v38 = vld [vmem:[%s2103_s30 + $0x1ec] sm:$0xff]  ;;  %v1784_v43 = vld [vmem:[%s2103_s30 + $0x1c0] sm:$0xff] }
  0x27   : > { %1402 = vst [vmem:[%s2111_s6 + $0x4e8] sm:$0xff] %v1754_v13  ;;  %v1775_v34 = vld [vmem:[%s2103_s30 + $0x18] sm:$0xff]  ;;  %v1780_v39 = vld [vmem:[%s2103_s30 + $0x4c] sm:$0xff]  ;;  %v1785_v44 = vld [vmem:[%s2103_s30 + $0x20] sm:$0xff] }
  0x28   : > { %1408 = vst [vmem:[%s2111_s6 + $0x688] sm:$0xff] %v1755_v14  ;;  %v1786_v45 = vld [vmem:[%s2103_s30 + $0x6d4] sm:$0xff]  ;;  %v1791_v50 = vld [vmem:[%s2103_s30 + $0x6a8] sm:$0xff]  ;;  %v1796_v55 = vld [vmem:[%s2103_s30 + $0x6dc] sm:$0xff] }
  0x29   : > { %1414 = vst [vmem:[%s2111_s6 + $0x3c] sm:$0xff] %v1756_v15  ;;  %v1787_v46 = vld [vmem:[%s2103_s30 + $0x534] sm:$0xff]  ;;  %v1792_v51 = vld [vmem:[%s2103_s30 + $0x508] sm:$0xff]  ;;  %v1797_v56 = vld [vmem:[%s2103_s30 + $0x53c] sm:$0xff] }
  0x2a   : > { %1420 = vst [vmem:[%s2111_s6 + $0x1dc] sm:$0xff] %v1757_v16  ;;  %v1788_v47 = vld [vmem:[%s2103_s30 + $0x394] sm:$0xff]  ;;  %v1793_v52 = vld [vmem:[%s2103_s30 + $0x368] sm:$0xff]  ;;  %v1798_v57 = vld [vmem:[%s2103_s30 + $0x39c] sm:$0xff] }
  0x2b   : > { %1426 = vst [vmem:[%s2111_s6 + $0x37c] sm:$0xff] %v1758_v17  ;;  %v1789_v48 = vld [vmem:[%s2103_s30 + $0x1f4] sm:$0xff]  ;;  %v1794_v53 = vld [vmem:[%s2103_s30 + $0x1c8] sm:$0xff]  ;;  %v1799_v58 = vld [vmem:[%s2103_s30 + $0x1fc] sm:$0xff] }
  0x2c   : > { %1432 = vst [vmem:[%s2111_s6 + $0x51c] sm:$0xff] %v1759_v18  ;;  %v1790_v49 = vld [vmem:[%s2103_s30 + $0x54] sm:$0xff]  ;;  %v1795_v54 = vld [vmem:[%s2103_s30 + $0x28] sm:$0xff]  ;;  %v1800_v59 = vld [vmem:[%s2103_s30 + $0x5c] sm:$0xff] }
  0x2d   : > { %1438 = vst [vmem:[%s2111_s6 + $0x6bc] sm:$0xff] %v1760_v19  ;;  %v1719_v60 = vld [vmem:[%s2103_s30 + $0x6b0] sm:$0xf]  ;;  %v1729_v1 = vld [vmem:[%s2103_s30 + $0x6e4] sm:$0xf] }
  0x2e   : > { %1454 = vst [vmem:[%s2111_s6 + $0x10] sm:$0xff] %v1761_v20  ;;  %v1721_v61 = vld [vmem:[%s2103_s30 + $0x510] sm:$0xf]  ;;  %v1731_v2 = vld [vmem:[%s2103_s30 + $0x544] sm:$0xf] }
  0x2f   : > { %1460 = vst [vmem:[%s2111_s6 + $0x1b0] sm:$0xff] %v1762_v21  ;;  %v1723_v62 = vld [vmem:[%s2103_s30 + $0x370] sm:$0xf]  ;;  %v1733_v3 = vld [vmem:[%s2103_s30 + $0x3a4] sm:$0xf] }
  0x30   : > { %1466 = vst [vmem:[%s2111_s6 + $0x350] sm:$0xff] %v1763_v22  ;;  %v1725_v63 = vld [vmem:[%s2103_s30 + $0x1d0] sm:$0xf]  ;;  %v1735_v4 = vld [vmem:[%s2103_s30 + $0x204] sm:$0xf] }
  0x31   : > { %1472 = vst [vmem:[%s2111_s6 + $0x4f0] sm:$0xff] %v1764_v23  ;;  %v1727_v0 = vld [vmem:[%s2103_s30 + $0x30] sm:$0xf]  ;;  %v1737_v5 = vld [vmem:[%s2103_s30 + $0x64] sm:$0xf] }
  0x32   : > { %1478 = vst [vmem:[%s2111_s6 + $0x690] sm:$0xff] %v1765_v24 }
  0x33   : > { %1484 = vst [vmem:[%s2111_s6 + $0x44] sm:$0xff] %v1766_v25 }
  0x34   : > { %1490 = vst [vmem:[%s2111_s6 + $0x1e4] sm:$0xff] %v1767_v26 }
  0x35   : > { %1496 = vst [vmem:[%s2111_s6 + $0x384] sm:$0xff] %v1768_v27 }
  0x36   : > { %1502 = vst [vmem:[%s2111_s6 + $0x524] sm:$0xff] %v1769_v28 }
  0x37   : > { %1508 = vst [vmem:[%s2111_s6 + $0x6c4] sm:$0xff] %v1770_v29 }
  0x38   : > { %1524 = vst [vmem:[%s2111_s6 + $0x18] sm:$0xff] %v1771_v30 }
  0x39   : > { %1530 = vst [vmem:[%s2111_s6 + $0x1b8] sm:$0xff] %v1772_v31 }
  0x3a   : > { %1536 = vst [vmem:[%s2111_s6 + $0x358] sm:$0xff] %v1773_v32 }
  0x3b   : > { %1542 = vst [vmem:[%s2111_s6 + $0x4f8] sm:$0xff] %v1774_v33 }
  0x3c   : > { %1548 = vst [vmem:[%s2111_s6 + $0x698] sm:$0xff] %v1775_v34 }
  0x3d   : > { %1554 = vst [vmem:[%s2111_s6 + $0x4c] sm:$0xff] %v1776_v35 }
  0x3e   : > { %1560 = vst [vmem:[%s2111_s6 + $0x1ec] sm:$0xff] %v1777_v36 }
  0x3f   : > { %1566 = vst [vmem:[%s2111_s6 + $0x38c] sm:$0xff] %v1778_v37 }
  0x40   : > { %1572 = vst [vmem:[%s2111_s6 + $0x52c] sm:$0xff] %v1779_v38 }
  0x41   : > { %1578 = vst [vmem:[%s2111_s6 + $0x6cc] sm:$0xff] %v1780_v39 }
  0x42   : > { %1594 = vst [vmem:[%s2111_s6 + $0x20] sm:$0xff] %v1781_v40 }
  0x43   : > { %1600 = vst [vmem:[%s2111_s6 + $0x1c0] sm:$0xff] %v1782_v41 }
  0x44   : > { %1606 = vst [vmem:[%s2111_s6 + $0x360] sm:$0xff] %v1783_v42 }
  0x45   : > { %1612 = vst [vmem:[%s2111_s6 + $0x500] sm:$0xff] %v1784_v43 }
  0x46   : > { %1618 = vst [vmem:[%s2111_s6 + $0x6a0] sm:$0xff] %v1785_v44 }
  0x47   : > { %1624 = vst [vmem:[%s2111_s6 + $0x54] sm:$0xff] %v1786_v45 }
  0x48   : > { %1630 = vst [vmem:[%s2111_s6 + $0x1f4] sm:$0xff] %v1787_v46 }
  0x49   : > { %1636 = vst [vmem:[%s2111_s6 + $0x394] sm:$0xff] %v1788_v47 }
  0x4a   : > { %1642 = vst [vmem:[%s2111_s6 + $0x534] sm:$0xff] %v1789_v48 }
  0x4b   : > { %1648 = vst [vmem:[%s2111_s6 + $0x6d4] sm:$0xff] %v1790_v49 }
  0x4c   : > { %1664 = vst [vmem:[%s2111_s6 + $0x28] sm:$0xff] %v1791_v50 }
  0x4d   : > { %1670 = vst [vmem:[%s2111_s6 + $0x1c8] sm:$0xff] %v1792_v51 }
  0x4e   : > { %1676 = vst [vmem:[%s2111_s6 + $0x368] sm:$0xff] %v1793_v52 }
  0x4f   : > { %1682 = vst [vmem:[%s2111_s6 + $0x508] sm:$0xff] %v1794_v53 }
  0x50   : > { %1688 = vst [vmem:[%s2111_s6 + $0x6a8] sm:$0xff] %v1795_v54 }
  0x51   : > { %1694 = vst [vmem:[%s2111_s6 + $0x5c] sm:$0xff] %v1796_v55 }
  0x52   : > { %1700 = vst [vmem:[%s2111_s6 + $0x1fc] sm:$0xff] %v1797_v56 }
  0x53   : > { %1706 = vst [vmem:[%s2111_s6 + $0x39c] sm:$0xff] %v1798_v57 }
  0x54   : > { %1712 = vst [vmem:[%s2111_s6 + $0x53c] sm:$0xff] %v1799_v58 }
  0x55   : > { %1718 = vst [vmem:[%s2111_s6 + $0x6dc] sm:$0xff] %v1800_v59 }
  0x56   : > { %1720 = vst [vmem:[%s2111_s6 + $0x30] sm:$0xf] %v1719_v60 }
  0x57   : > { %1722 = vst [vmem:[%s2111_s6 + $0x1d0] sm:$0xf] %v1721_v61 }
  0x58   : > { %1724 = vst [vmem:[%s2111_s6 + $0x370] sm:$0xf] %v1723_v62 }
  0x59   : > { %1726 = vst [vmem:[%s2111_s6 + $0x510] sm:$0xf] %v1725_v63 }
  0x5a   : > { %1728 = vst [vmem:[%s2111_s6 + $0x6b0] sm:$0xf] %v1727_v0 }
  0x5b   : > { %1730 = vst [vmem:[%s2111_s6 + $0x64] sm:$0xf] %v1729_v1 }
  0x5c   : > { %1732 = vst [vmem:[%s2111_s6 + $0x204] sm:$0xf] %v1731_v2 }
  0x5d   : > { %1734 = vst [vmem:[%s2111_s6 + $0x3a4] sm:$0xf] %v1733_v3 }
  0x5e   : > { %1736 = vst [vmem:[%s2111_s6 + $0x544] sm:$0xf] %v1735_v4 }
  0x5f   : > { %1738 = vst [vmem:[%s2111_s6 + $0x6e4] sm:$0xf] %v1737_v5 }
  0x60 PF: > { %s7_s18 = sadd.s32 1, %s2010_s18   ;;  %s2299_s6 = smov %s1970_s8 }
  0x61   : > { %p2251_p8 = scmp.ge.s32.totalorder %s7_s18, 30   ;;  %s2300_s7 = smov %s1974_s9 }
  0x62   : > { %s2301_s8 = smov %s1978_s10  ;;  %s2302_s9 = smov %s1982_s11 }
  0x63   : > { %s2303_s10 = smov %s1986_s12  ;;  %s2304_s11 = smov %s1990_s13 }
  0x64   : > { %s2305_s12 = smov %s1994_s14  ;;  %s2306_s13 = smov %s1998_s15 }
  0x65   : > { %s2307_s14 = smov %s2002_s16  ;;  %s2308_s15 = smov %s2006_s17 }
  0x66   : > { %s2309_s16 = smov %s2312_s19  ;;  %s2310_s17 = smov %s2316_s20 }
  0x67   :  { %6 = sbr.rel (!%p2251_p8) target bundleno = 7 (0x7), region = 359 }

// kernel: forward.12
= control target key start
LH: loop header
LB: loop body
LE: loop exit
PB: predicated region body
PF: predicated region fallthrough
CT: control target
= control target key end

     0   :  { %vm877_vm0 = vcmask 523264   ;;  %vm1059_vm1 = vcmask 261120   ;;  %vm1098_vm4 = vcmask 257024   ;;  %s1982_s1 = inlined_call_operand.vmem [shape: bf16[1600,32], index: 1, kind: input, shape index: {}]   ;;  %s1983_s2 = inlined_call_operand.vmem [shape: f32[1,32], index: 2, kind: input, shape index: {}]   ;;  %s1984_s0 = inlined_call_operand.vmem [shape: bf16[8,1600], index: 0, kind: input, shape index: {}]   ;;  %s1985_s4 = inlined_call_operand.vmem [shape: f32[1,32], index: 4, kind: input, shape index: {}]   ;;  %s1986_s3 = inlined_call_operand.vmem [shape: f32[32,32], index: 3, kind: input, shape index: {}]   ;;  %s1987_s5 = inlined_call_operand.vmem [shape: bf16[8,32], index: 5, kind: output, shape index: {}]  }
   0x1   :  { %v1513_v0 = vld [vmem:[%s1982_s1 + $0x38] sm:$0xff]  ;;  %v1512_v4 = vld [vmem:[%s1982_s1 + $0x30] sm:$0xff]  ;;  %v1511_v8 = vld [vmem:[%s1982_s1 + $0x28] sm:$0xff] }
   0x2   :  { %v1529_v1 = vld [vmem:[%s1982_s1 + $0xb8] sm:$0xff]  ;;  %881 = vmatpush.bf16.msra.mxu0 %v1513_v0  ;;  %v1528_v5 = vld [vmem:[%s1982_s1 + $0xb0] sm:$0xff]  ;;  %v1527_v9 = vld [vmem:[%s1982_s1 + $0xa8] sm:$0xff] }
   0x3   :  { %v1537_v2 = vld [vmem:[%s1982_s1 + $0xf8] sm:$0xff]  ;;  %907 = vmatpush.bf16.msra.mxu2 %v1529_v1  ;;  %v1536_v6 = vld [vmem:[%s1982_s1 + $0xf0] sm:$0xff]  ;;  %v1535_v10 = vld [vmem:[%s1982_s1 + $0xe8] sm:$0xff] }
   0x4   :  { %v1521_v3 = vld [vmem:[%s1982_s1 + $0x78] sm:$0xff]  ;;  %920 = vmatpush.bf16.msra.mxu3 %v1537_v2  ;;  %v1520_v7 = vld [vmem:[%s1982_s1 + $0x70] sm:$0xff]  ;;  %v1519_v11 = vld [vmem:[%s1982_s1 + $0x68] sm:$0xff] }
   0x5   :  { %894 = vmatpush.bf16.msra.mxu1 %v1521_v3  ;;  %v1510_v12 = vld [vmem:[%s1982_s1 + $0x20] sm:$0xff]  ;;  %v1509_v16 = vld [vmem:[%s1982_s1 + $0x18] sm:$0xff]  ;;  %v1508_v20 = vld [vmem:[%s1982_s1 + $0x10] sm:$0xff] }
   0x6   :  { %882 = vmatpush.bf16.msra.mxu0 %v1512_v4  ;;  %v1526_v13 = vld [vmem:[%s1982_s1 + $0xa0] sm:$0xff]  ;;  %v1525_v17 = vld [vmem:[%s1982_s1 + $0x98] sm:$0xff]  ;;  %v1524_v21 = vld [vmem:[%s1982_s1 + $0x90] sm:$0xff] }
   0x7   :  { %908 = vmatpush.bf16.msra.mxu2 %v1528_v5  ;;  %v1534_v14 = vld [vmem:[%s1982_s1 + $0xe0] sm:$0xff]  ;;  %v1533_v18 = vld [vmem:[%s1982_s1 + $0xd8] sm:$0xff]  ;;  %v1532_v22 = vld [vmem:[%s1982_s1 + $0xd0] sm:$0xff] }
   0x8   :  { %921 = vmatpush.bf16.msra.mxu3 %v1536_v6  ;;  %v1518_v15 = vld [vmem:[%s1982_s1 + $0x60] sm:$0xff]  ;;  %v1517_v19 = vld [vmem:[%s1982_s1 + $0x58] sm:$0xff]  ;;  %v1516_v23 = vld [vmem:[%s1982_s1 + $0x50] sm:$0xff] }
   0x9   :  { %895 = vmatpush.bf16.msra.mxu1 %v1520_v7  ;;  %v1507_v24 = vld [vmem:[%s1982_s1 + $0x8] sm:$0xff]  ;;  %v21_v29 = vld [vmem:[%s1984_s0] sm:$0xff]  ;;  %v1545_v35 = vld [vmem:[%s1982_s1 + $0x138] sm:$0xff] }
   0xa   :  { %883 = vmatpush.bf16.msra.mxu0 %v1511_v8  ;;  %v1523_v25 = vld [vmem:[%s1982_s1 + $0x88] sm:$0xff]  ;;  %v1506_v31 = vld [vmem:[%s1982_s1] sm:$0xff]  ;;  %v239_v33 = vunpack.c.l.b16 %v21_v29  ;;  %v1561_v37 = vld [vmem:[%s1982_s1 + $0x1b8] sm:$0xff]  ;;  %v240_v41 = vunpack.c.h.b16 %v21_v29 }
   0xb   :  { %909 = vmatpush.bf16.msra.mxu2 %v1527_v9  ;;  %v22_v26 = vld [vmem:[%s1984_s0 + $0x8] sm:$0xff]  ;;  %v1522_v32 = vld [vmem:[%s1982_s1 + $0x80] sm:$0xff]  ;;  %v1569_v38 = vld [vmem:[%s1982_s1 + $0x1f8] sm:$0xff] }
   0xc   :  { %922 = vmatpush.bf16.msra.mxu3 %v1535_v10  ;;  %v1531_v27 = vld [vmem:[%s1982_s1 + $0xc8] sm:$0xff]  ;;  %v241_v30 = vunpack.c.l.b16 %v22_v26  ;;  %v1530_v34 = vld [vmem:[%s1982_s1 + $0xc0] sm:$0xff]  ;;  %v242_v36 = vunpack.c.h.b16 %v22_v26  ;;  %v1553_v42 = vld [vmem:[%s1982_s1 + $0x178] sm:$0xff]  ;;  %v252_v43 = vpack.c.b16 %v239_v33, %v239_v33  ;;  %v253_v48 = vpack.c.b16 %v240_v41, %v240_v41 }
   0xd   :  { %896 = vmatpush.bf16.msra.mxu1 %v1519_v11  ;;  %v1515_v28 = vld [vmem:[%s1982_s1 + $0x48] sm:$0xff]  ;;  %v1514_v39 = vld [vmem:[%s1982_s1 + $0x40] sm:$0xff]  ;;  %v1544_v44 = vld [vmem:[%s1982_s1 + $0x130] sm:$0xff] }
   0xe   :  { %884 = vmatpush.bf16.msra.mxu0 %v1510_v12  ;;  %v254_v40 = vpack.c.b16 %v241_v30, %v241_v30  ;;  %v255_v45 = vpack.c.b16 %v242_v36, %v242_v36  ;;  %v1560_v46 = vld [vmem:[%s1982_s1 + $0x1b0] sm:$0xff]  ;;  %v1543_v50 = vld [vmem:[%s1982_s1 + $0x128] sm:$0xff]  ;;  %v1542_v54 = vld [vmem:[%s1982_s1 + $0x120] sm:$0xff] }
   0xf   :  { %910 = vmatpush.bf16.msra.mxu2 %v1526_v13  ;;  %v1568_v47 = vld [vmem:[%s1982_s1 + $0x1f0] sm:$0xff]  ;;  %v1559_v51 = vld [vmem:[%s1982_s1 + $0x1a8] sm:$0xff]  ;;  %v1558_v55 = vld [vmem:[%s1982_s1 + $0x1a0] sm:$0xff] }
  0x10   :  { %923 = vmatpush.bf16.msra.mxu3 %v1534_v14  ;;  %v1552_v49 = vld [vmem:[%s1982_s1 + $0x170] sm:$0xff]  ;;  %v1567_v52 = vld [vmem:[%s1982_s1 + $0x1e8] sm:$0xff]  ;;  %v1566_v56 = vld [vmem:[%s1982_s1 + $0x1e0] sm:$0xff] }
  0x11   :  { %897 = vmatpush.bf16.msra.mxu1 %v1518_v15  ;;  %v1551_v53 = vld [vmem:[%s1982_s1 + $0x168] sm:$0xff]  ;;  %v1550_v57 = vld [vmem:[%s1982_s1 + $0x160] sm:$0xff]  ;;  %v1541_v58 = vld [vmem:[%s1982_s1 + $0x118] sm:$0xff] }
  0x12   :  { %885 = vmatpush.bf16.msra.mxu0 %v1509_v16  ;;  %v1557_v59 = vld [vmem:[%s1982_s1 + $0x198] sm:$0xff]  ;;  %v1540_v62 = vld [vmem:[%s1982_s1 + $0x110] sm:$0xff]  ;;  %v1539_v2 = vld [vmem:[%s1982_s1 + $0x108] sm:$0xff] }
  0x13   :  { %911 = vmatpush.bf16.msra.mxu2 %v1525_v17  ;;  %v1565_v60 = vld [vmem:[%s1982_s1 + $0x1d8] sm:$0xff]  ;;  %v1556_v63 = vld [vmem:[%s1982_s1 + $0x190] sm:$0xff]  ;;  %v1555_v3 = vld [vmem:[%s1982_s1 + $0x188] sm:$0xff] }
  0x14   :  { %924 = vmatpush.bf16.msra.mxu3 %v1533_v18  ;;  %v1549_v61 = vld [vmem:[%s1982_s1 + $0x158] sm:$0xff]  ;;  %v1564_v0 = vld [vmem:[%s1982_s1 + $0x1d0] sm:$0xff]  ;;  %v1563_v4 = vld [vmem:[%s1982_s1 + $0x1c8] sm:$0xff] }
  0x15   :  { %898 = vmatpush.bf16.msra.mxu1 %v1517_v19  ;;  %v1548_v1 = vld [vmem:[%s1982_s1 + $0x150] sm:$0xff]  ;;  %v24_v5 = vld [vmem:[%s1984_s0 + $0x18] sm:$0xff]  ;;  %v1547_v7 = vld [vmem:[%s1982_s1 + $0x148] sm:$0xff] }
  0x16   :  { %886 = vmatpush.bf16.msra.mxu0 %v1508_v20  ;;  %v23_v6 = vld [vmem:[%s1984_s0 + $0x10] sm:$0xff]  ;;  %v1538_v8 = vld [vmem:[%s1982_s1 + $0x100] sm:$0xff]  ;;  %v245_v9 = vunpack.c.l.b16 %v24_v5  ;;  %v246_v13 = vunpack.c.h.b16 %v24_v5  ;;  %v1577_v14 = vld [vmem:[%s1982_s1 + $0x238] sm:$0xff] }
  0x17   :  { %912 = vmatpush.bf16.msra.mxu2 %v1524_v21  ;;  %v1554_v10 = vld [vmem:[%s1982_s1 + $0x180] sm:$0xff]  ;;  %v243_v12 = vunpack.c.l.b16 %v23_v6  ;;  %v1593_v15 = vld [vmem:[%s1982_s1 + $0x2b8] sm:$0xff]  ;;  %v244_v18 = vunpack.c.h.b16 %v23_v6  ;;  %v1591_v29 = vld [vmem:[%s1982_s1 + $0x2a8] sm:$0xff] }
  0x18   :  { %925 = vmatpush.bf16.msra.mxu3 %v1532_v22  ;;  %v1562_v11 = vld [vmem:[%s1982_s1 + $0x1c0] sm:$0xff]  ;;  %v1601_v16 = vld [vmem:[%s1982_s1 + $0x2f8] sm:$0xff]  ;;  %v258_v20 = vpack.c.b16 %v245_v9, %v245_v9  ;;  %v259_v22 = vpack.c.b16 %v246_v13, %v246_v13  ;;  %v1599_v30 = vld [vmem:[%s1982_s1 + $0x2e8] sm:$0xff] }
  0x19   :  { %899 = vmatpush.bf16.msra.mxu1 %v1516_v23  ;;  %v1546_v17 = vld [vmem:[%s1982_s1 + $0x140] sm:$0xff]  ;;  %v1585_v19 = vld [vmem:[%s1982_s1 + $0x278] sm:$0xff]  ;;  %v256_v21 = vpack.c.b16 %v243_v12, %v243_v12  ;;  %v1576_v23 = vld [vmem:[%s1982_s1 + $0x230] sm:$0xff]  ;;  %v257_v26 = vpack.c.b16 %v244_v18, %v244_v18 }
  0x1a   :  { %887 = vmatpush.bf16.msra.mxu0 %v1507_v24  ;;  %v1592_v24 = vld [vmem:[%s1982_s1 + $0x2b0] sm:$0xff]  ;;  %v1590_v33 = vld [vmem:[%s1982_s1 + $0x2a0] sm:$0xff]  ;;  %v1573_v36 = vld [vmem:[%s1982_s1 + $0x218] sm:$0xff] }
  0x1b   :  { %913 = vmatpush.bf16.msra.mxu2 %v1523_v25  ;;  %v1600_v25 = vld [vmem:[%s1982_s1 + $0x2f0] sm:$0xff]  ;;  %v1606_v13 = vld [vmem:[%s1983_s2] ss:$0 sm:$0xff] }
  0x1c   :  { %926 = vmatpush.bf16.msra.mxu3 %v1531_v27  ;;  %v1584_v27 = vld [vmem:[%s1982_s1 + $0x270] sm:$0xff] }
  0x1d   :  { %900 = vmatpush.bf16.msra.mxu1 %v1515_v28  ;;  %v1575_v28 = vld [vmem:[%s1982_s1 + $0x228] sm:$0xff]  ;;  %v1588_v41 = vld [vmem:[%s1982_s1 + $0x290] sm:$0xff] }
  0x1e   :  { %888 = vmatpush.bf16.msra.mxu0 %v1506_v31  ;;  %v1583_v31 = vld [vmem:[%s1982_s1 + $0x268] sm:$0xff] }
  0x1f   :  { %914 = vmatpush.bf16.msra.mxu2 %v1522_v32  ;;  %v1574_v32 = vld [vmem:[%s1982_s1 + $0x220] sm:$0xff] }
  0x20   :  { %927 = vmatpush.bf16.msra.mxu3 %v1530_v34  ;;  %v1598_v34 = vld [vmem:[%s1982_s1 + $0x2e0] sm:$0xff] }
  0x21   :  { %901 = vmatpush.bf16.msra.mxu1 %v1514_v39  ;;  %889 = vmatmul.bf16.vlgmr.msra.gmra.mxu0 %v252_v43  ;;  %v1581_v39 = vld [vmem:[%s1982_s1 + $0x258] sm:$0xff]  ;;  %v1580_v43 = vld [vmem:[%s1982_s1 + $0x250] sm:$0xff] }
  0x22   :  { %933 = vmatpush.bf16.msrb.mxu0 %v1545_v35  ;;  %915 = vmatmul.bf16.vlgmr.msra.gmra.mxu2 %v254_v40  ;;  %v1582_v35 = vld [vmem:[%s1982_s1 + $0x260] sm:$0xff]  ;;  %v1572_v40 = vld [vmem:[%s1982_s1 + $0x210] sm:$0xff] }
  0x23   :  { %959 = vmatpush.bf16.msrb.mxu2 %v1561_v37  ;;  %928 = vmatmul.bf16.vlgmr.msra.gmra.mxu3 %v255_v45  ;;  %v1589_v37 = vld [vmem:[%s1982_s1 + $0x298] sm:$0xff]  ;;  %v1587_v45 = vld [vmem:[%s1982_s1 + $0x288] sm:$0xff] }
  0x24   :  { %972 = vmatpush.bf16.msrb.mxu3 %v1569_v38  ;;  %902 = vmatmul.bf16.vlgmr.msra.gmra.mxu1 %v253_v48  ;;  %v1597_v38 = vld [vmem:[%s1982_s1 + $0x2d8] sm:$0xff]  ;;  %v1595_v48 = vld [vmem:[%s1982_s1 + $0x2c8] sm:$0xff] }
  0x25   :  { %946 = vmatpush.bf16.msrb.mxu1 %v1553_v42  ;;  %v1596_v42 = vld [vmem:[%s1982_s1 + $0x2d0] sm:$0xff] }
  0x26   :  { %934 = vmatpush.bf16.msrb.mxu0 %v1544_v44  ;;  %v1571_v44 = vld [vmem:[%s1982_s1 + $0x208] sm:$0xff] }
  0x27   :  { %960 = vmatpush.bf16.msrb.mxu2 %v1560_v46  ;;  %v25_v46 = vld [vmem:[%s1984_s0 + $0x20] sm:$0xff] }
  0x28   :  { %973 = vmatpush.bf16.msrb.mxu3 %v1568_v47  ;;  %v26_v47 = vld [vmem:[%s1984_s0 + $0x28] sm:$0xff] }
  0x29   :  { %947 = vmatpush.bf16.msrb.mxu1 %v1552_v49  ;;  %v1579_v49 = vld [vmem:[%s1982_s1 + $0x248] sm:$0xff] }
  0x2a   :  { %935 = vmatpush.bf16.msrb.mxu0 %v1543_v50  ;;  %v247_v50 = vunpack.c.l.b16 %v25_v46 }
  0x2b   :  { %961 = vmatpush.bf16.msrb.mxu2 %v1559_v51  ;;  %v249_v51 = vunpack.c.l.b16 %v26_v47 }
  0x2c   :  { %974 = vmatpush.bf16.msrb.mxu3 %v1567_v52  ;;  %v1570_v52 = vld [vmem:[%s1982_s1 + $0x200] sm:$0xff] }
  0x2d   :  { %948 = vmatpush.bf16.msrb.mxu1 %v1551_v53  ;;  %v1586_v53 = vld [vmem:[%s1982_s1 + $0x280] sm:$0xff] }
  0x2e   :  { %936 = vmatpush.bf16.msrb.mxu0 %v1542_v54  ;;  %v250_v54 = vunpack.c.h.b16 %v26_v47 }
  0x2f   :  { %962 = vmatpush.bf16.msrb.mxu2 %v1558_v55  ;;  %v1594_v55 = vld [vmem:[%s1982_s1 + $0x2c0] sm:$0xff] }
  0x30   :  { %975 = vmatpush.bf16.msrb.mxu3 %v1566_v56  ;;  %v1605_v56 = vld [vmem:[%s1982_s1 + $0x318] sm:$0xff] }
  0x31   :  { %949 = vmatpush.bf16.msrb.mxu1 %v1550_v57  ;;  %v248_v57 = vunpack.c.h.b16 %v25_v46 }
  0x32   :  { %937 = vmatpush.bf16.msrb.mxu0 %v1541_v58  ;;  %v1578_v58 = vld [vmem:[%s1982_s1 + $0x240] sm:$0xff] }
  0x33   :  { %963 = vmatpush.bf16.msrb.mxu2 %v1557_v59  ;;  %v260_v59 = vpack.c.b16 %v247_v50, %v247_v50  ;;  %v1607_v50 = vld [vmem:[%s1985_s4] ss:$0 sm:$0xff] }
  0x34   :  { %976 = vmatpush.bf16.msrb.mxu3 %v1565_v60  ;;  %v262_v60 = vpack.c.b16 %v249_v51, %v249_v51 }
  0x35   :  { %950 = vmatpush.bf16.msrb.mxu1 %v1549_v61  ;;  %v263_v61 = vpack.c.b16 %v250_v54, %v250_v54 }
  0x36   :  { %938 = vmatpush.bf16.msrb.mxu0 %v1540_v62  ;;  %v261_v62 = vpack.c.b16 %v248_v57, %v248_v57 }
  0x37   :  { %964 = vmatpush.bf16.msrb.mxu2 %v1556_v63  ;;  %v1604_v63 = vld [vmem:[%s1982_s1 + $0x310] sm:$0xff] }
  0x38   :  { %977 = vmatpush.bf16.msrb.mxu3 %v1564_v0  ;;  %v1603_v0 = vld [vmem:[%s1982_s1 + $0x308] sm:$0xff] }
  0x39   :  { %951 = vmatpush.bf16.msrb.mxu1 %v1548_v1  ;;  %v27_v1 = vld [vmem:[%s1984_s0 + $0x30] sm:$0xf] }
  0x3a   :  { %939 = vmatpush.bf16.msrb.mxu0 %v1539_v2  ;;  %v1602_v2 = vld [vmem:[%s1982_s1 + $0x300] sm:$0xff] }
  0x3b   :  { %965 = vmatpush.bf16.msrb.mxu2 %v1555_v3  ;;  %v251_v3 = vunpack.c.l.b16 %v27_v1 }
  0x3c   :  { %978 = vmatpush.bf16.msrb.mxu3 %v1563_v4 }
  0x3d   :  { %952 = vmatpush.bf16.msrb.mxu1 %v1547_v7  ;;  %v264_v4 = vpack.c.b16 %v251_v3, %v251_v3 }
  0x3e   :  { %940 = vmatpush.bf16.msrb.mxu0 %v1538_v8 }
  0x3f   :  { %966 = vmatpush.bf16.msrb.mxu2 %v1554_v10 }
  0x40   :  { %979 = vmatpush.bf16.msrb.mxu3 %v1562_v11 }
  0x41   :  { %953 = vmatpush.bf16.msrb.mxu1 %v1546_v17  ;;  %941 = vmatmul.bf16.vlgmr.msrb.gmra.mxu0 %v256_v21  ;;  %v1052_v21 = vld [vmem:[%s1986_s3 + $0x8] sm:$0xff] }
  0x42   :  { %985 = vmatpush.bf16.msra.mxu0 %v1577_v14  ;;  %967 = vmatmul.bf16.vlgmr.msrb.gmra.mxu2 %v258_v20  ;;  %v1054_v14 = vld [vmem:[%s1986_s3 + $0x18] sm:$0xff] }
  0x43   :  { %1011 = vmatpush.bf16.msra.mxu2 %v1593_v15  ;;  %980 = vmatmul.bf16.vlgmr.msrb.gmra.mxu3 %v259_v22 }
  0x44   :  { %1024 = vmatpush.bf16.msra.mxu3 %v1601_v16  ;;  %954 = vmatmul.bf16.vlgmr.msrb.gmra.mxu1 %v257_v26 }
  0x45   :  { %998 = vmatpush.bf16.msra.mxu1 %v1585_v19  ;;  %v1053_v19 = vld [vmem:[%s1986_s3 + $0x10] sm:$0xff] }
  0x46   :  { %986 = vmatpush.bf16.msra.mxu0 %v1576_v23 }
  0x47   :  { %1012 = vmatpush.bf16.msra.mxu2 %v1592_v24 }
  0x48   :  { %1025 = vmatpush.bf16.msra.mxu3 %v1600_v25 }
  0x49   :  { %999 = vmatpush.bf16.msra.mxu1 %v1584_v27 }
  0x4a   :  { %987 = vmatpush.bf16.msra.mxu0 %v1575_v28 }
  0x4b   :  { %1013 = vmatpush.bf16.msra.mxu2 %v1591_v29  ;;  %v1051_v29 = vld [vmem:[%s1986_s3] sm:$0xff] }
  0x4c   :  { %1026 = vmatpush.bf16.msra.mxu3 %v1599_v30 }
  0x4d   :  { %1000 = vmatpush.bf16.msra.mxu1 %v1583_v31 }
  0x4e   :  { %988 = vmatpush.bf16.msra.mxu0 %v1574_v32 }
  0x4f   :  { %1014 = vmatpush.bf16.msra.mxu2 %v1590_v33 }
  0x50   :  { %1027 = vmatpush.bf16.msra.mxu3 %v1598_v34 }
  0x51   :  { %1001 = vmatpush.bf16.msra.mxu1 %v1582_v35 }
  0x52   :  { %989 = vmatpush.bf16.msra.mxu0 %v1573_v36 }
  0x53   :  { %1015 = vmatpush.bf16.msra.mxu2 %v1589_v37 }
  0x54   :  { %1028 = vmatpush.bf16.msra.mxu3 %v1597_v38 }
  0x55   :  { %1002 = vmatpush.bf16.msra.mxu1 %v1581_v39 }
  0x56   :  { %990 = vmatpush.bf16.msra.mxu0 %v1572_v40 }
  0x57   :  { %1016 = vmatpush.bf16.msra.mxu2 %v1588_v41 }
  0x58   :  { %1029 = vmatpush.bf16.msra.mxu3 %v1596_v42 }
  0x59   :  { %1003 = vmatpush.bf16.msra.mxu1 %v1580_v43 }
  0x5a   :  { %991 = vmatpush.bf16.msra.mxu0 %v1571_v44 }
  0x5b   :  { %1017 = vmatpush.bf16.msra.mxu2 %v1587_v45 }
  0x5c   :  { %1030 = vmatpush.bf16.msra.mxu3 %v1595_v48 }
  0x5d   :  { %1004 = vmatpush.bf16.msra.mxu1 %v1579_v49 }
  0x5e   :  { %992 = vmatpush.bf16.msra.mxu0 %v1570_v52 }
  0x5f   :  { %1018 = vmatpush.bf16.msra.mxu2 %v1586_v53 }
  0x60   :  { %1031 = vmatpush.bf16.msra.mxu3 %v1594_v55 }
  0x61   :  { %1005 = vmatpush.bf16.msra.mxu1 %v1578_v58  ;;  %993 = vmatmul.bf16.vlgmr.msra.gmra.mxu0 %v260_v59 }
  0x62   :  { %1041 = vmatpush.bf16.msrb.mxu0 %v1605_v56  ;;  %1019 = vmatmul.bf16.vlgmr.msra.gmra.mxu2 %v262_v60 }
  0x63   :  { %1032 = vmatmul.bf16.vlgmr.msra.gmra.mxu3 %v263_v61 }
  0x64   :  { %1006 = vmatmul.bf16.vlgmr.msra.gmra.mxu1 %v261_v62 }
  0x65   :  { %1075 = vmatpush.msrb.mxu1 %v1054_v14 }
  0x66   :  { %1042 = vmatpush.bf16.msrb.mxu0 %v1604_v63 }
  0x67   :  { %1076 = vmatpush.msrb.mxu1 %v1053_v19 }
  0x69   :  { %1077 = vmatpush.msrb.mxu1 %v1052_v21 }
  0x6a   :  { %1043 = vmatpush.bf16.msrb.mxu0 %v1603_v0 }
  0x6b   :  { %1078 = vmatpush.msrb.mxu1 %v1051_v29 }
  0x6e   :  { %1044 = vmatpush.bf16.msrb.mxu0 %v1602_v2 }
  0x71   :  { %1504 = vmatmul.msk.bf16.vlgmr.msrb.gmra.mxu0 %vm877_vm0, %v264_v4 }
  0x9e   :  { %v890_v5 = vpop.f32.mrf.mxu0 }
  0x9f   :  { %v891_v17 = vadd.f32 %v1606_v13, %v890_v5 }
  0xa1   :  { %v903_v6 = vpop.f32.mrf.mxu1 }
  0xa2   :  { %v904_v22 = vadd.f32 %v903_v6, %v891_v17 }
  0xa5   :  { %v916_v7 = vpop.f32.mrf.mxu2 }
  0xa6   :  { %v929_v8 = vpop.f32.mrf.mxu3  ;;  %v892_v9 = vpop.f32.mrf.mxu0  ;;  %v917_v25 = vadd.f32 %v916_v7, %v904_v22 }
  0xa8   :  { %v930_v28 = vadd.f32 %v929_v8, %v917_v25 }
  0xa9   :  { %v905_v10 = vpop.f32.mrf.mxu1 }
  0xad   :  { %v918_v11 = vpop.f32.mrf.mxu2 }
  0xae   :  { %v931_v12 = vpop.f32.mrf.mxu3 }
  0xbe   :  { %v942_v15 = vpop.f32.mrf.mxu0 }
  0xbf   :  { %v943_v30 = vadd.f32 %v942_v15, %v930_v28 }
  0xc1   :  { %v955_v16 = vpop.f32.mrf.mxu1 }
  0xc2   :  { %v956_v31 = vadd.f32 %v955_v16, %v943_v30 }
  0xc5   :  { %v968_v18 = vpop.f32.mrf.mxu2 }
  0xc6   :  { %v981_v20 = vpop.f32.mrf.mxu3  ;;  %v944_v23 = vpop.f32.mrf.mxu0  ;;  %v969_v32 = vadd.f32 %v968_v18, %v956_v31 }
  0xc8   :  { %v982_v35 = vadd.f32 %v981_v20, %v969_v32 }
  0xc9   :  { %v957_v24 = vpop.f32.mrf.mxu1 }
  0xcd   :  { %v970_v26 = vpop.f32.mrf.mxu2 }
  0xce   :  { %v983_v27 = vpop.f32.mrf.mxu3 }
  0xde   :  { %v994_v33 = vpop.f32.mrf.mxu0 }
  0xdf   :  { %v995_v36 = vadd.f32 %v994_v33, %v982_v35 }
  0xe1   :  { %v1007_v34 = vpop.f32.mrf.mxu1 }
  0xe2   :  { %v1008_v40 = vadd.f32 %v1007_v34, %v995_v36 }
  0xe5   :  { %v1020_v37 = vpop.f32.mrf.mxu2 }
  0xe6   :  { %v1033_v38 = vpop.f32.mrf.mxu3  ;;  %v996_v39 = vpop.f32.mrf.mxu0  ;;  %v1021_v42 = vadd.f32 %v1020_v37, %v1008_v40 }
  0xe8   :  { %v1034_v44 = vadd.f32 %v1033_v38, %v1021_v42 }
  0xe9   :  { %v1009_v41 = vpop.f32.mrf.mxu1 }
  0xed   :  { %v1022_v43 = vpop.f32.mrf.mxu2 }
  0xee   :  { %v1035_v45 = vpop.f32.mrf.mxu3  ;;  %v1046_v46 = vpop.f32.mrf.mxu0 }
  0xef   :  { %v1047_v47 = vadd.f32 %v1046_v46, %v1034_v44 }
  0xf1   :  { %v1050_v48 = vmul.f32 %v1047_v47, %v1047_v47 }
  0xf3   :  { %1505 = vmatmul.msk.f32.vlgmr.msrb.gmra.mxu1 %vm1059_vm1, %v1050_v48 }
  0xf6   :  { %v1048_v49 = vpop.f32.mrf.mxu0 }
 0x170   :  { %v1080_v51 = vpop.f32.mrf.mxu1 }
 0x171   :  { %v1081_v52 = vadd.f32 %v1607_v50, %v1080_v51 }
 0x173   :  { %v1083_v53 = vmax.f32 %v1081_v52, 1e-12 }
 0x175   :  { %1608 = vrsqrt.f32 %v1083_v53  ;;  %vm1091_vm2 = vcmp.eq.f32.partialorder %v1083_v53, inf  ;;  %v1094_v61 = vand.u32 2147483648, %v1083_v53  ;;  %vm1093_vm3 = vcmp.eq.f32.partialorder %v1083_v53, 0.0 }
 0x17b   :  { %v1609_v54 = vpop.eup %1608 }
 0x17c   :  { %v1085_v55 = vmul.f32 %v1609_v54, %v1083_v53 }
 0x17e   :  { %v1086_v56 = vmul.f32 %v1609_v54, %v1085_v55 }
 0x180   :  { %v1087_v57 = vmul.f32 0.5, %v1086_v56 }
 0x182   :  { %v1088_v58 = vsub.f32 1.5, %v1087_v57 }
 0x184   :  { %v1089_v59 = vmul.f32 %v1609_v54, %v1088_v58 }
 0x186   :  { %v1090_v60 = vmul.f32 %v1089_v59, %v1083_v53 }
 0x188   :  { %v1092_v62 = vsel %vm1091_vm2, %v1083_v53, %v1090_v60 }
 0x189   :  { %v1095_v63 = vsel %vm1093_vm3, %v1094_v61, %v1092_v62 }
 0x18a   :  { %v1096_v0 = vmul.f32 %v1095_v63, %v1047_v47 }
 0x18c   :  { %v1097_v1 = vpack.c.bf16 %v1096_v0, %v1096_v0 }
 0x18e   :  { %1099 = vst.msk [vmem:[%s1987_s5] sm:$0xf] %vm1098_vm4, %v1097_v1 }

// kernel: reverse.3
= control target key start
LH: loop header
LB: loop body
LE: loop exit
PB: predicated region body
PF: predicated region fallthrough
CT: control target
= control target key end

     0   :  { %s1557_s0 = inlined_call_operand.vmem [shape: bf16[3,3,32,288], index: 0, kind: input, shape index: {}]   ;;  %s1558_s1 = inlined_call_operand.vmem [shape: bf16[3,3,32,288], index: 1, kind: output, shape index: {}]  }
   0x1   :  { %v1079_v0 = vld [vmem:[%s1557_s0 + $0x180] sm:$0xff]  ;;  %v1080_v1 = vld [vmem:[%s1557_s0 + $0xf0] sm:$0xff]  ;;  %v1097_v18 = vld [vmem:[%s1557_s0 + $0x198] sm:$0xff] }
   0x2   :  { %v1081_v2 = vld [vmem:[%s1557_s0 + $0x60] sm:$0xff]  ;;  %v1082_v3 = vld [vmem:[%s1557_s0 + $0x150] sm:$0xff]  ;;  %796 = vst [vmem:[%s1558_s1] sm:$0xff] %v1079_v0  ;;  %v1098_v19 = vld [vmem:[%s1557_s0 + $0x108] sm:$0xff] }
   0x3   :  { %v1083_v4 = vld [vmem:[%s1557_s0 + $0xc0] sm:$0xff]  ;;  %802 = vst [vmem:[%s1558_s1 + $0x90] sm:$0xff] %v1080_v1  ;;  %v1084_v5 = vld [vmem:[%s1557_s0 + $0x30] sm:$0xff]  ;;  %v1099_v20 = vld [vmem:[%s1557_s0 + $0x78] sm:$0xff] }
   0x4   :  { %808 = vst [vmem:[%s1558_s1 + $0x120] sm:$0xff] %v1081_v2  ;;  %v1085_v6 = vld [vmem:[%s1557_s0 + $0x120] sm:$0xff]  ;;  %v1086_v7 = vld [vmem:[%s1557_s0 + $0x90] sm:$0xff]  ;;  %v1100_v21 = vld [vmem:[%s1557_s0 + $0x168] sm:$0xff] }
   0x5   :  { %814 = vst [vmem:[%s1558_s1 + $0x30] sm:$0xff] %v1082_v3  ;;  %v1087_v8 = vld [vmem:[%s1557_s0] sm:$0xff]  ;;  %v1088_v9 = vld [vmem:[%s1557_s0 + $0x18c] sm:$0xff]  ;;  %v1101_v22 = vld [vmem:[%s1557_s0 + $0xd8] sm:$0xff] }
   0x6   :  { %820 = vst [vmem:[%s1558_s1 + $0xc0] sm:$0xff] %v1083_v4  ;;  %v1089_v10 = vld [vmem:[%s1557_s0 + $0xfc] sm:$0xff]  ;;  %v1090_v11 = vld [vmem:[%s1557_s0 + $0x6c] sm:$0xff]  ;;  %v1106_v27 = vld [vmem:[%s1557_s0 + $0x1a4] sm:$0xff] }
   0x7   :  { %826 = vst [vmem:[%s1558_s1 + $0x150] sm:$0xff] %v1084_v5  ;;  %v1091_v12 = vld [vmem:[%s1557_s0 + $0x15c] sm:$0xff]  ;;  %v1092_v13 = vld [vmem:[%s1557_s0 + $0xcc] sm:$0xff]  ;;  %v1107_v28 = vld [vmem:[%s1557_s0 + $0x114] sm:$0xff] }
   0x8   :  { %832 = vst [vmem:[%s1558_s1 + $0x60] sm:$0xff] %v1085_v6  ;;  %v1093_v14 = vld [vmem:[%s1557_s0 + $0x3c] sm:$0xff]  ;;  %v1094_v15 = vld [vmem:[%s1557_s0 + $0x12c] sm:$0xff]  ;;  %v1108_v29 = vld [vmem:[%s1557_s0 + $0x84] sm:$0xff] }
   0x9   :  { %838 = vst [vmem:[%s1558_s1 + $0xf0] sm:$0xff] %v1086_v7  ;;  %v1095_v16 = vld [vmem:[%s1557_s0 + $0x9c] sm:$0xff]  ;;  %v1096_v17 = vld [vmem:[%s1557_s0 + $0xc] sm:$0xff]  ;;  %v1109_v30 = vld [vmem:[%s1557_s0 + $0x174] sm:$0xff] }
   0xa   :  { %844 = vst [vmem:[%s1558_s1 + $0x180] sm:$0xff] %v1087_v8  ;;  %v1102_v23 = vld [vmem:[%s1557_s0 + $0x48] sm:$0xff]  ;;  %v1103_v24 = vld [vmem:[%s1557_s0 + $0x138] sm:$0xff]  ;;  %v1025_v45 = vld [vmem:[%s1557_s0 + $0x194] sm:$0xf] }
   0xb   :  { %850 = vst [vmem:[%s1558_s1 + $0xc] sm:$0xff] %v1088_v9  ;;  %v1104_v25 = vld [vmem:[%s1557_s0 + $0xa8] sm:$0xff]  ;;  %v1105_v26 = vld [vmem:[%s1557_s0 + $0x18] sm:$0xff]  ;;  %v1027_v46 = vld [vmem:[%s1557_s0 + $0x104] sm:$0xf] }
   0xc   :  { %856 = vst [vmem:[%s1558_s1 + $0x9c] sm:$0xff] %v1089_v10  ;;  %v1110_v31 = vld [vmem:[%s1557_s0 + $0xe4] sm:$0xff]  ;;  %v1111_v32 = vld [vmem:[%s1557_s0 + $0x54] sm:$0xff]  ;;  %v1043_v54 = vld [vmem:[%s1557_s0 + $0x1a0] sm:$0xf] }
   0xd   :  { %862 = vst [vmem:[%s1558_s1 + $0x12c] sm:$0xff] %v1090_v11  ;;  %v1112_v33 = vld [vmem:[%s1557_s0 + $0x144] sm:$0xff]  ;;  %v1113_v34 = vld [vmem:[%s1557_s0 + $0xb4] sm:$0xff]  ;;  %v1045_v55 = vld [vmem:[%s1557_s0 + $0x110] sm:$0xf] }
   0xe   :  { %868 = vst [vmem:[%s1558_s1 + $0x3c] sm:$0xff] %v1091_v12  ;;  %v1114_v35 = vld [vmem:[%s1557_s0 + $0x24] sm:$0xff]  ;;  %v1009_v37 = vld [vmem:[%s1557_s0 + $0xf8] sm:$0xf]  ;;  %v1029_v47 = vld [vmem:[%s1557_s0 + $0x74] sm:$0xf] }
   0xf   :  { %874 = vst [vmem:[%s1558_s1 + $0xcc] sm:$0xff] %v1092_v13  ;;  %v1007_v36 = vld [vmem:[%s1557_s0 + $0x188] sm:$0xf]  ;;  %v1013_v39 = vld [vmem:[%s1557_s0 + $0x158] sm:$0xf] }
  0x10   :  { %880 = vst [vmem:[%s1558_s1 + $0x15c] sm:$0xff] %v1093_v14  ;;  %v1011_v38 = vld [vmem:[%s1557_s0 + $0x68] sm:$0xf]  ;;  %v1017_v41 = vld [vmem:[%s1557_s0 + $0x38] sm:$0xf] }
  0x11   :  { %886 = vst [vmem:[%s1558_s1 + $0x6c] sm:$0xff] %v1094_v15  ;;  %v1015_v40 = vld [vmem:[%s1557_s0 + $0xc8] sm:$0xf]  ;;  %v1021_v43 = vld [vmem:[%s1557_s0 + $0x98] sm:$0xf] }
  0x12   :  { %892 = vst [vmem:[%s1558_s1 + $0xfc] sm:$0xff] %v1095_v16  ;;  %v1019_v42 = vld [vmem:[%s1557_s0 + $0x128] sm:$0xf]  ;;  %v1031_v48 = vld [vmem:[%s1557_s0 + $0x164] sm:$0xf] }
  0x13   :  { %898 = vst [vmem:[%s1558_s1 + $0x18c] sm:$0xff] %v1096_v17  ;;  %v1023_v44 = vld [vmem:[%s1557_s0 + $0x8] sm:$0xf]  ;;  %v1033_v49 = vld [vmem:[%s1557_s0 + $0xd4] sm:$0xf] }
  0x14   :  { %904 = vst [vmem:[%s1558_s1 + $0x18] sm:$0xff] %v1097_v18  ;;  %v1035_v50 = vld [vmem:[%s1557_s0 + $0x44] sm:$0xf]  ;;  %v1037_v51 = vld [vmem:[%s1557_s0 + $0x134] sm:$0xf] }
  0x15   :  { %910 = vst [vmem:[%s1558_s1 + $0xa8] sm:$0xff] %v1098_v19  ;;  %v1039_v52 = vld [vmem:[%s1557_s0 + $0xa4] sm:$0xf]  ;;  %v1041_v53 = vld [vmem:[%s1557_s0 + $0x14] sm:$0xf] }
  0x16   :  { %916 = vst [vmem:[%s1558_s1 + $0x138] sm:$0xff] %v1099_v20  ;;  %v1047_v56 = vld [vmem:[%s1557_s0 + $0x80] sm:$0xf]  ;;  %v1049_v57 = vld [vmem:[%s1557_s0 + $0x170] sm:$0xf] }
  0x17   :  { %922 = vst [vmem:[%s1558_s1 + $0x48] sm:$0xff] %v1100_v21  ;;  %v1051_v58 = vld [vmem:[%s1557_s0 + $0xe0] sm:$0xf]  ;;  %v1053_v59 = vld [vmem:[%s1557_s0 + $0x50] sm:$0xf] }
  0x18   :  { %928 = vst [vmem:[%s1558_s1 + $0xd8] sm:$0xff] %v1101_v22  ;;  %v1055_v60 = vld [vmem:[%s1557_s0 + $0x140] sm:$0xf]  ;;  %v1057_v61 = vld [vmem:[%s1557_s0 + $0xb0] sm:$0xf] }
  0x19   :  { %934 = vst [vmem:[%s1558_s1 + $0x168] sm:$0xff] %v1102_v23  ;;  %v1059_v62 = vld [vmem:[%s1557_s0 + $0x20] sm:$0xf]  ;;  %v1061_v63 = vld [vmem:[%s1557_s0 + $0x1ac] sm:$0xf] }
  0x1a   :  { %940 = vst [vmem:[%s1558_s1 + $0x78] sm:$0xff] %v1103_v24  ;;  %v1063_v0 = vld [vmem:[%s1557_s0 + $0x11c] sm:$0xf]  ;;  %v1065_v1 = vld [vmem:[%s1557_s0 + $0x8c] sm:$0xf] }
  0x1b   :  { %946 = vst [vmem:[%s1558_s1 + $0x108] sm:$0xff] %v1104_v25  ;;  %v1067_v2 = vld [vmem:[%s1557_s0 + $0x17c] sm:$0xf]  ;;  %v1069_v3 = vld [vmem:[%s1557_s0 + $0xec] sm:$0xf] }
  0x1c   :  { %952 = vst [vmem:[%s1558_s1 + $0x198] sm:$0xff] %v1105_v26  ;;  %v1071_v4 = vld [vmem:[%s1557_s0 + $0x5c] sm:$0xf]  ;;  %v1073_v5 = vld [vmem:[%s1557_s0 + $0x14c] sm:$0xf] }
  0x1d   :  { %958 = vst [vmem:[%s1558_s1 + $0x24] sm:$0xff] %v1106_v27  ;;  %v1075_v6 = vld [vmem:[%s1557_s0 + $0xbc] sm:$0xf]  ;;  %v1077_v7 = vld [vmem:[%s1557_s0 + $0x2c] sm:$0xf] }
  0x1e   :  { %964 = vst [vmem:[%s1558_s1 + $0xb4] sm:$0xff] %v1107_v28 }
  0x1f   :  { %970 = vst [vmem:[%s1558_s1 + $0x144] sm:$0xff] %v1108_v29 }
  0x20   :  { %976 = vst [vmem:[%s1558_s1 + $0x54] sm:$0xff] %v1109_v30 }
  0x21   :  { %982 = vst [vmem:[%s1558_s1 + $0xe4] sm:$0xff] %v1110_v31 }
  0x22   :  { %988 = vst [vmem:[%s1558_s1 + $0x174] sm:$0xff] %v1111_v32 }
  0x23   :  { %994 = vst [vmem:[%s1558_s1 + $0x84] sm:$0xff] %v1112_v33 }
  0x24   :  { %1000 = vst [vmem:[%s1558_s1 + $0x114] sm:$0xff] %v1113_v34 }
  0x25   :  { %1006 = vst [vmem:[%s1558_s1 + $0x1a4] sm:$0xff] %v1114_v35 }
  0x26   :  { %1008 = vst [vmem:[%s1558_s1 + $0x8] sm:$0xf] %v1007_v36 }
  0x27   :  { %1010 = vst [vmem:[%s1558_s1 + $0x98] sm:$0xf] %v1009_v37 }
  0x28   :  { %1012 = vst [vmem:[%s1558_s1 + $0x128] sm:$0xf] %v1011_v38 }
  0x29   :  { %1014 = vst [vmem:[%s1558_s1 + $0x38] sm:$0xf] %v1013_v39 }
  0x2a   :  { %1016 = vst [vmem:[%s1558_s1 + $0xc8] sm:$0xf] %v1015_v40 }
  0x2b   :  { %1018 = vst [vmem:[%s1558_s1 + $0x158] sm:$0xf] %v1017_v41 }
  0x2c   :  { %1020 = vst [vmem:[%s1558_s1 + $0x68] sm:$0xf] %v1019_v42 }
  0x2d   :  { %1022 = vst [vmem:[%s1558_s1 + $0xf8] sm:$0xf] %v1021_v43 }
  0x2e   :  { %1024 = vst [vmem:[%s1558_s1 + $0x188] sm:$0xf] %v1023_v44 }
  0x2f   :  { %1026 = vst [vmem:[%s1558_s1 + $0x14] sm:$0xf] %v1025_v45 }
  0x30   :  { %1028 = vst [vmem:[%s1558_s1 + $0xa4] sm:$0xf] %v1027_v46 }
  0x31   :  { %1030 = vst [vmem:[%s1558_s1 + $0x134] sm:$0xf] %v1029_v47 }
  0x32   :  { %1032 = vst [vmem:[%s1558_s1 + $0x44] sm:$0xf] %v1031_v48 }
  0x33   :  { %1034 = vst [vmem:[%s1558_s1 + $0xd4] sm:$0xf] %v1033_v49 }
  0x34   :  { %1036 = vst [vmem:[%s1558_s1 + $0x164] sm:$0xf] %v1035_v50 }
  0x35   :  { %1038 = vst [vmem:[%s1558_s1 + $0x74] sm:$0xf] %v1037_v51 }
  0x36   :  { %1040 = vst [vmem:[%s1558_s1 + $0x104] sm:$0xf] %v1039_v52 }
  0x37   :  { %1042 = vst [vmem:[%s1558_s1 + $0x194] sm:$0xf] %v1041_v53 }
  0x38   :  { %1044 = vst [vmem:[%s1558_s1 + $0x20] sm:$0xf] %v1043_v54 }
  0x39   :  { %1046 = vst [vmem:[%s1558_s1 + $0xb0] sm:$0xf] %v1045_v55 }
  0x3a   :  { %1048 = vst [vmem:[%s1558_s1 + $0x140] sm:$0xf] %v1047_v56 }
  0x3b   :  { %1050 = vst [vmem:[%s1558_s1 + $0x50] sm:$0xf] %v1049_v57 }
  0x3c   :  { %1052 = vst [vmem:[%s1558_s1 + $0xe0] sm:$0xf] %v1051_v58 }
  0x3d   :  { %1054 = vst [vmem:[%s1558_s1 + $0x170] sm:$0xf] %v1053_v59 }
  0x3e   :  { %1056 = vst [vmem:[%s1558_s1 + $0x80] sm:$0xf] %v1055_v60 }
  0x3f   :  { %1058 = vst [vmem:[%s1558_s1 + $0x110] sm:$0xf] %v1057_v61 }
  0x40   :  { %1060 = vst [vmem:[%s1558_s1 + $0x1a0] sm:$0xf] %v1059_v62 }
  0x41   :  { %1062 = vst [vmem:[%s1558_s1 + $0x2c] sm:$0xf] %v1061_v63 }
  0x42   :  { %1064 = vst [vmem:[%s1558_s1 + $0xbc] sm:$0xf] %v1063_v0 }
  0x43   :  { %1066 = vst [vmem:[%s1558_s1 + $0x14c] sm:$0xf] %v1065_v1 }
  0x44   :  { %1068 = vst [vmem:[%s1558_s1 + $0x5c] sm:$0xf] %v1067_v2 }
  0x45   :  { %1070 = vst [vmem:[%s1558_s1 + $0xec] sm:$0xf] %v1069_v3 }
  0x46   :  { %1072 = vst [vmem:[%s1558_s1 + $0x17c] sm:$0xf] %v1071_v4 }
  0x47   :  { %1074 = vst [vmem:[%s1558_s1 + $0x8c] sm:$0xf] %v1073_v5 }
  0x48   :  { %1076 = vst [vmem:[%s1558_s1 + $0x11c] sm:$0xf] %v1075_v6 }
  0x49   :  { %1078 = vst [vmem:[%s1558_s1 + $0x1ac] sm:$0xf] %v1077_v7 }

// kernel: forward.13
= control target key start
LH: loop header
LB: loop body
LE: loop exit
PB: predicated region body
PF: predicated region fallthrough
CT: control target
= control target key end

     0   :  { %vm453_vm0 = vcmask 261120   ;;  %vm595_vm3 = vcmask 257024   ;;  %s1072_s1 = inlined_call_operand.vmem [shape: bf16[800,32], index: 1, kind: input, shape index: {}]   ;;  %s1073_s2 = inlined_call_operand.vmem [shape: f32[1,32], index: 2, kind: input, shape index: {}]   ;;  %s1074_s0 = inlined_call_operand.vmem [shape: bf16[8,800], index: 0, kind: input, shape index: {}]   ;;  %s1075_s4 = inlined_call_operand.vmem [shape: f32[1,32], index: 4, kind: input, shape index: {}]   ;;  %s1076_s3 = inlined_call_operand.vmem [shape: f32[32,32], index: 3, kind: input, shape index: {}]   ;;  %s1077_s5 = inlined_call_operand.vmem [shape: bf16[8,32], index: 5, kind: output, shape index: {}]  }
   0x1   :  { %v810_v0 = vld [vmem:[%s1072_s1 + $0x38] sm:$0xff]  ;;  %v809_v3 = vld [vmem:[%s1072_s1 + $0x30] sm:$0xff]  ;;  %v808_v8 = vld [vmem:[%s1072_s1 + $0x28] sm:$0xff] }
   0x2   :  { %v818_v1 = vld [vmem:[%s1072_s1 + $0x78] sm:$0xff]  ;;  %457 = vmatpush.bf16.msra.mxu0 %v810_v0  ;;  %v817_v4 = vld [vmem:[%s1072_s1 + $0x70] sm:$0xff]  ;;  %v816_v9 = vld [vmem:[%s1072_s1 + $0x68] sm:$0xff] }
   0x3   :  { %v826_v2 = vld [vmem:[%s1072_s1 + $0xb8] sm:$0xff]  ;;  %470 = vmatpush.bf16.msra.mxu1 %v818_v1  ;;  %v825_v5 = vld [vmem:[%s1072_s1 + $0xb0] sm:$0xff]  ;;  %v824_v10 = vld [vmem:[%s1072_s1 + $0xa8] sm:$0xff] }
   0x4   :  { %483 = vmatpush.bf16.msra.mxu2 %v826_v2  ;;  %v834_v6 = vld [vmem:[%s1072_s1 + $0xf8] sm:$0xff]  ;;  %v833_v7 = vld [vmem:[%s1072_s1 + $0xf0] sm:$0xff]  ;;  %v832_v11 = vld [vmem:[%s1072_s1 + $0xe8] sm:$0xff] }
   0x5   :  { %496 = vmatpush.bf16.msra.mxu3 %v834_v6  ;;  %v807_v12 = vld [vmem:[%s1072_s1 + $0x20] sm:$0xff]  ;;  %v806_v16 = vld [vmem:[%s1072_s1 + $0x18] sm:$0xff]  ;;  %v805_v20 = vld [vmem:[%s1072_s1 + $0x10] sm:$0xff] }
   0x6   :  { %458 = vmatpush.bf16.msra.mxu0 %v809_v3  ;;  %v815_v13 = vld [vmem:[%s1072_s1 + $0x60] sm:$0xff]  ;;  %v814_v17 = vld [vmem:[%s1072_s1 + $0x58] sm:$0xff]  ;;  %v813_v21 = vld [vmem:[%s1072_s1 + $0x50] sm:$0xff] }
   0x7   :  { %471 = vmatpush.bf16.msra.mxu1 %v817_v4  ;;  %v823_v14 = vld [vmem:[%s1072_s1 + $0xa0] sm:$0xff]  ;;  %v822_v18 = vld [vmem:[%s1072_s1 + $0x98] sm:$0xff]  ;;  %v821_v22 = vld [vmem:[%s1072_s1 + $0x90] sm:$0xff] }
   0x8   :  { %484 = vmatpush.bf16.msra.mxu2 %v825_v5  ;;  %v831_v15 = vld [vmem:[%s1072_s1 + $0xe0] sm:$0xff]  ;;  %v830_v19 = vld [vmem:[%s1072_s1 + $0xd8] sm:$0xff]  ;;  %v829_v23 = vld [vmem:[%s1072_s1 + $0xd0] sm:$0xff] }
   0x9   :  { %497 = vmatpush.bf16.msra.mxu3 %v833_v7  ;;  %v804_v24 = vld [vmem:[%s1072_s1 + $0x8] sm:$0xff]  ;;  %v21_v26 = vld [vmem:[%s1074_s0] sm:$0xff]  ;;  %v842_v34 = vld [vmem:[%s1072_s1 + $0x138] sm:$0xff] }
   0xa   :  { %459 = vmatpush.bf16.msra.mxu0 %v808_v8  ;;  %v812_v25 = vld [vmem:[%s1072_s1 + $0x48] sm:$0xff]  ;;  %v133_v29 = vunpack.c.l.b16 %v21_v26  ;;  %v134_v31 = vunpack.c.h.b16 %v21_v26  ;;  %v803_v32 = vld [vmem:[%s1072_s1] sm:$0xff]  ;;  %v850_v35 = vld [vmem:[%s1072_s1 + $0x178] sm:$0xff] }
   0xb   :  { %472 = vmatpush.bf16.msra.mxu1 %v816_v9  ;;  %v820_v27 = vld [vmem:[%s1072_s1 + $0x88] sm:$0xff]  ;;  %v811_v33 = vld [vmem:[%s1072_s1 + $0x40] sm:$0xff]  ;;  %v841_v43 = vld [vmem:[%s1072_s1 + $0x130] sm:$0xff] }
   0xc   :  { %485 = vmatpush.bf16.msra.mxu2 %v824_v10  ;;  %v22_v28 = vld [vmem:[%s1074_s0 + $0x8] sm:$0xff]  ;;  %v819_v36 = vld [vmem:[%s1072_s1 + $0x80] sm:$0xff]  ;;  %v140_v38 = vpack.c.b16 %v133_v29, %v133_v29  ;;  %v141_v39 = vpack.c.b16 %v134_v31, %v134_v31  ;;  %v849_v44 = vld [vmem:[%s1072_s1 + $0x170] sm:$0xff] }
   0xd   :  { %498 = vmatpush.bf16.msra.mxu3 %v832_v11  ;;  %v828_v30 = vld [vmem:[%s1072_s1 + $0xc8] sm:$0xff]  ;;  %v135_v37 = vunpack.c.l.b16 %v22_v28  ;;  %v136_v40 = vunpack.c.h.b16 %v22_v28  ;;  %v827_v41 = vld [vmem:[%s1072_s1 + $0xc0] sm:$0xff]  ;;  %v24_v52 = vld [vmem:[%s1074_s0 + $0x18] sm:$0xf] }
   0xe   :  { %460 = vmatpush.bf16.msra.mxu0 %v807_v12  ;;  %v852_v42 = vld [vmem:[%s1072_s1 + $0x188] sm:$0xff]  ;;  %v851_v47 = vld [vmem:[%s1072_s1 + $0x180] sm:$0xff]  ;;  %v838_v53 = vld [vmem:[%s1072_s1 + $0x118] sm:$0xff]  ;;  %v139_v55 = vunpack.c.l.b16 %v24_v52 }
   0xf   :  { %473 = vmatpush.bf16.msra.mxu1 %v815_v13  ;;  %v142_v45 = vpack.c.b16 %v135_v37, %v135_v37  ;;  %v143_v46 = vpack.c.b16 %v136_v40, %v136_v40  ;;  %v840_v48 = vld [vmem:[%s1072_s1 + $0x128] sm:$0xff]  ;;  %v839_v50 = vld [vmem:[%s1072_s1 + $0x120] sm:$0xff]  ;;  %v846_v54 = vld [vmem:[%s1072_s1 + $0x158] sm:$0xff] }
  0x10   :  { %486 = vmatpush.bf16.msra.mxu2 %v823_v14  ;;  %v848_v49 = vld [vmem:[%s1072_s1 + $0x168] sm:$0xff]  ;;  %v847_v51 = vld [vmem:[%s1072_s1 + $0x160] sm:$0xff]  ;;  %v837_v56 = vld [vmem:[%s1072_s1 + $0x110] sm:$0xff]  ;;  %v146_v58 = vpack.c.b16 %v139_v55, %v139_v55 }
  0x11   :  { %499 = vmatpush.bf16.msra.mxu3 %v831_v15  ;;  %v845_v57 = vld [vmem:[%s1072_s1 + $0x150] sm:$0xff]  ;;  %v836_v59 = vld [vmem:[%s1072_s1 + $0x108] sm:$0xff]  ;;  %v835_v0 = vld [vmem:[%s1072_s1 + $0x100] sm:$0xff] }
  0x12   :  { %461 = vmatpush.bf16.msra.mxu0 %v806_v16  ;;  %v844_v60 = vld [vmem:[%s1072_s1 + $0x148] sm:$0xff]  ;;  %v23_v61 = vld [vmem:[%s1074_s0 + $0x10] sm:$0xff]  ;;  %v843_v1 = vld [vmem:[%s1072_s1 + $0x140] sm:$0xff] }
  0x13   :  { %474 = vmatpush.bf16.msra.mxu1 %v814_v17  ;;  %v137_v62 = vunpack.c.l.b16 %v23_v61  ;;  %v138_v63 = vunpack.c.h.b16 %v23_v61  ;;  %v552_v4 = vld [vmem:[%s1076_s3 + $0x18] sm:$0xff]  ;;  %v551_v5 = vld [vmem:[%s1076_s3 + $0x10] sm:$0xff]  ;;  %v550_v8 = vld [vmem:[%s1076_s3 + $0x8] sm:$0xff] }
  0x14   :  { %487 = vmatpush.bf16.msra.mxu2 %v822_v18  ;;  %v549_v9 = vld [vmem:[%s1076_s3] sm:$0xff] }
  0x15   :  { %500 = vmatpush.bf16.msra.mxu3 %v830_v19  ;;  %v144_v2 = vpack.c.b16 %v137_v62, %v137_v62  ;;  %v145_v3 = vpack.c.b16 %v138_v63, %v138_v63  ;;  %v853_v14 = vld [vmem:[%s1073_s2] ss:$0 sm:$0xff] }
  0x16   :  { %462 = vmatpush.bf16.msra.mxu0 %v805_v20  ;;  %v854_v31 = vld [vmem:[%s1075_s4] ss:$0 sm:$0xff] }
  0x17   :  { %475 = vmatpush.bf16.msra.mxu1 %v813_v21 }
  0x18   :  { %488 = vmatpush.bf16.msra.mxu2 %v821_v22 }
  0x19   :  { %501 = vmatpush.bf16.msra.mxu3 %v829_v23 }
  0x1a   :  { %463 = vmatpush.bf16.msra.mxu0 %v804_v24 }
  0x1b   :  { %476 = vmatpush.bf16.msra.mxu1 %v812_v25 }
  0x1c   :  { %489 = vmatpush.bf16.msra.mxu2 %v820_v27 }
  0x1d   :  { %502 = vmatpush.bf16.msra.mxu3 %v828_v30 }
  0x1e   :  { %464 = vmatpush.bf16.msra.mxu0 %v803_v32 }
  0x1f   :  { %477 = vmatpush.bf16.msra.mxu1 %v811_v33 }
  0x20   :  { %490 = vmatpush.bf16.msra.mxu2 %v819_v36 }
  0x21   :  { %465 = vmatmul.bf16.vlgmr.msra.gmra.mxu0 %v140_v38  ;;  %503 = vmatpush.bf16.msra.mxu3 %v827_v41 }
  0x22   :  { %509 = vmatpush.bf16.msrb.mxu0 %v842_v34  ;;  %478 = vmatmul.bf16.vlgmr.msra.gmra.mxu1 %v141_v39 }
  0x23   :  { %522 = vmatpush.bf16.msrb.mxu1 %v850_v35  ;;  %491 = vmatmul.bf16.vlgmr.msra.gmra.mxu2 %v142_v45 }
  0x24   :  { %541 = vmatpush.bf16.msrb.mxu2 %v852_v42  ;;  %504 = vmatmul.bf16.vlgmr.msra.gmra.mxu3 %v143_v46 }
  0x25   :  { %572 = vmatpush.msrb.mxu3 %v552_v4 }
  0x26   :  { %510 = vmatpush.bf16.msrb.mxu0 %v841_v43 }
  0x27   :  { %523 = vmatpush.bf16.msrb.mxu1 %v849_v44  ;;  %573 = vmatpush.msrb.mxu3 %v551_v5 }
  0x28   :  { %542 = vmatpush.bf16.msrb.mxu2 %v851_v47 }
  0x29   :  { %574 = vmatpush.msrb.mxu3 %v550_v8 }
  0x2a   :  { %511 = vmatpush.bf16.msrb.mxu0 %v840_v48 }
  0x2b   :  { %524 = vmatpush.bf16.msrb.mxu1 %v848_v49  ;;  %575 = vmatpush.msrb.mxu3 %v549_v9 }
  0x2e   :  { %512 = vmatpush.bf16.msrb.mxu0 %v839_v50 }
  0x2f   :  { %525 = vmatpush.bf16.msrb.mxu1 %v847_v51 }
  0x32   :  { %513 = vmatpush.bf16.msrb.mxu0 %v838_v53 }
  0x33   :  { %526 = vmatpush.bf16.msrb.mxu1 %v846_v54  ;;  %801 = vmatmul.msk.bf16.vlgmr.msrb.gmra.mxu2 %vm453_vm0, %v146_v58 }
  0x36   :  { %514 = vmatpush.bf16.msrb.mxu0 %v837_v56 }
  0x37   :  { %527 = vmatpush.bf16.msrb.mxu1 %v845_v57 }
  0x3a   :  { %515 = vmatpush.bf16.msrb.mxu0 %v836_v59 }
  0x3b   :  { %528 = vmatpush.bf16.msrb.mxu1 %v844_v60 }
  0x3e   :  { %516 = vmatpush.bf16.msrb.mxu0 %v835_v0 }
  0x3f   :  { %529 = vmatpush.bf16.msrb.mxu1 %v843_v1 }
  0x41   :  { %517 = vmatmul.bf16.vlgmr.msrb.gmra.mxu0 %v144_v2 }
  0x42   :  { %530 = vmatmul.bf16.vlgmr.msrb.gmra.mxu1 %v145_v3 }
  0x9e   :  { %v466_v6 = vpop.f32.mrf.mxu0 }
  0x9f   :  { %v479_v7 = vpop.f32.mrf.mxu1  ;;  %v467_v15 = vadd.f32 %v853_v14, %v466_v6 }
  0xa1   :  { %v480_v18 = vadd.f32 %v479_v7, %v467_v15 }
  0xa6   :  { %v468_v10 = vpop.f32.mrf.mxu0  ;;  %v492_v12 = vpop.f32.mrf.mxu2 }
  0xa7   :  { %v481_v11 = vpop.f32.mrf.mxu1  ;;  %v505_v13 = vpop.f32.mrf.mxu3  ;;  %v493_v19 = vadd.f32 %v492_v12, %v480_v18 }
  0xa9   :  { %v506_v21 = vadd.f32 %v505_v13, %v493_v19 }
  0xae   :  { %v494_v16 = vpop.f32.mrf.mxu2 }
  0xaf   :  { %v507_v17 = vpop.f32.mrf.mxu3 }
  0xb6   :  { %v544_v20 = vpop.f32.mrf.mxu2 }
  0xbe   :  { %v518_v22 = vpop.f32.mrf.mxu0  ;;  %v546_v26 = vpop.f32.mrf.mxu2 }
  0xbf   :  { %v531_v23 = vpop.f32.mrf.mxu1  ;;  %v519_v24 = vadd.f32 %v518_v22, %v506_v21 }
  0xc1   :  { %v532_v25 = vadd.f32 %v531_v23, %v519_v24 }
  0xc3   :  { %v545_v27 = vadd.f32 %v544_v20, %v532_v25 }
  0xc5   :  { %v548_v28 = vmul.f32 %v545_v27, %v545_v27 }
  0xc6   :  { %v520_v29 = vpop.f32.mrf.mxu0 }
  0xc7   :  { %v533_v30 = vpop.f32.mrf.mxu1  ;;  %802 = vmatmul.msk.f32.vlgmr.msrb.gmra.mxu3 %vm453_vm0, %v548_v28 }
 0x14a   :  { %v577_v32 = vpop.f32.mrf.mxu3 }
 0x14b   :  { %v578_v33 = vadd.f32 %v854_v31, %v577_v32 }
 0x14d   :  { %v580_v34 = vmax.f32 %v578_v33, 1e-12 }
 0x14f   :  { %855 = vrsqrt.f32 %v580_v34  ;;  %vm588_vm1 = vcmp.eq.f32.partialorder %v580_v34, inf  ;;  %v591_v42 = vand.u32 2147483648, %v580_v34  ;;  %vm590_vm2 = vcmp.eq.f32.partialorder %v580_v34, 0.0 }
 0x155   :  { %v856_v35 = vpop.eup %855 }
 0x156   :  { %v582_v36 = vmul.f32 %v856_v35, %v580_v34 }
 0x158   :  { %v583_v37 = vmul.f32 %v856_v35, %v582_v36 }
 0x15a   :  { %v584_v38 = vmul.f32 0.5, %v583_v37 }
 0x15c   :  { %v585_v39 = vsub.f32 1.5, %v584_v38 }
 0x15e   :  { %v586_v40 = vmul.f32 %v856_v35, %v585_v39 }
 0x160   :  { %v587_v41 = vmul.f32 %v586_v40, %v580_v34 }
 0x162   :  { %v589_v43 = vsel %vm588_vm1, %v580_v34, %v587_v41 }
 0x163   :  { %v592_v44 = vsel %vm590_vm2, %v591_v42, %v589_v43 }
 0x164   :  { %v593_v45 = vmul.f32 %v592_v44, %v545_v27 }
 0x166   :  { %v594_v46 = vpack.c.bf16 %v593_v45, %v593_v45 }
 0x168   :  { %596 = vst.msk [vmem:[%s1077_s5] sm:$0xf] %vm595_vm3, %v594_v46 }

// kernel: tile.18
= control target key start
LH: loop header
LB: loop body
LE: loop exit
PB: predicated region body
PF: predicated region fallthrough
CT: control target
= control target key end

     0   :  { %s22_s0 = inlined_call_operand.vmem [shape: f32[16], index: 0, kind: input, shape index: {}]   ;;  %s23_s1 = inlined_call_operand.vmem [shape: f32[4,16], index: 1, kind: output, shape index: {}]  }
   0x1   :  { %v4_v0 = vld [vmem:[%s22_s0] ss:$0 sm:$0xff] }
   0x2   :  { %5 = vst [vmem:[%s23_s1] sm:$0xf] %v4_v0 }

// kernel: tile.23
= control target key start
LH: loop header
LB: loop body
LE: loop exit
PB: predicated region body
PF: predicated region fallthrough
CT: control target
= control target key end

     0   :  { %s37_s8 = smov 16   ;;  %s38_s9 = smov 32   ;;  %vm7_vm0 = vcmask 130048   ;;  %vm13_vm1 = vcmask 523648   ;;  %vm19_vm2 = vcmask 392448   ;;  %vm25_vm3 = vcmask 261248   ;;  %s55_s0 = inlined_call_operand.vmem [shape: f32[4,16], index: 0, kind: input, shape index: {}]   ;;  %s56_s1 = inlined_call_operand.vmem [shape: f32[1,64], index: 1, kind: output, shape index: {}]  }
   0x1   :  { %v4_v0 = vld [vmem:[%s55_s0] sm:$0xf]  ;;  %s36_s0 = smov 48  }
   0x2   :  { %5 = vst [vmem:[#allocation1] sm:$0xf] %v4_v0 }
   0x9   :  { %v10_v1 = vld [vmem:[#allocation1 + $0x3] sm:$0x1]   ;;  %v22_v2 = vld [vmem:[#allocation1 + $0x1] sm:$0x1]   ;;  %v16_v3 = vld [vmem:[#allocation1 + $0x2] sm:$0x1]  }
   0xa   :  { %11 = vrot.lane.b32.xlu0 %v10_v1, %s36_s0  ;;  %23 = vrot.lane.b32.xlu1 %v22_v2, %s37_s8  ;;  %v6_v4 = vld [vmem:[#allocation1] sm:$0x1]  }
   0xb   :  { %8 = vst.msk [vmem:[#allocation0] sm:$0x1] %vm7_vm0, %v6_v4  }
  0x12   :  { %17 = vrot.lane.b32.xlu0 %v16_v3, %s38_s9 }
  0x7c   :  { %v12_v5 = vpop.permute.xlu0 %11   ;;  %v24_v6 = vpop.permute.xlu1 %23  }
  0x7d   :  { %14 = vst.msk [vmem:[#allocation0] sm:$0x1] %vm13_vm1, %v12_v5  }
  0x84   :  { %v18_v7 = vpop.permute.xlu0 %17  }
  0x85   :  { %20 = vst.msk [vmem:[#allocation0] sm:$0x1] %vm19_vm2, %v18_v7  }
  0x86   :  { %26 = vst.msk [vmem:[#allocation0] sm:$0x1] %vm25_vm3, %v24_v6  }
  0x8d   :  { %v29_v8 = vld [vmem:[#allocation0] sm:$0x1] }
  0x8e   :  { %32 = vst [vmem:[%s56_s1] sm:$0x1] %v29_v8 }

// kernel: forward.14
= control target key start
LH: loop header
LB: loop body
LE: loop exit
PB: predicated region body
PF: predicated region fallthrough
CT: control target
= control target key end

     0   :  { %vm181_vm0 = vcmask 261120   ;;  %vm237_vm1 = vcmask 523264   ;;  %vm276_vm4 = vcmask 519168   ;;  %s501_s1 = inlined_call_operand.vmem [shape: bf16[288,64], index: 1, kind: input, shape index: {}]   ;;  %s502_s0 = inlined_call_operand.vmem [shape: bf16[8,288], index: 0, kind: input, shape index: {}]   ;;  %s503_s3 = inlined_call_operand.vmem [shape: f32[64,64], index: 3, kind: input, shape index: {}]   ;;  %s504_s2 = inlined_call_operand.vmem [shape: f32[1,64], index: 2, kind: input, shape index: {}]   ;;  %s505_s4 = inlined_call_operand.vmem [shape: f32[1,64], index: 4, kind: input, shape index: {}]   ;;  %s506_s5 = inlined_call_operand.vmem [shape: bf16[8,64], index: 5, kind: output, shape index: {}]  }
   0x1   :  { %v363_v0 = vld [vmem:[%s501_s1 + $0x38] sm:$0xff]  ;;  %v362_v2 = vld [vmem:[%s501_s1 + $0x30] sm:$0xff]  ;;  %v373_v4 = vld [vmem:[%s501_s1 + $0x88] sm:$0xff] }
   0x2   :  { %v371_v1 = vld [vmem:[%s501_s1 + $0x78] sm:$0xff]  ;;  %185 = vmatpush.bf16.msra.mxu0 %v363_v0  ;;  %v370_v3 = vld [vmem:[%s501_s1 + $0x70] sm:$0xff]  ;;  %217 = vmatpush.bf16.msra.mxu2 %v373_v4  ;;  %v372_v5 = vld [vmem:[%s501_s1 + $0x80] sm:$0xff] }
   0x3   :  { %198 = vmatpush.bf16.msra.mxu1 %v371_v1  ;;  %v22_v6 = vld [vmem:[%s502_s0 + $0x8] sm:$0xf]  ;;  %v232_v10 = vld [vmem:[%s503_s3 + $0x38] sm:$0xff]  ;;  %v360_v12 = vld [vmem:[%s501_s1 + $0x20] sm:$0xff] }
   0x4   :  { %v67_v7 = vunpack.c.l.b16 %v22_v6  ;;  %v361_v8 = vld [vmem:[%s501_s1 + $0x28] sm:$0xff]  ;;  %249 = vmatpush.msra.mxu3 %v232_v10  ;;  %v368_v13 = vld [vmem:[%s501_s1 + $0x60] sm:$0xff]  ;;  %v359_v14 = vld [vmem:[%s501_s1 + $0x18] sm:$0xff] }
   0x5   :  { %v369_v9 = vld [vmem:[%s501_s1 + $0x68] sm:$0xff]  ;;  %v367_v15 = vld [vmem:[%s501_s1 + $0x58] sm:$0xff]  ;;  %v358_v16 = vld [vmem:[%s501_s1 + $0x10] sm:$0xff] }
   0x6   :  { %186 = vmatpush.bf16.msra.mxu0 %v362_v2  ;;  %v70_v11 = vpack.c.b16 %v67_v7, %v67_v7  ;;  %218 = vmatpush.bf16.msra.mxu2 %v372_v5  ;;  %v366_v17 = vld [vmem:[%s501_s1 + $0x50] sm:$0xff]  ;;  %v357_v18 = vld [vmem:[%s501_s1 + $0x8] sm:$0xff]  ;;  %v21_v20 = vld [vmem:[%s502_s0] sm:$0xff] }
   0x7   :  { %199 = vmatpush.bf16.msra.mxu1 %v370_v3  ;;  %v365_v19 = vld [vmem:[%s501_s1 + $0x48] sm:$0xff]  ;;  %v65_v21 = vunpack.c.l.b16 %v21_v20  ;;  %v66_v22 = vunpack.c.h.b16 %v21_v20  ;;  %v356_v23 = vld [vmem:[%s501_s1] sm:$0xff]  ;;  %v231_v27 = vld [vmem:[%s503_s3 + $0x30] sm:$0xff] }
   0x8   :  { %v364_v24 = vld [vmem:[%s501_s1 + $0x40] sm:$0xff]  ;;  %v230_v28 = vld [vmem:[%s503_s3 + $0x28] sm:$0xff]  ;;  %250 = vmatpush.msra.mxu3 %v231_v27  ;;  %v228_v30 = vld [vmem:[%s503_s3 + $0x18] sm:$0xff] }
   0x9   :  { %354 = vmatmul.msk.bf16.vlgmr.msra.gmra.mxu2 %vm181_vm0, %v70_v11  ;;  %v68_v25 = vpack.c.b16 %v65_v21, %v65_v21  ;;  %v69_v26 = vpack.c.b16 %v66_v22, %v66_v22  ;;  %v229_v29 = vld [vmem:[%s503_s3 + $0x20] sm:$0xff]  ;;  %v227_v31 = vld [vmem:[%s503_s3 + $0x10] sm:$0xff]  ;;  %v226_v32 = vld [vmem:[%s503_s3 + $0x8] sm:$0xff] }
   0xa   :  { %187 = vmatpush.bf16.msra.mxu0 %v361_v8  ;;  %251 = vmatpush.msra.mxu3 %v230_v28  ;;  %v225_v33 = vld [vmem:[%s503_s3] sm:$0xff] }
   0xb   :  { %200 = vmatpush.bf16.msra.mxu1 %v369_v9  ;;  %v374_v36 = vld [vmem:[%s504_s2] ss:$0 sm:$0xff] }
   0xc   :  { %252 = vmatpush.msra.mxu3 %v229_v29  ;;  %v375_v45 = vld [vmem:[%s505_s4] ss:$0 sm:$0xff] }
   0xe   :  { %188 = vmatpush.bf16.msra.mxu0 %v360_v12  ;;  %253 = vmatpush.msra.mxu3 %v228_v30 }
   0xf   :  { %201 = vmatpush.bf16.msra.mxu1 %v368_v13 }
  0x10   :  { %254 = vmatpush.msra.mxu3 %v227_v31 }
  0x12   :  { %189 = vmatpush.bf16.msra.mxu0 %v359_v14  ;;  %255 = vmatpush.msra.mxu3 %v226_v32 }
  0x13   :  { %202 = vmatpush.bf16.msra.mxu1 %v367_v15 }
  0x14   :  { %256 = vmatpush.msra.mxu3 %v225_v33 }
  0x16   :  { %190 = vmatpush.bf16.msra.mxu0 %v358_v16 }
  0x17   :  { %203 = vmatpush.bf16.msra.mxu1 %v366_v17 }
  0x1a   :  { %191 = vmatpush.bf16.msra.mxu0 %v357_v18 }
  0x1b   :  { %204 = vmatpush.bf16.msra.mxu1 %v365_v19 }
  0x1e   :  { %192 = vmatpush.bf16.msra.mxu0 %v356_v23 }
  0x1f   :  { %205 = vmatpush.bf16.msra.mxu1 %v364_v24 }
  0x21   :  { %193 = vmatmul.bf16.vlgmr.msra.gmra.mxu0 %v68_v25 }
  0x22   :  { %206 = vmatmul.bf16.vlgmr.msra.gmra.mxu1 %v69_v26 }
  0x8c   :  { %v220_v34 = vpop.f32.mrf.mxu2 }
  0x94   :  { %v222_v35 = vpop.f32.mrf.mxu2 }
  0x9e   :  { %v194_v37 = vpop.f32.mrf.mxu0 }
  0x9f   :  { %v207_v38 = vpop.f32.mrf.mxu1  ;;  %v195_v39 = vadd.f32 %v374_v36, %v194_v37 }
  0xa1   :  { %v208_v40 = vadd.f32 %v207_v38, %v195_v39 }
  0xa3   :  { %v221_v41 = vadd.f32 %v220_v34, %v208_v40 }
  0xa5   :  { %v224_v42 = vmul.f32 %v221_v41, %v221_v41 }
  0xa6   :  { %v196_v43 = vpop.f32.mrf.mxu0 }
  0xa7   :  { %v209_v44 = vpop.f32.mrf.mxu1  ;;  %355 = vmatmul.msk.f32.vlgmr.msra.gmra.mxu3 %vm237_vm1, %v224_v42 }
 0x12a   :  { %v258_v46 = vpop.f32.mrf.mxu3 }
 0x12b   :  { %v259_v47 = vadd.f32 %v375_v45, %v258_v46 }
 0x12d   :  { %v261_v48 = vmax.f32 %v259_v47, 1e-12 }
 0x12f   :  { %376 = vrsqrt.f32 %v261_v48  ;;  %vm269_vm2 = vcmp.eq.f32.partialorder %v261_v48, inf  ;;  %v272_v56 = vand.u32 2147483648, %v261_v48  ;;  %vm271_vm3 = vcmp.eq.f32.partialorder %v261_v48, 0.0 }
 0x135   :  { %v377_v49 = vpop.eup %376 }
 0x136   :  { %v263_v50 = vmul.f32 %v377_v49, %v261_v48 }
 0x138   :  { %v264_v51 = vmul.f32 %v377_v49, %v263_v50 }
 0x13a   :  { %v265_v52 = vmul.f32 0.5, %v264_v51 }
 0x13c   :  { %v266_v53 = vsub.f32 1.5, %v265_v52 }
 0x13e   :  { %v267_v54 = vmul.f32 %v377_v49, %v266_v53 }
 0x140   :  { %v268_v55 = vmul.f32 %v267_v54, %v261_v48 }
 0x142   :  { %v270_v57 = vsel %vm269_vm2, %v261_v48, %v268_v55 }
 0x143   :  { %v273_v58 = vsel %vm271_vm3, %v272_v56, %v270_v57 }
 0x144   :  { %v274_v59 = vmul.f32 %v273_v58, %v221_v41 }
 0x146   :  { %v275_v60 = vpack.c.bf16 %v274_v59, %v274_v59 }
 0x148   :  { %277 = vst.msk [vmem:[%s506_s5] sm:$0xf] %vm276_vm4, %v275_v60 }

// kernel: tile.28
= control target key start
LH: loop header
LB: loop body
LE: loop exit
PB: predicated region body
PF: predicated region fallthrough
CT: control target
= control target key end

     0   :  { %s22_s0 = inlined_call_operand.vmem [shape: f32[8], index: 0, kind: input, shape index: {}]   ;;  %s23_s1 = inlined_call_operand.vmem [shape: f32[4,8], index: 1, kind: output, shape index: {}]  }
   0x1   :  { %v4_v0 = vld [vmem:[%s22_s0] ss:$0 sm:$0xff] }
   0x2   :  { %5 = vst [vmem:[%s23_s1] sm:$0xf] %v4_v0 }

// kernel: tile.29
= control target key start
LH: loop header
LB: loop body
LE: loop exit
PB: predicated region body
PF: predicated region fallthrough
CT: control target
= control target key end

     0   :  { %s37_s8 = smov 8   ;;  %s38_s9 = smov 16   ;;  %vm7_vm0 = vcmask 64512   ;;  %vm13_vm1 = vcmask 261312   ;;  %vm19_vm2 = vcmask 195712   ;;  %vm25_vm3 = vcmask 130112   ;;  %s55_s0 = inlined_call_operand.vmem [shape: f32[4,8], index: 0, kind: input, shape index: {}]   ;;  %s56_s1 = inlined_call_operand.vmem [shape: f32[1,32], index: 1, kind: output, shape index: {}]  }
   0x1   :  { %v4_v0 = vld [vmem:[%s55_s0] sm:$0xf]  ;;  %s36_s0 = smov 24  }
   0x2   :  { %5 = vst [vmem:[#allocation1] sm:$0xf] %v4_v0 }
   0x9   :  { %v10_v1 = vld [vmem:[#allocation1 + $0x3] sm:$0x1]   ;;  %v22_v2 = vld [vmem:[#allocation1 + $0x1] sm:$0x1]   ;;  %v16_v3 = vld [vmem:[#allocation1 + $0x2] sm:$0x1]  }
   0xa   :  { %11 = vrot.lane.b32.xlu0 %v10_v1, %s36_s0  ;;  %23 = vrot.lane.b32.xlu1 %v22_v2, %s37_s8  ;;  %v6_v4 = vld [vmem:[#allocation1] sm:$0x1]  }
   0xb   :  { %8 = vst.msk [vmem:[#allocation0] sm:$0x1] %vm7_vm0, %v6_v4  }
  0x12   :  { %17 = vrot.lane.b32.xlu0 %v16_v3, %s38_s9 }
  0x7c   :  { %v12_v5 = vpop.permute.xlu0 %11   ;;  %v24_v6 = vpop.permute.xlu1 %23  }
  0x7d   :  { %14 = vst.msk [vmem:[#allocation0] sm:$0x1] %vm13_vm1, %v12_v5  }
  0x84   :  { %v18_v7 = vpop.permute.xlu0 %17  }
  0x85   :  { %20 = vst.msk [vmem:[#allocation0] sm:$0x1] %vm19_vm2, %v18_v7  }
  0x86   :  { %26 = vst.msk [vmem:[#allocation0] sm:$0x1] %vm25_vm3, %v24_v6  }
  0x8d   :  { %v29_v8 = vld [vmem:[#allocation0] sm:$0x1] }
  0x8e   :  { %32 = vst [vmem:[%s56_s1] sm:$0x1] %v29_v8 }

// kernel: forward.15
= control target key start
LH: loop header
LB: loop body
LE: loop exit
PB: predicated region body
PF: predicated region fallthrough
CT: control target
= control target key end

     0   :  { %s462_s12 = smov 0   ;;  %s512_s0 = inlined_call_operand.vmem [shape: bf16[32,144], index: 0, kind: input, shape index: {}]   ;;  %s513_s1 = inlined_call_operand.vmem [shape: bf16[144,32], index: 1, kind: input, shape index: {}]   ;;  %s514_s2 = inlined_call_operand.vmem [shape: f32[1,32], index: 2, kind: input, shape index: {}]   ;;  %s515_s3 = inlined_call_operand.vmem [shape: f32[32,32], index: 3, kind: output, shape index: {}]  }
   0x1 LB: > { %s356_s13 = sadd.s32 4294967295, %s440_s12   ;;  %p360_p0 = scmp.ge.s32.totalorder %s440_s12, 1  ;;  %s440_s12 = sphi %s462_s12, %s13_s12  }
   0x2   : > { %p139_p1 = scmp.lt.s32.totalorder %s440_s12, 3 }
   0x4   : > { %p140_p2 = pnand %p360_p0, %p139_p1 }
   0x5   : > { %s361_s16 = sshll.u32 (!%p140_p2), %s356_s13, 1 }
   0x6   : > { %143 = sbr.rel (%p140_p2) target bundleno = 182 (0xb6), region = 32  ;;  %p165_p3 = scmp.lt.s32.totalorder (!%p140_p2), %s361_s16, 3 }
   0xb   : > { %v423_v0 = vld [vmem:[%s513_s1 + $0x38] sm:$0xff]  ;;  %v422_v1 = vld [vmem:[%s513_s1 + $0x30] sm:$0xff]  ;;  %v424_v2 = vld [vmem:[%s513_s1 + $0x40] sm:$0xff]  ;;  %s517_s16 = smov (!%p165_p3, %s361_s16), 3  ;;  %vm265_vm0 = vcmask 130048   ;;  %vm297_vm1 = vcmask 261120  }
   0xc   : > { %269 = vmatpush.bf16.msra.mxu0 %v423_v0  ;;  %290 = vmatpush.bf16.msra.mxu1 %v424_v2  ;;  %s413_s21 = sshll.u32 %s517_s16, 3  ;;  %v421_v3 = vld [vmem:[%s513_s1 + $0x28] sm:$0xff]  ;;  %v420_v7 = vld [vmem:[%s513_s1 + $0x20] sm:$0xff]  ;;  %v419_v8 = vld [vmem:[%s513_s1 + $0x18] sm:$0xff] }
   0xd   : > { %s169_s26 = scalar_lea.vmem %s512_s0, %s413_s21  ;;  %v418_v9 = vld [vmem:[%s513_s1 + $0x10] sm:$0xff]  ;;  %v417_v10 = vld [vmem:[%s513_s1 + $0x8] sm:$0xff]  ;;  %v416_v11 = vld [vmem:[%s513_s1] sm:$0xff]  ;;  %s175_s15 = scalar_lea.vmem %s515_s3, %s413_s21 }
   0xe   : > { %v414_v4 = vld [vmem:[%s169_s26 + $0x4] sm:$0xf]  ;;  %v370_v5 = vld [vmem:[%s169_s26 + $0x8] sm:$0xf0]  ;;  %v368_v12 = vld [vmem:[%s169_s26] sm:$0xf] }
   0xf   : > { %v373_v6 = vor.u32 %v414_v4, %v370_v5  ;;  %v415_v13 = vld [vmem:[%s169_s26 + $0x4] sm:$0xf0]  ;;  %v433_v15 = vld [vmem:[%s514_s2] ss:$0 sm:$0xff] }
  0x10   : > { %270 = vmatpush.bf16.msra.mxu0 %v422_v1  ;;  %v369_v14 = vor.u32 %v415_v13, %v368_v12 }
  0x11   : > { %410 = vmatmul.msk.bf16.vlgmr.msra.gmra.mxu1 %vm265_vm0, %v373_v6 }
  0x14   : > { %271 = vmatpush.bf16.msra.mxu0 %v421_v3 }
  0x18   : > { %272 = vmatpush.bf16.msra.mxu0 %v420_v7 }
  0x1c   : > { %273 = vmatpush.bf16.msra.mxu0 %v419_v8 }
  0x20   : > { %274 = vmatpush.bf16.msra.mxu0 %v418_v9 }
  0x24   : > { %275 = vmatpush.bf16.msra.mxu0 %v417_v10 }
  0x28   : > { %276 = vmatpush.bf16.msra.mxu0 %v416_v11 }
  0x2b   : > { %277 = vmatmul.bf16.vlgmr.msra.gmra.mxu0 %v369_v14 }
  0x8e   : > { %v292_v16 = vpop.f32.mrf.mxu1 }
  0x96   : > { %v294_v22 = vpop.f32.mrf.mxu1 }
  0xa8   : > { %v278_v17 = vpop.f32.mrf.mxu0 }
  0xa9   : > { %v279_v18 = vadd.f32 %v433_v15, %v278_v17 }
  0xab   : > { %v293_v19 = vadd.f32 %v292_v16, %v279_v18 }
  0xad   : > { %298 = vst.msk [vmem:[%s175_s15] sm:$0xff] %vm297_vm1, %v293_v19 }
  0xb0   : > { %v280_v20 = vpop.f32.mrf.mxu0 }
  0xb1   : > { %v281_v21 = vadd.f32 %v433_v15, %v280_v20 }
  0xb3   : > { %v295_v23 = vadd.f32 %v294_v22, %v281_v21 }
  0xb5   : > { %299 = vst.msk [vmem:[%s175_s15 + $0x8] sm:$0xff] %vm297_vm1, %v295_v23 }
  0xb6 PF: > { %s13_s12 = sadd.s32 1, %s440_s12  }
  0xb7   : > { %p10_p4 = scmp.ge.s32.totalorder %s13_s12, 4  }
  0xb9   :  { %12 = sbr.rel (!%p10_p4) target bundleno = 1 (0x1), region = 62 }

</bundles_post_ra>
